<compile_context>
chip_gen: v5e
topology: v5e:2x2
jax: 0.10.0
libtpu: 0.0.40
codegen_flags: <defaults>
</compile_context>

<pallas_src>
import jax
import jax.numpy as jnp
from jax.experimental import pallas as pl
from jax.experimental.pallas import tpu as pltpu


# ----------------------------- Pallas kernel ------------------------------- #

def _basic_block_kernel(x_ref, w1_ref, b1_ref, w2_ref, b2_ref, o_ref, xpad_ref):
    """Fully fused BasicBlock for one batch element.

    x_ref  : (1, H, W, C)   input (also the identity/residual branch)
    w*_ref : (3, 3*C, C)    conv weights, BN scale pre-folded, (kw, Cin) flat
    b*_ref : (1, C)         folded BN bias
    o_ref  : (1, H, W, C)
    xpad_ref: VMEM (H+2, W+2, C) f32 scratch used as the zero-padded input of
              BOTH convs (halo stays zero; only the interior is rewritten).
    """
    H, W, C = o_ref.shape[1], o_ref.shape[2], o_ref.shape[3]

    def conv3x3(w_ref):
        # kw + Cin folded into the contraction: 3 matmuls instead of 9.
        acc = jnp.zeros((H * W, C), jnp.float32)
        for kh in range(3):
            slab = xpad_ref[kh:kh + H, :, :]                    # (H, W+2, C)
            patch = jnp.concatenate(
                [slab[:, 0:W, :], slab[:, 1:W + 1, :], slab[:, 2:W + 2, :]],
                axis=-1).reshape(H * W, 3 * C)                  # (H*W, 3*C)
            acc = acc + jnp.dot(patch, w_ref[kh],
                                preferred_element_type=jnp.float32)
        return acc.reshape(H, W, C)

    # In-kernel padding (replaces wrapper-side jnp.pad): zero halo, copy interior.
    xpad_ref[...] = jnp.zeros_like(xpad_ref)
    x_f32 = x_ref[0].astype(jnp.float32)
    xpad_ref[pl.ds(1, H), pl.ds(1, W), :] = x_f32

    # conv1 + bn1 + relu -- result stays entirely in VMEM (halo is still zero).
    y1 = jnp.maximum(conv3x3(w1_ref) + b1_ref[0], 0.0)
    xpad_ref[pl.ds(1, H), pl.ds(1, W), :] = y1

    # conv2 + bn2 + residual add + relu.
    y2 = conv3x3(w2_ref) + b2_ref[0] + x_f32
    o_ref[0] = jnp.maximum(y2, 0.0).astype(o_ref.dtype)


# ------------------------------ JAX wrapper --------------------------------- #

def _fold_bn(gamma, beta, mean, var, eps=1e-5):
    inv = gamma / jnp.sqrt(var + eps)
    return inv, beta - mean * inv


def basic_block_forward(x_nchw, params):
    """BasicBlock forward. NCHW in/out to match PyTorch."""
    # TODO(synk): for stacks of blocks keep activations NHWC end-to-end instead
    # of transposing at every block boundary.
    x = jnp.transpose(x_nchw, (0, 2, 3, 1))  # NCHW -> NHWC
    N, H, W, C = x.shape

    s1, b1 = _fold_bn(params["bn1_gamma"], params["bn1_beta"],
                      params["bn1_mean"], params["bn1_var"])
    s2, b2 = _fold_bn(params["bn2_gamma"], params["bn2_beta"],
                      params["bn2_mean"], params["bn2_var"])

    # Fold BN scale into the conv weights (conv is linear) and flatten (kw, Cin)
    # for the kw-folded contraction used inside the kernel.
    w1f = (params["w1"] * s1).reshape(3, 3 * C, C).astype(jnp.float32)
    w2f = (params["w2"] * s2).reshape(3, 3 * C, C).astype(jnp.float32)
    b1 = b1.reshape(1, C).astype(jnp.float32)
    b2 = b2.reshape(1, C).astype(jnp.float32)

    out = pl.pallas_call(
        _basic_block_kernel,
        out_shape=jax.ShapeDtypeStruct((N, H, W, C), x.dtype),
        grid_spec=pltpu.PrefetchScalarGridSpec(
            num_scalar_prefetch=0,
            grid=(N,),
            in_specs=[
                pl.BlockSpec((1, H, W, C), lambda n: (n, 0, 0, 0)),
                pl.BlockSpec((3, 3 * C, C), lambda n: (0, 0, 0)),
                pl.BlockSpec((1, C), lambda n: (0, 0)),
                pl.BlockSpec((3, 3 * C, C), lambda n: (0, 0, 0)),
                pl.BlockSpec((1, C), lambda n: (0, 0)),
            ],
            out_specs=pl.BlockSpec((1, H, W, C), lambda n: (n, 0, 0, 0)),
            scratch_shapes=[pltpu.VMEM((H + 2, W + 2, C), jnp.float32)],
        ),
        compiler_params=pltpu.CompilerParams(
            dimension_semantics=("parallel",)),
    )(x, w1f, b1, w2f, b2)

    return jnp.transpose(out, (0, 3, 1, 2))  # NHWC -> NCHW


# ------------------------------ reference ---------------------------------- #

def _ref_forward(x_nchw, params):
    """Pure-JAX reference (NCHW, matches PyTorch eval-mode semantics)."""
    def conv(x, w_hwio):
        w = jnp.transpose(w_hwio, (3, 2, 0, 1))  # HWIO -> OIHW
        return jax.lax.conv_general_dilated(
            x, w, window_strides=(1, 1), padding=((1, 1), (1, 1)),
            dimension_numbers=("NCHW", "OIHW", "NCHW"))

    def bn(x, g, b, m, v, eps=1e-5):
        g, b, m, v = [a.reshape(1, -1, 1, 1) for a in (g, b, m, v)]
        return (x - m) / jnp.sqrt(v + eps) * g + b

    out = jax.nn.relu(bn(conv(x_nchw, params["w1"]), params["bn1_gamma"],
                         params["bn1_beta"], params["bn1_mean"], params["bn1_var"]))
    out = bn(conv(out, params["w2"]), params["bn2_gamma"],
             params["bn2_beta"], params["bn2_mean"], params["bn2_var"])
    return jax.nn.relu(out + x_nchw)


# --------------------------------- main ------------------------------------- #

if __name__ == "__main__":
    N, C, HH, WW = 2, 4, 16, 16  # in_channels == out_channels, stride=1, no downsample

    keys = jax.random.split(jax.random.PRNGKey(0), 9)

    params = {
        # conv weights stored HWIO: (3, 3, Cin, Cout)
        "w1": jax.random.normal(keys[0], (3, 3, C, C), jnp.float32) * 0.1,
        "w2": jax.random.normal(keys[1], (3, 3, C, C), jnp.float32) * 0.1,
        "bn1_gamma": jax.random.normal(keys[2], (C,), jnp.float32) * 0.1 + 1.0,
        "bn1_beta": jax.random.normal(keys[3], (C,), jnp.float32) * 0.1,
        "bn1_mean": jax.random.normal(keys[4], (C,), jnp.float32) * 0.1,
        "bn1_var": jnp.abs(jax.random.normal(keys[5], (C,), jnp.float32)) * 0.1 + 1.0,
        "bn2_gamma": jax.random.normal(keys[6], (C,), jnp.float32) * 0.1 + 1.0,
        "bn2_beta": jax.random.normal(keys[7], (C,), jnp.float32) * 0.1,
        "bn2_mean": jnp.zeros((C,), jnp.float32),
        "bn2_var": jnp.ones((C,), jnp.float32),
    }

    x = jax.random.normal(keys[8], (N, C, HH, WW), jnp.float32)

    out = jax.block_until_ready(basic_block_forward(x, params))
    ref = jax.block_until_ready(_ref_forward(x, params))

    assert out.shape == (N, C, HH, WW)
    assert jnp.allclose(out, ref, atol=1e-4, rtol=1e-4), float(jnp.max(jnp.abs(out - ref)))

    print("KERNEL_OK")
</pallas_src>

<mosaic_0001>
module attributes {stable_mosaic.version = 11 : i64} {
  func.func @_basic_block_kernel(%arg0: i32, %arg1: memref<1x16x16x4xf32, #tpu.memory_space<vmem>>, %arg2: memref<3x12x4xf32, #tpu.memory_space<vmem>>, %arg3: memref<1x4xf32, #tpu.memory_space<vmem>>, %arg4: memref<3x12x4xf32, #tpu.memory_space<vmem>>, %arg5: memref<1x4xf32, #tpu.memory_space<vmem>>, %arg6: memref<1x16x16x4xf32, #tpu.memory_space<vmem>>, %arg7: memref<18x18x4xf32, #tpu.memory_space<vmem>>) attributes {dimension_semantics = [#tpu.dimension_semantics<parallel>], iteration_bounds = array<i64: 2>, scalar_prefetch = 0 : i64, scratch_operands = 1 : i64, tpu.core_type = #tpu.core_type<tc>, window_params = [{transform_indices = @transform_0, window_bounds = array<i64: 1, 16, 16, 4>}, {pipeline_mode = #tpu.pipeline_mode<synchronous>, transform_indices = @transform_1, window_bounds = array<i64: 3, 12, 4>}, {pipeline_mode = #tpu.pipeline_mode<synchronous>, transform_indices = @transform_2, window_bounds = array<i64: 1, 4>}, {pipeline_mode = #tpu.pipeline_mode<synchronous>, transform_indices = @transform_3, window_bounds = array<i64: 3, 12, 4>}, {pipeline_mode = #tpu.pipeline_mode<synchronous>, transform_indices = @transform_4, window_bounds = array<i64: 1, 4>}, {transform_indices = @transform_5, window_bounds = array<i64: 1, 16, 16, 4>}]} {
    %cst = arith.constant 0.000000e+00 : f32
    %0 = vector.broadcast %cst : f32 to vector<18x18x4xf32>
    %c0 = arith.constant 0 : index
    %c0_0 = arith.constant 0 : index
    %c0_1 = arith.constant 0 : index
    %1 = vector.load %arg7[%c0, %c0_0, %c0_1] : memref<18x18x4xf32, #tpu.memory_space<vmem>>, vector<18x18x4xf32>
    tpu.vector_store %arg7[%c0, %c0_0, %c0_1], %0 {strides = array<i32>} : memref<18x18x4xf32, #tpu.memory_space<vmem>>, vector<18x18x4xf32>,
    %c0_2 = arith.constant 0 : index
    %c0_3 = arith.constant 0 : index
    %c0_4 = arith.constant 0 : index
    %c0_5 = arith.constant 0 : index
    %2 = vector.load %arg1[%c0_2, %c0_3, %c0_4, %c0_5] : memref<1x16x16x4xf32, #tpu.memory_space<vmem>>, vector<1x16x16x4xf32>
    %3 = vector.shape_cast %2 : vector<1x16x16x4xf32> to vector<16x16x4xf32>
    %c1 = arith.constant 1 : index
    %c1_6 = arith.constant 1 : index
    %c0_7 = arith.constant 0 : index
    %4 = vector.load %arg7[%c1, %c1_6, %c0_7] : memref<18x18x4xf32, #tpu.memory_space<vmem>>, vector<16x16x4xf32>
    tpu.vector_store %arg7[%c1, %c1_6, %c0_7], %3 {strides = array<i32>} : memref<18x18x4xf32, #tpu.memory_space<vmem>>, vector<16x16x4xf32>,
    %cst_8 = arith.constant 0.000000e+00 : f32
    %5 = vector.broadcast %cst_8 : f32 to vector<256x4xf32>
    %c0_9 = arith.constant 0 : index
    %c0_10 = arith.constant 0 : index
    %c0_11 = arith.constant 0 : index
    %6 = vector.load %arg7[%c0_9, %c0_10, %c0_11] : memref<18x18x4xf32, #tpu.memory_space<vmem>>, vector<16x18x4xf32>
    %7 = vector.extract_strided_slice %6 {offsets = [0, 0, 0], sizes = [16, 16, 4], strides = [1, 1, 1]} : vector<16x18x4xf32> to vector<16x16x4xf32>
    %8 = vector.extract_strided_slice %6 {offsets = [0, 1, 0], sizes = [16, 16, 4], strides = [1, 1, 1]} : vector<16x18x4xf32> to vector<16x16x4xf32>
    %9 = vector.extract_strided_slice %6 {offsets = [0, 2, 0], sizes = [16, 16, 4], strides = [1, 1, 1]} : vector<16x18x4xf32> to vector<16x16x4xf32>
    %10 = tpu.concatenate %7, %8, %9 in 2 : vector<16x16x4xf32>, vector<16x16x4xf32>, vector<16x16x4xf32> -> vector<16x16x12xf32>
    %11 = vector.shape_cast %10 : vector<16x16x12xf32> to vector<256x12xf32>
    %c0_12 = arith.constant 0 : index
    %c0_13 = arith.constant 0 : index
    %c0_14 = arith.constant 0 : index
    %12 = vector.load %arg2[%c0_12, %c0_13, %c0_14] : memref<3x12x4xf32, #tpu.memory_space<vmem>>, vector<1x12x4xf32>
    %13 = vector.shape_cast %12 : vector<1x12x4xf32> to vector<12x4xf32>
    %cst_15 = arith.constant dense<0.000000e+00> : vector<256x4xf32>
    %14 = tpu.matmul %11, %13, %cst_15 {dimension_numbers = #tpu.dot_dimension_numbers<[1], [0], [0], [1], [0, 0, 1, 1], [], []>} : vector<256x12xf32>, vector<12x4xf32>, vector<256x4xf32> -> vector<256x4xf32>
    %15 = arith.addf %5, %14 : vector<256x4xf32>
    %c1_16 = arith.constant 1 : index
    %c0_17 = arith.constant 0 : index
    %c0_18 = arith.constant 0 : index
    %16 = vector.load %arg7[%c1_16, %c0_17, %c0_18] : memref<18x18x4xf32, #tpu.memory_space<vmem>>, vector<16x18x4xf32>
    %17 = vector.extract_strided_slice %16 {offsets = [0, 0, 0], sizes = [16, 16, 4], strides = [1, 1, 1]} : vector<16x18x4xf32> to vector<16x16x4xf32>
    %18 = vector.extract_strided_slice %16 {offsets = [0, 1, 0], sizes = [16, 16, 4], strides = [1, 1, 1]} : vector<16x18x4xf32> to vector<16x16x4xf32>
    %19 = vector.extract_strided_slice %16 {offsets = [0, 2, 0], sizes = [16, 16, 4], strides = [1, 1, 1]} : vector<16x18x4xf32> to vector<16x16x4xf32>
    %20 = tpu.concatenate %17, %18, %19 in 2 : vector<16x16x4xf32>, vector<16x16x4xf32>, vector<16x16x4xf32> -> vector<16x16x12xf32>
    %21 = vector.shape_cast %20 : vector<16x16x12xf32> to vector<256x12xf32>
    %c1_19 = arith.constant 1 : index
    %c0_20 = arith.constant 0 : index
    %c0_21 = arith.constant 0 : index
    %22 = vector.load %arg2[%c1_19, %c0_20, %c0_21] : memref<3x12x4xf32, #tpu.memory_space<vmem>>, vector<1x12x4xf32>
    %23 = vector.shape_cast %22 : vector<1x12x4xf32> to vector<12x4xf32>
    %cst_22 = arith.constant dense<0.000000e+00> : vector<256x4xf32>
    %24 = tpu.matmul %21, %23, %cst_22 {dimension_numbers = #tpu.dot_dimension_numbers<[1], [0], [0], [1], [0, 0, 1, 1], [], []>} : vector<256x12xf32>, vector<12x4xf32>, vector<256x4xf32> -> vector<256x4xf32>
    %25 = arith.addf %15, %24 : vector<256x4xf32>
    %c2 = arith.constant 2 : index
    %c0_23 = arith.constant 0 : index
    %c0_24 = arith.constant 0 : index
    %26 = vector.load %arg7[%c2, %c0_23, %c0_24] : memref<18x18x4xf32, #tpu.memory_space<vmem>>, vector<16x18x4xf32>
    %27 = vector.extract_strided_slice %26 {offsets = [0, 0, 0], sizes = [16, 16, 4], strides = [1, 1, 1]} : vector<16x18x4xf32> to vector<16x16x4xf32>
    %28 = vector.extract_strided_slice %26 {offsets = [0, 1, 0], sizes = [16, 16, 4], strides = [1, 1, 1]} : vector<16x18x4xf32> to vector<16x16x4xf32>
    %29 = vector.extract_strided_slice %26 {offsets = [0, 2, 0], sizes = [16, 16, 4], strides = [1, 1, 1]} : vector<16x18x4xf32> to vector<16x16x4xf32>
    %30 = tpu.concatenate %27, %28, %29 in 2 : vector<16x16x4xf32>, vector<16x16x4xf32>, vector<16x16x4xf32> -> vector<16x16x12xf32>
    %31 = vector.shape_cast %30 : vector<16x16x12xf32> to vector<256x12xf32>
    %c2_25 = arith.constant 2 : index
    %c0_26 = arith.constant 0 : index
    %c0_27 = arith.constant 0 : index
    %32 = vector.load %arg2[%c2_25, %c0_26, %c0_27] : memref<3x12x4xf32, #tpu.memory_space<vmem>>, vector<1x12x4xf32>
    %33 = vector.shape_cast %32 : vector<1x12x4xf32> to vector<12x4xf32>
    %cst_28 = arith.constant dense<0.000000e+00> : vector<256x4xf32>
    %34 = tpu.matmul %31, %33, %cst_28 {dimension_numbers = #tpu.dot_dimension_numbers<[1], [0], [0], [1], [0, 0, 1, 1], [], []>} : vector<256x12xf32>, vector<12x4xf32>, vector<256x4xf32> -> vector<256x4xf32>
    %35 = arith.addf %25, %34 : vector<256x4xf32>
    %36 = vector.shape_cast %35 : vector<256x4xf32> to vector<16x16x4xf32>
    %c0_29 = arith.constant 0 : index
    %c0_30 = arith.constant 0 : index
    %37 = vector.load %arg3[%c0_29, %c0_30] : memref<1x4xf32, #tpu.memory_space<vmem>>, vector<1x4xf32>
    %38 = vector.shape_cast %37 : vector<1x4xf32> to vector<4xf32>
    %39 = vector.shape_cast %38 : vector<4xf32> to vector<1x1x4xf32>
    %40 = vector.broadcast %39 : vector<1x1x4xf32> to vector<16x16x4xf32>
    %41 = arith.addf %36, %40 : vector<16x16x4xf32>
    %cst_31 = arith.constant 0.000000e+00 : f32
    %42 = vector.broadcast %cst_31 : f32 to vector<16x16x4xf32>
    %43 = arith.maximumf %41, %42 : vector<16x16x4xf32>
    %c1_32 = arith.constant 1 : index
    %c1_33 = arith.constant 1 : index
    %c0_34 = arith.constant 0 : index
    %44 = vector.load %arg7[%c1_32, %c1_33, %c0_34] : memref<18x18x4xf32, #tpu.memory_space<vmem>>, vector<16x16x4xf32>
    tpu.vector_store %arg7[%c1_32, %c1_33, %c0_34], %43 {strides = array<i32>} : memref<18x18x4xf32, #tpu.memory_space<vmem>>, vector<16x16x4xf32>,
    %cst_35 = arith.constant 0.000000e+00 : f32
    %45 = vector.broadcast %cst_35 : f32 to vector<256x4xf32>
    %c0_36 = arith.constant 0 : index
    %c0_37 = arith.constant 0 : index
    %c0_38 = arith.constant 0 : index
    %46 = vector.load %arg7[%c0_36, %c0_37, %c0_38] : memref<18x18x4xf32, #tpu.memory_space<vmem>>, vector<16x18x4xf32>
    %47 = vector.extract_strided_slice %46 {offsets = [0, 0, 0], sizes = [16, 16, 4], strides = [1, 1, 1]} : vector<16x18x4xf32> to vector<16x16x4xf32>
    %48 = vector.extract_strided_slice %46 {offsets = [0, 1, 0], sizes = [16, 16, 4], strides = [1, 1, 1]} : vector<16x18x4xf32> to vector<16x16x4xf32>
    %49 = vector.extract_strided_slice %46 {offsets = [0, 2, 0], sizes = [16, 16, 4], strides = [1, 1, 1]} : vector<16x18x4xf32> to vector<16x16x4xf32>
    %50 = tpu.concatenate %47, %48, %49 in 2 : vector<16x16x4xf32>, vector<16x16x4xf32>, vector<16x16x4xf32> -> vector<16x16x12xf32>
    %51 = vector.shape_cast %50 : vector<16x16x12xf32> to vector<256x12xf32>
    %c0_39 = arith.constant 0 : index
    %c0_40 = arith.constant 0 : index
    %c0_41 = arith.constant 0 : index
    %52 = vector.load %arg4[%c0_39, %c0_40, %c0_41] : memref<3x12x4xf32, #tpu.memory_space<vmem>>, vector<1x12x4xf32>
    %53 = vector.shape_cast %52 : vector<1x12x4xf32> to vector<12x4xf32>
    %cst_42 = arith.constant dense<0.000000e+00> : vector<256x4xf32>
    %54 = tpu.matmul %51, %53, %cst_42 {dimension_numbers = #tpu.dot_dimension_numbers<[1], [0], [0], [1], [0, 0, 1, 1], [], []>} : vector<256x12xf32>, vector<12x4xf32>, vector<256x4xf32> -> vector<256x4xf32>
    %55 = arith.addf %45, %54 : vector<256x4xf32>
    %c1_43 = arith.constant 1 : index
    %c0_44 = arith.constant 0 : index
    %c0_45 = arith.constant 0 : index
    %56 = vector.load %arg7[%c1_43, %c0_44, %c0_45] : memref<18x18x4xf32, #tpu.memory_space<vmem>>, vector<16x18x4xf32>
    %57 = vector.extract_strided_slice %56 {offsets = [0, 0, 0], sizes = [16, 16, 4], strides = [1, 1, 1]} : vector<16x18x4xf32> to vector<16x16x4xf32>
    %58 = vector.extract_strided_slice %56 {offsets = [0, 1, 0], sizes = [16, 16, 4], strides = [1, 1, 1]} : vector<16x18x4xf32> to vector<16x16x4xf32>
    %59 = vector.extract_strided_slice %56 {offsets = [0, 2, 0], sizes = [16, 16, 4], strides = [1, 1, 1]} : vector<16x18x4xf32> to vector<16x16x4xf32>
    %60 = tpu.concatenate %57, %58, %59 in 2 : vector<16x16x4xf32>, vector<16x16x4xf32>, vector<16x16x4xf32> -> vector<16x16x12xf32>
    %61 = vector.shape_cast %60 : vector<16x16x12xf32> to vector<256x12xf32>
    %c1_46 = arith.constant 1 : index
    %c0_47 = arith.constant 0 : index
    %c0_48 = arith.constant 0 : index
    %62 = vector.load %arg4[%c1_46, %c0_47, %c0_48] : memref<3x12x4xf32, #tpu.memory_space<vmem>>, vector<1x12x4xf32>
    %63 = vector.shape_cast %62 : vector<1x12x4xf32> to vector<12x4xf32>
    %cst_49 = arith.constant dense<0.000000e+00> : vector<256x4xf32>
    %64 = tpu.matmul %61, %63, %cst_49 {dimension_numbers = #tpu.dot_dimension_numbers<[1], [0], [0], [1], [0, 0, 1, 1], [], []>} : vector<256x12xf32>, vector<12x4xf32>, vector<256x4xf32> -> vector<256x4xf32>
    %65 = arith.addf %55, %64 : vector<256x4xf32>
    %c2_50 = arith.constant 2 : index
    %c0_51 = arith.constant 0 : index
    %c0_52 = arith.constant 0 : index
    %66 = vector.load %arg7[%c2_50, %c0_51, %c0_52] : memref<18x18x4xf32, #tpu.memory_space<vmem>>, vector<16x18x4xf32>
    %67 = vector.extract_strided_slice %66 {offsets = [0, 0, 0], sizes = [16, 16, 4], strides = [1, 1, 1]} : vector<16x18x4xf32> to vector<16x16x4xf32>
    %68 = vector.extract_strided_slice %66 {offsets = [0, 1, 0], sizes = [16, 16, 4], strides = [1, 1, 1]} : vector<16x18x4xf32> to vector<16x16x4xf32>
    %69 = vector.extract_strided_slice %66 {offsets = [0, 2, 0], sizes = [16, 16, 4], strides = [1, 1, 1]} : vector<16x18x4xf32> to vector<16x16x4xf32>
    %70 = tpu.concatenate %67, %68, %69 in 2 : vector<16x16x4xf32>, vector<16x16x4xf32>, vector<16x16x4xf32> -> vector<16x16x12xf32>
    %71 = vector.shape_cast %70 : vector<16x16x12xf32> to vector<256x12xf32>
    %c2_53 = arith.constant 2 : index
    %c0_54 = arith.constant 0 : index
    %c0_55 = arith.constant 0 : index
    %72 = vector.load %arg4[%c2_53, %c0_54, %c0_55] : memref<3x12x4xf32, #tpu.memory_space<vmem>>, vector<1x12x4xf32>
    %73 = vector.shape_cast %72 : vector<1x12x4xf32> to vector<12x4xf32>
    %cst_56 = arith.constant dense<0.000000e+00> : vector<256x4xf32>
    %74 = tpu.matmul %71, %73, %cst_56 {dimension_numbers = #tpu.dot_dimension_numbers<[1], [0], [0], [1], [0, 0, 1, 1], [], []>} : vector<256x12xf32>, vector<12x4xf32>, vector<256x4xf32> -> vector<256x4xf32>
    %75 = arith.addf %65, %74 : vector<256x4xf32>
    %76 = vector.shape_cast %75 : vector<256x4xf32> to vector<16x16x4xf32>
    %c0_57 = arith.constant 0 : index
    %c0_58 = arith.constant 0 : index
    %77 = vector.load %arg5[%c0_57, %c0_58] : memref<1x4xf32, #tpu.memory_space<vmem>>, vector<1x4xf32>
    %78 = vector.shape_cast %77 : vector<1x4xf32> to vector<4xf32>
    %79 = vector.shape_cast %78 : vector<4xf32> to vector<1x1x4xf32>
    %80 = vector.broadcast %79 : vector<1x1x4xf32> to vector<16x16x4xf32>
    %81 = arith.addf %76, %80 : vector<16x16x4xf32>
    %82 = arith.addf %81, %3 : vector<16x16x4xf32>
    %cst_59 = arith.constant 0.000000e+00 : f32
    %83 = vector.broadcast %cst_59 : f32 to vector<16x16x4xf32>
    %84 = arith.maximumf %82, %83 : vector<16x16x4xf32>
    %c0_60 = arith.constant 0 : index
    %c0_61 = arith.constant 0 : index
    %c0_62 = arith.constant 0 : index
    %c0_63 = arith.constant 0 : index
    %85 = vector.load %arg6[%c0_60, %c0_61, %c0_62, %c0_63] : memref<1x16x16x4xf32, #tpu.memory_space<vmem>>, vector<1x16x16x4xf32>
    %86 = vector.shape_cast %85 : vector<1x16x16x4xf32> to vector<16x16x4xf32>
    %87 = vector.shape_cast %84 : vector<16x16x4xf32> to vector<1x16x16x4xf32>
    tpu.vector_store %arg6[%c0_60, %c0_61, %c0_62, %c0_63], %87 {strides = array<i32>} : memref<1x16x16x4xf32, #tpu.memory_space<vmem>>, vector<1x16x16x4xf32>,
    return
  }
  func.func @transform_0(%arg0: i32) -> (i32, i32, i32, i32) {
    %c0_i32 = arith.constant 0 : i32
    %c0_i32_0 = arith.constant 0 : i32
    %c0_i32_1 = arith.constant 0 : i32
    %c0_i32_2 = arith.constant 0 : i32
    return %arg0, %c0_i32, %c0_i32_0, %c0_i32_1 : i32, i32, i32, i32
  }
  func.func @transform_1(%arg0: i32) -> (i32, i32, i32) {
    %c0_i32 = arith.constant 0 : i32
    %c0_i32_0 = arith.constant 0 : i32
    %c0_i32_1 = arith.constant 0 : i32
    %c0_i32_2 = arith.constant 0 : i32
    return %c0_i32, %c0_i32_0, %c0_i32_1 : i32, i32, i32
  }
  func.func @transform_2(%arg0: i32) -> (i32, i32) {
    %c0_i32 = arith.constant 0 : i32
    %c0_i32_0 = arith.constant 0 : i32
    %c0_i32_1 = arith.constant 0 : i32
    return %c0_i32, %c0_i32_0 : i32, i32
  }
  func.func @transform_3(%arg0: i32) -> (i32, i32, i32) {
    %c0_i32 = arith.constant 0 : i32
    %c0_i32_0 = arith.constant 0 : i32
    %c0_i32_1 = arith.constant 0 : i32
    %c0_i32_2 = arith.constant 0 : i32
    return %c0_i32, %c0_i32_0, %c0_i32_1 : i32, i32, i32
  }
  func.func @transform_4(%arg0: i32) -> (i32, i32) {
    %c0_i32 = arith.constant 0 : i32
    %c0_i32_0 = arith.constant 0 : i32
    %c0_i32_1 = arith.constant 0 : i32
    return %c0_i32, %c0_i32_0 : i32, i32
  }
  func.func @transform_5(%arg0: i32) -> (i32, i32, i32, i32) {
    %c0_i32 = arith.constant 0 : i32
    %c0_i32_0 = arith.constant 0 : i32
    %c0_i32_1 = arith.constant 0 : i32
    %c0_i32_2 = arith.constant 0 : i32
    return %arg0, %c0_i32, %c0_i32_0, %c0_i32_1 : i32, i32, i32, i32
  }
}

</mosaic_0001>

<bundles_post_ra>
// kernel: tpu_custom_call.1
= control target key start
LH: loop header
LB: loop body
LE: loop exit
PB: predicated region body
PF: predicated region fallthrough
CT: control target
= control target key end

     0   :  { %s5418_s18 = smov 0   ;;  %s9313_s0 = inlined_call_operand.vmem [shape: f32[2,16,16,4], index: 0, kind: input, shape index: {}]   ;;  %s9314_s1 = inlined_call_operand.vmem [shape: f32[3,12,4], index: 1, kind: input, shape index: {}]   ;;  %s9315_s2 = inlined_call_operand.vmem [shape: f32[1,4], index: 2, kind: input, shape index: {}]   ;;  %s9316_s3 = inlined_call_operand.vmem [shape: f32[3,12,4], index: 3, kind: input, shape index: {}]   ;;  %s9317_s4 = inlined_call_operand.vmem [shape: f32[1,4], index: 4, kind: input, shape index: {}]   ;;  %s9318_s5 = inlined_call_operand.vmem [shape: f32[2,16,16,4], index: 5, kind: output, shape index: {}]  }
   0x1 LB: > { %s5063_s19 = sadd.s32 4294967295, %s5383_s18   ;;  %p5067_p0 = scmp.ge.s32.totalorder %s5383_s18, 1  ;;  %s5383_s18 = sphi %s5418_s18, %s15_s18  }
   0x2   : > { %p187_p1 = scmp.lt.s32.totalorder %s5383_s18, 3 }
   0x4   : > { %p188_p2 = pnand %p5067_p0, %p187_p1 }
   0x6   : > { %191 = sbr.rel (%p188_p2) target bundleno = 1656 (0x678), region = 40 }
   0xb   : > { %vm225_vm0 = vcmask 31744   ;;  %v5385_v0 = vmov 0.0   ;;  %vm442_vm1 = vcmask 1046528   ;;  %s5386_s20 = smov 4   ;;  %p215_p3 = scmp.lt.s32.totalorder %s5063_s19, 1  ;;  %vm228_vm2 = vcmask 25600  }
   0xc   : > { %226 = vst.msk [vmem:[#allocation2] sm:$0xff] %vm225_vm0, %v5385_v0  ;;  %vm619_vm3 = vcmask 1045504   ;;  %s5387_s25 = smov 8   ;;  %vm1475_vm4 = vcmask 1043456   ;;  %vm828_vm5 = vcmask 64512   ;;  %vm1378_vm6 = vcmask 97280  }
   0xd   : > { %227 = vst.msk [vmem:[#allocation2 + $0x8] sm:$0xff] %vm225_vm0, %v5385_v0  ;;  %s9786_s19 = smov (!%p215_p3, %s5063_s19), 1 }
   0xe   : > { %230 = vst.msk [vmem:[#allocation2 + $0x18] sm:$0xff] %vm225_vm0, %v5385_v0  ;;  %s5280_s21 = sshll.u32 %s9786_s19, 8 }
   0xf   : > { %231 = vst.msk [vmem:[#allocation2 + $0x20] sm:$0xff] %vm225_vm0, %v5385_v0  ;;  %s5510_s24 = scalar_lea.vmem %s9313_s0, %s5280_s21  ;;  %s8730_s13 = scalar_lea.vmem %s9318_s5, %s5280_s21 }
  0x10   : > { %233 = vst.msk [vmem:[#allocation2 + $0x30] sm:$0xff] %vm225_vm0, %v5385_v0  ;;  %v5519_v6 = vld [vmem:[%s5510_s24 + $0x10] sm:$0xff]  ;;  %v5524_v7 = vld [vmem:[%s5510_s24 + $0x18] sm:$0xff]  ;;  %v5585_v18 = vld [vmem:[%s5510_s24] sm:$0xff] }
  0x11   : > { %234 = vst.msk [vmem:[#allocation2 + $0x38] sm:$0xff] %vm225_vm0, %v5385_v0  ;;  %v5590_v19 = vld [vmem:[%s5510_s24 + $0x8] sm:$0xff]  ;;  %v5597_v21 = vld [vmem:[%s5510_s24 + $0x20] sm:$0xff]  ;;  %v5608_v23 = vld [vmem:[%s5510_s24 + $0x30] sm:$0xff] }
  0x12   : > { %236 = vst.msk [vmem:[#allocation2 + $0x48] sm:$0xff] %vm225_vm0, %v5385_v0  ;;  %v5602_v22 = vld [vmem:[%s5510_s24 + $0x28] sm:$0xff]  ;;  %v5613_v24 = vld [vmem:[%s5510_s24 + $0x38] sm:$0xff]  ;;  %v5618_v25 = vld [vmem:[%s5510_s24 + $0x40] sm:$0xff] }
  0x13   : > { %v5440_v1 = vld [vmem:[#allocation2] sm:$0xff]  ;;  %237 = vst.msk [vmem:[#allocation2 + $0x50] sm:$0xff] %vm225_vm0, %v5385_v0  ;;  %v5623_v26 = vld [vmem:[%s5510_s24 + $0x48] sm:$0xff]  ;;  %v5628_v27 = vld [vmem:[%s5510_s24 + $0x50] sm:$0xff] }
  0x14   : > { %v5444_v2 = vld [vmem:[#allocation2 + $0x8] sm:$0xff]  ;;  %v443_v3 = vrot.slane %v5440_v1, 1  ;;  %239 = vst.msk [vmem:[#allocation2 + $0x60] sm:$0xff] %vm225_vm0, %v5385_v0  ;;  %v5633_v28 = vld [vmem:[%s5510_s24 + $0x58] sm:$0xff]  ;;  %v5640_v30 = vld [vmem:[%s5510_s24 + $0x60] sm:$0xff] }
  0x15   : > { %9458 = vst [vmem:[#allocation3_spill] sm:$0xff] %v5444_v2  ;;  %v444_v4 = vrot.slane %v5444_v2, 1  ;;  %v5648_v33 = vld [vmem:[%s5510_s24 + $0x68] sm:$0xff]  ;;  %v5658_v36 = vld [vmem:[%s5510_s24 + $0x70] sm:$0xff]  ;;  %v5668_v40 = vld [vmem:[%s5510_s24 + $0x78] sm:$0xff] }
  0x16   : > { %240 = vst.msk [vmem:[#allocation2 + $0x68] sm:$0xff] %vm225_vm0, %v5385_v0  ;;  %v5682_v44 = vld [vmem:[%s5510_s24 + $0x80] sm:$0xff]  ;;  %v5694_v48 = vld [vmem:[%s5510_s24 + $0x88] sm:$0xff]  ;;  %v5724_v56 = vld [vmem:[%s5510_s24 + $0x90] sm:$0xff] }
  0x17   : > { %242 = vst.msk [vmem:[#allocation2 + $0x78] sm:$0xff] %vm225_vm0, %v5385_v0  ;;  %v445_v5 = vsel %vm442_vm1, %v443_v3, %v444_v4  ;;  %v5733_v60 = vld [vmem:[%s5510_s24 + $0x98] sm:$0xff] }
  0x18   : > { %243 = vst.msk [vmem:[#allocation2 + $0x80] sm:$0xff] %vm225_vm0, %v5385_v0  ;;  %523 = vrot.lane.b32.xlu0 %v445_v5, %s5386_s20 }
  0x19   : > { %245 = vst.msk [vmem:[#allocation2 + $0x90] sm:$0xff] %vm225_vm0, %v5385_v0 }
  0x1a   : > { %246 = vst.msk [vmem:[#allocation2 + $0x98] sm:$0xff] %vm225_vm0, %v5385_v0 }
  0x1b   : > { %248 = vst.msk [vmem:[#allocation2 + $0xa8] sm:$0xff] %vm225_vm0, %v5385_v0 }
  0x1c   : > { %249 = vst.msk [vmem:[#allocation2 + $0xb0] sm:$0xff] %vm225_vm0, %v5385_v0 }
  0x1d   : > { %251 = vst.msk [vmem:[#allocation2 + $0xc0] sm:$0xff] %vm225_vm0, %v5385_v0 }
  0x1e   : > { %252 = vst.msk [vmem:[#allocation2 + $0xc8] sm:$0xff] %vm225_vm0, %v5385_v0 }
  0x1f   : > { %254 = vst.msk [vmem:[#allocation2 + $0xd8] sm:$0xff] %vm225_vm0, %v5385_v0 }
  0x20   : > { %255 = vst.msk [vmem:[#allocation2 + $0xe0] sm:$0xff] %vm225_vm0, %v5385_v0 }
  0x21   : > { %257 = vst.msk [vmem:[#allocation2 + $0xf0] sm:$0xff] %vm225_vm0, %v5385_v0 }
  0x22   : > { %258 = vst.msk [vmem:[#allocation2 + $0xf8] sm:$0xff] %vm225_vm0, %v5385_v0 }
  0x23   : > { %260 = vst.msk [vmem:[#allocation2 + $0x108] sm:$0xff] %vm225_vm0, %v5385_v0 }
  0x24   : > { %261 = vst.msk [vmem:[#allocation2 + $0x110] sm:$0xff] %vm225_vm0, %v5385_v0 }
  0x25   : > { %263 = vst.msk [vmem:[#allocation2 + $0x120] sm:$0xff] %vm225_vm0, %v5385_v0 }
  0x26   : > { %264 = vst.msk [vmem:[#allocation2 + $0x128] sm:$0xff] %vm225_vm0, %v5385_v0 }
  0x27   : > { %266 = vst.msk [vmem:[#allocation2 + $0x138] sm:$0xff] %vm225_vm0, %v5385_v0 }
  0x28   : > { %267 = vst.msk [vmem:[#allocation2 + $0x140] sm:$0xff] %vm225_vm0, %v5385_v0 }
  0x29   : > { %269 = vst.msk [vmem:[#allocation2 + $0x150] sm:$0xff] %vm225_vm0, %v5385_v0 }
  0x2a   : > { %270 = vst.msk [vmem:[#allocation2 + $0x158] sm:$0xff] %vm225_vm0, %v5385_v0 }
  0x2b   : > { %272 = vst.msk [vmem:[#allocation2 + $0x168] sm:$0xff] %vm225_vm0, %v5385_v0 }
  0x2c   : > { %273 = vst.msk [vmem:[#allocation2 + $0x170] sm:$0xff] %vm225_vm0, %v5385_v0 }
  0x2d   : > { %275 = vst.msk [vmem:[#allocation2 + $0x180] sm:$0xff] %vm225_vm0, %v5385_v0 }
  0x2e   : > { %276 = vst.msk [vmem:[#allocation2 + $0x188] sm:$0xff] %vm225_vm0, %v5385_v0 }
  0x2f   : > { %278 = vst.msk [vmem:[#allocation2 + $0x198] sm:$0xff] %vm225_vm0, %v5385_v0 }
  0x30   : > { %9459 = vst [vmem:[#allocation4_spill] sm:$0xff] %v5519_v6 }
  0x31   : > { %279 = vst.msk [vmem:[#allocation2 + $0x1a0] sm:$0xff] %vm225_vm0, %v5385_v0 }
  0x32   : > { %9460 = vst [vmem:[#allocation5_spill] sm:$0xff] %v5524_v7 }
  0x33   : > { %235 = vst.msk [vmem:[#allocation2 + $0x40] sm:$0x3] %vm228_vm2, %v5385_v0 }
  0x34   : > { %316 = vst.msk [vmem:[#allocation2 + $0x31] sm:$0xff] %vm225_vm0, %v5519_v6 }
  0x35   : > { %317 = vst.msk [vmem:[#allocation2 + $0x39] sm:$0xff] %vm225_vm0, %v5524_v7 }
  0x36   : > { %229 = vst.msk [vmem:[#allocation2 + $0x10] sm:$0x3] %vm228_vm2, %v5385_v0 }
  0x37   : > { %232 = vst.msk [vmem:[#allocation2 + $0x28] sm:$0x3] %vm228_vm2, %v5385_v0 }
  0x38   : > { %238 = vst.msk [vmem:[#allocation2 + $0x58] sm:$0x3] %vm228_vm2, %v5385_v0 }
  0x39   : > { %241 = vst.msk [vmem:[#allocation2 + $0x70] sm:$0x3] %vm228_vm2, %v5385_v0 }
  0x3a   : > { %244 = vst.msk [vmem:[#allocation2 + $0x88] sm:$0x3] %vm228_vm2, %v5385_v0 }
  0x3b   : > { %v5542_v8 = vld [vmem:[#allocation2 + $0x30] sm:$0xff]  ;;  %247 = vst.msk [vmem:[#allocation2 + $0xa0] sm:$0x3] %vm228_vm2, %v5385_v0 }
  0x3c   : > { %v5546_v9 = vld [vmem:[#allocation2 + $0x38] sm:$0xff]  ;;  %v453_v10 = vrot.slane %v5542_v8, 1  ;;  %250 = vst.msk [vmem:[#allocation2 + $0xb8] sm:$0x3] %vm228_vm2, %v5385_v0  ;;  %v5561_v14 = vld [vmem:[#allocation2 + $0x40] sm:$0x3] }
  0x3d   : > { %v5552_v11 = vrot.slane %v5546_v9, 1  ;;  %253 = vst.msk [vmem:[#allocation2 + $0xd0] sm:$0x3] %vm228_vm2, %v5385_v0  ;;  %v5556_v12 = vld [vmem:[#allocation2 + $0x10] sm:$0x3]  ;;  %v456_v17 = vrot.slane %v5561_v14, 1 }
  0x3e   : > { %256 = vst.msk [vmem:[#allocation2 + $0xe8] sm:$0x3] %vm228_vm2, %v5385_v0  ;;  %v446_v13 = vrot.slane %v5556_v12, 1 }
  0x3f   : > { %9461 = vst [vmem:[#allocation6_spill] sm:$0xff] %v5552_v11  ;;  %v5565_v15 = vsel %vm442_vm1, %v453_v10, %v5552_v11  ;;  %v457_v20 = vsel %vm442_vm1, %v5552_v11, %v456_v17  ;;  %v5762_v17 = vld [vmem:[%s5510_s24 + $0xa0] sm:$0xff] }
  0x40   : > { %259 = vst.msk [vmem:[#allocation2 + $0x100] sm:$0x3] %vm228_vm2, %v5385_v0  ;;  %531 = vrot.lane.b32.xlu2 %v5565_v15, %s5386_s20  ;;  %v447_v16 = vsel %vm442_vm1, %v444_v4, %v446_v13 }
  0x41   : > { %262 = vst.msk [vmem:[#allocation2 + $0x118] sm:$0x3] %vm228_vm2, %v5385_v0  ;;  %525 = vrot.lane.b32.xlu0 %v447_v16, %s5386_s20 }
  0x42   : > { %265 = vst.msk [vmem:[#allocation2 + $0x130] sm:$0x3] %vm228_vm2, %v5385_v0 }
  0x43   : > { %268 = vst.msk [vmem:[#allocation2 + $0x148] sm:$0x3] %vm228_vm2, %v5385_v0 }
  0x44   : > { %271 = vst.msk [vmem:[#allocation2 + $0x160] sm:$0x3] %vm228_vm2, %v5385_v0 }
  0x45   : > { %274 = vst.msk [vmem:[#allocation2 + $0x178] sm:$0x3] %vm228_vm2, %v5385_v0 }
  0x46   : > { %9462 = vst [vmem:[#allocation7_spill] sm:$0xff] %v5585_v18 }
  0x47   : > { %277 = vst.msk [vmem:[#allocation2 + $0x190] sm:$0x3] %vm228_vm2, %v5385_v0 }
  0x48   : > { %9463 = vst [vmem:[#allocation8_spill] sm:$0xff] %v5590_v19  ;;  %533 = vrot.lane.b32.xlu2 %v457_v20, %s5386_s20  ;;  %v5765_v20 = vld [vmem:[%s5510_s24 + $0xa8] sm:$0xff] }
  0x49   : > { %280 = vst.msk [vmem:[#allocation2 + $0x1a8] sm:$0x3] %vm228_vm2, %v5385_v0 }
  0x4a   : > { %9464 = vst [vmem:[#allocation9_spill] sm:$0xff] %v5597_v21 }
  0x4b   : > { %314 = vst.msk [vmem:[#allocation2 + $0x19] sm:$0xff] %vm225_vm0, %v5585_v18 }
  0x4c   : > { %9465 = vst [vmem:[#allocation10_spill] sm:$0xff] %v5602_v22 }
  0x4d   : > { %315 = vst.msk [vmem:[#allocation2 + $0x21] sm:$0xff] %vm225_vm0, %v5590_v19 }
  0x4e   : > { %9466 = vst [vmem:[#allocation11_spill] sm:$0xff] %v5608_v23 }
  0x4f   : > { %318 = vst.msk [vmem:[#allocation2 + $0x49] sm:$0xff] %vm225_vm0, %v5597_v21 }
  0x50   : > { %9467 = vst [vmem:[#allocation12_spill] sm:$0xff] %v5613_v24 }
  0x51   : > { %319 = vst.msk [vmem:[#allocation2 + $0x51] sm:$0xff] %vm225_vm0, %v5602_v22 }
  0x52   : > { %9468 = vst [vmem:[#allocation13_spill] sm:$0xff] %v5618_v25  ;;  %v5635_v29 = vld [vmem:[#allocation2 + $0x18] sm:$0xff] }
  0x53   : > { %320 = vst.msk [vmem:[#allocation2 + $0x61] sm:$0xff] %vm225_vm0, %v5608_v23  ;;  %v448_v32 = vrot.slane %v5635_v29, 1 }
  0x54   : > { %9469 = vst [vmem:[#allocation14_spill] sm:$0xff] %v5623_v26  ;;  %v5642_v31 = vld [vmem:[#allocation2 + $0x20] sm:$0xff]  ;;  %v5660_v37 = vld [vmem:[#allocation2 + $0x28] sm:$0x3] }
  0x55   : > { %321 = vst.msk [vmem:[#allocation2 + $0x69] sm:$0xff] %vm225_vm0, %v5613_v24  ;;  %v5651_v34 = vrot.slane %v5642_v31, 1  ;;  %v451_v49 = vrot.slane %v5660_v37, 1 }
  0x56   : > { %9470 = vst [vmem:[#allocation15_spill] sm:$0xff] %v5628_v27  ;;  %v5653_v35 = vld [vmem:[#allocation2 + $0x48] sm:$0xff] }
  0x57   : > { %322 = vst.msk [vmem:[#allocation2 + $0x79] sm:$0xff] %vm225_vm0, %v5618_v25  ;;  %v458_v39 = vrot.slane %v5653_v35, 1  ;;  %v5672_v41 = vsel %vm442_vm1, %v448_v32, %v5651_v34  ;;  %v452_v57 = vsel %vm442_vm1, %v5651_v34, %v451_v49  ;;  %v5873_v25 = vld [vmem:[%s5510_s24 + $0xe8] sm:$0xff] }
  0x58   : > { %9471 = vst [vmem:[#allocation16_spill] sm:$0xff] %v5633_v28  ;;  %v5662_v38 = vld [vmem:[#allocation2 + $0x50] sm:$0xff]  ;;  %527 = vrot.lane.b32.xlu1 %v5672_v41, %s5386_s20  ;;  %v5737_v61 = vld [vmem:[#allocation2 + $0x58] sm:$0x3] }
  0x59   : > { %323 = vst.msk [vmem:[#allocation2 + $0x81] sm:$0xff] %vm225_vm0, %v5623_v26  ;;  %v5675_v42 = vrot.slane %v5662_v38, 1  ;;  %v461_v3 = vrot.slane %v5737_v61, 1 }
  0x5a   : > { %9472 = vst [vmem:[#allocation17_spill] sm:$0xff] %v5640_v30  ;;  %v5677_v43 = vld [vmem:[#allocation2 + $0x60] sm:$0xff] }
  0x5b   : > { %324 = vst.msk [vmem:[#allocation2 + $0x91] sm:$0xff] %vm225_vm0, %v5628_v27  ;;  %v463_v46 = vrot.slane %v5677_v43, 1  ;;  %v5699_v50 = vsel %vm442_vm1, %v458_v39, %v5675_v42  ;;  %v462_v32 = vsel %vm442_vm1, %v5675_v42, %v461_v3 }
  0x5c   : > { %9473 = vst [vmem:[#allocation18_spill] sm:$0xff] %v5648_v33  ;;  %v5686_v45 = vld [vmem:[#allocation2 + $0x68] sm:$0xff]  ;;  %v5689_v47 = vld [vmem:[#allocation2 + $0x70] sm:$0x3]  ;;  %535 = vrot.lane.b32.xlu0 %v5699_v50, %s5386_s20 }
  0x5d   : > { %325 = vst.msk [vmem:[#allocation2 + $0x99] sm:$0xff] %vm225_vm0, %v5633_v28  ;;  %v5702_v51 = vrot.slane %v5686_v45, 1  ;;  %v466_v55 = vrot.slane %v5689_v47, 1  ;;  %v5855_v28 = vld [vmem:[%s5510_s24 + $0xd8] sm:$0xff] }
  0x5e   : > { %9474 = vst [vmem:[#allocation19_spill] sm:$0xff] %v5658_v36  ;;  %v5775_v49 = vld [vmem:[#allocation2 + $0x78] sm:$0xff] }
  0x5f   : > { %9475 = vst [vmem:[#allocation20_spill] sm:$0xff] %v5662_v38  ;;  %v5716_v54 = vsel %vm442_vm1, %v463_v46, %v5702_v51  ;;  %v467_v62 = vsel %vm442_vm1, %v5702_v51, %v466_v55  ;;  %v5780_v55 = vld [vmem:[%s5510_s24 + $0xb0] sm:$0xff]  ;;  %v468_v3 = vrot.slane %v5775_v49, 1 }
  0x60   : > { %326 = vst.msk [vmem:[#allocation2 + $0xa9] sm:$0xff] %vm225_vm0, %v5640_v30  ;;  %v5708_v52 = vld [vmem:[#allocation2 + $0x80] sm:$0xff]  ;;  %v5710_v53 = vld [vmem:[#allocation2 + $0x88] sm:$0x3]  ;;  %539 = vrot.lane.b32.xlu2 %v5716_v54, %s5386_s20  ;;  %529 = vrot.lane.b32.xlu1 %v452_v57, %s5386_s20  ;;  %v5783_v57 = vld [vmem:[%s5510_s24 + $0xb8] sm:$0xff] }
  0x61   : > { %9476 = vst [vmem:[#allocation21_spill] sm:$0xff] %v5668_v40  ;;  %v5729_v58 = vrot.slane %v5708_v52, 1  ;;  %v471_v59 = vrot.slane %v5710_v53, 1  ;;  %v5852_v30 = vld [vmem:[%s5510_s24 + $0xd0] sm:$0xff] }
  0x62   : > { %327 = vst.msk [vmem:[#allocation2 + $0xb1] sm:$0xff] %vm225_vm0, %v5648_v33  ;;  %v5744_v63 = vld [vmem:[#allocation2 + $0x90] sm:$0xff] }
  0x63   : > { %9477 = vst [vmem:[#allocation22_spill] sm:$0xff] %v5682_v44  ;;  %v472_v4 = vsel %vm442_vm1, %v5729_v58, %v471_v59  ;;  %v473_v13 = vrot.slane %v5744_v63, 1 }
  0x64   : > { %9478 = vst [vmem:[#allocation23_spill] sm:$0xff] %v5686_v45  ;;  %v5746_v0 = vld [vmem:[#allocation2 + $0x98] sm:$0xff]  ;;  %541 = vrot.lane.b32.xlu0 %v467_v62, %s5386_s20 }
  0x65   : > { %328 = vst.msk [vmem:[#allocation2 + $0xc1] sm:$0xff] %vm225_vm0, %v5658_v36  ;;  %v5758_v16 = vrot.slane %v5746_v0, 1 }
  0x66   : > { %9479 = vst [vmem:[#allocation24_spill] sm:$0xff] %v5694_v48 }
  0x67   : > { %329 = vst.msk [vmem:[#allocation2 + $0xc9] sm:$0xff] %vm225_vm0, %v5668_v40  ;;  %v5752_v5 = vld [vmem:[#allocation2 + $0xa8] sm:$0xff]  ;;  %v5787_v59 = vsel %vm442_vm1, %v473_v13, %v5758_v16 }
  0x68   : > { %9480 = vst [vmem:[#allocation25_spill] sm:$0xff] %v5708_v52  ;;  %545 = vrot.lane.b32.xlu2 %v472_v4, %s5386_s20  ;;  %v478_v39 = vrot.slane %v5752_v5, 1  ;;  %537 = vrot.lane.b32.xlu1 %v462_v32, %s5386_s20 }
  0x69   : > { %330 = vst.msk [vmem:[#allocation2 + $0xd9] sm:$0xff] %vm225_vm0, %v5682_v44  ;;  %v5754_v10 = vld [vmem:[#allocation2 + $0xb0] sm:$0xff]  ;;  %v5792_v62 = vld [vmem:[#allocation2 + $0xb8] sm:$0x3] }
  0x6a   : > { %9481 = vst [vmem:[#allocation26_spill] sm:$0xff] %v5716_v54  ;;  %v5771_v46 = vrot.slane %v5754_v10, 1  ;;  %v481_v32 = vrot.slane %v5792_v62, 1 }
  0x6b   : > { %331 = vst.msk [vmem:[#allocation2 + $0xe1] sm:$0xff] %vm225_vm0, %v5694_v48 }
  0x6c   : > { %9482 = vst [vmem:[#allocation27_spill] sm:$0xff] %v5724_v56  ;;  %v5799_v4 = vsel %vm442_vm1, %v478_v39, %v5771_v46  ;;  %547 = vrot.lane.b32.xlu0 %v5787_v59, %s5386_s20  ;;  %v5818_v39 = vsel %vm442_vm1, %v468_v3, %v5729_v58  ;;  %v482_v48 = vsel %vm442_vm1, %v5771_v46, %v481_v32  ;;  %v5865_v26 = vld [vmem:[#allocation2 + $0xc0] sm:$0xff] }
  0x6d   : > { %9483 = vst [vmem:[#allocation28_spill] sm:$0xff] %v5729_v58 }
  0x6e   : > { %9484 = vst [vmem:[#allocation29_spill] sm:$0xff] %v5733_v60  ;;  %v5803_v13 = vld [vmem:[#allocation2 + $0xc8] sm:$0xff] }
  0x6f   : > { %332 = vst.msk [vmem:[#allocation2 + $0xf1] sm:$0xff] %vm225_vm0, %v5724_v56  ;;  %v5826_v56 = vld [vmem:[#allocation2 + $0xa0] sm:$0x3] }
  0x70   : > { %333 = vst.msk [vmem:[#allocation2 + $0xf9] sm:$0xff] %vm225_vm0, %v5733_v60  ;;  %551 = vrot.lane.b32.xlu2 %v5799_v4, %s5386_s20  ;;  %543 = vrot.lane.b32.xlu1 %v5818_v39, %s5386_s20  ;;  %v5834_v3 = vld [vmem:[#allocation2 + $0xd8] sm:$0xff]  ;;  %v476_v40 = vrot.slane %v5826_v56, 1 }
  0x71   : > { %9485 = vst [vmem:[#allocation30_spill] sm:$0xff] %v5744_v63  ;;  %v488_v32 = vrot.slane %v5834_v3, 1 }
  0x72   : > { %9486 = vst [vmem:[#allocation31_spill] sm:$0xff] %v5746_v0  ;;  %v5836_v44 = vld [vmem:[#allocation2 + $0xe0] sm:$0xff]  ;;  %v5908_v22 = vld [vmem:[#allocation2 + $0xe8] sm:$0x3] }
  0x73   : > { %9487 = vst [vmem:[#allocation32_spill] sm:$0xff] %v5758_v16  ;;  %v5848_v33 = vrot.slane %v5836_v44, 1 }
  0x74   : > { %9488 = vst [vmem:[#allocation33_spill] sm:$0xff] %v5762_v17  ;;  %553 = vrot.lane.b32.xlu0 %v482_v48, %s5386_s20 }
  0x75   : > { %9489 = vst [vmem:[#allocation34_spill] sm:$0xff] %v5765_v20 }
  0x76   : > { %9490 = vst [vmem:[#allocation35_spill] sm:$0xff] %v5771_v46 }
  0x77   : > { %334 = vst.msk [vmem:[#allocation2 + $0x109] sm:$0xff] %vm225_vm0, %v5762_v17  ;;  %v5821_v17 = vrot.slane %v5803_v13, 1  ;;  %v5844_v36 = vld [vmem:[#allocation2 + $0xf8] sm:$0xff]  ;;  %v5882_v24 = vld [vmem:[#allocation2 + $0x100] sm:$0x3] }
  0x78   : > { %335 = vst.msk [vmem:[#allocation2 + $0x111] sm:$0xff] %vm225_vm0, %v5765_v20  ;;  %v5805_v20 = vld [vmem:[#allocation2 + $0xd0] sm:$0x3]  ;;  %v5861_v27 = vrot.slane %v5844_v36, 1 }
  0x79   : > { %9491 = vst [vmem:[#allocation36_spill] sm:$0xff] %v5780_v55  ;;  %v486_v60 = vrot.slane %v5805_v20, 1 }
  0x7a   : > { %9492 = vst [vmem:[#allocation37_spill] sm:$0xff] %v5783_v57 }
  0x7b   : > { %9493 = vst [vmem:[#allocation38_spill] sm:$0xff] %v5787_v59 }
  0x7c   : > { %336 = vst.msk [vmem:[#allocation2 + $0x121] sm:$0xff] %vm225_vm0, %v5780_v55  ;;  %v5811_v55 = vld [vmem:[%s5510_s24 + $0xc0] sm:$0xff] }
  0x7d   : > { %337 = vst.msk [vmem:[#allocation2 + $0x129] sm:$0xff] %vm225_vm0, %v5783_v57  ;;  %v5814_v57 = vld [vmem:[%s5510_s24 + $0xc8] sm:$0xff] }
  0x7e   : > { %9494 = vst [vmem:[#allocation39_spill] sm:$0xff] %v5799_v4 }
  0x7f   : > { %9495 = vst [vmem:[#allocation40_spill] sm:$0xff] %v5811_v55  ;;  %v5895_v23 = vld [vmem:[#allocation2 + $0x118] sm:$0x3] }
  0x80   : > { %9496 = vst [vmem:[#allocation41_spill] sm:$0xff] %v5814_v57 }
  0x81   : > { %9497 = vst [vmem:[#allocation42_spill] sm:$0xff] %v5818_v39 }
  0x82   : > { %9498 = vst [vmem:[#allocation43_spill] sm:$0xff] %v5821_v17 }
  0x83   : > { %338 = vst.msk [vmem:[#allocation2 + $0x139] sm:$0xff] %vm225_vm0, %v5811_v55  ;;  %v487_v55 = vsel %vm442_vm1, %v5821_v17, %v486_v60  ;;  %v477_v60 = vsel %vm442_vm1, %v5758_v16, %v476_v40  ;;  %v5877_v40 = vsel %vm442_vm1, %v488_v32, %v5848_v33  ;;  %v5893_v32 = vld [vmem:[#allocation2 + $0x110] sm:$0xff]  ;;  %v5914_v7 = vld [vmem:[#allocation2 + $0x120] sm:$0xff] }
  0x84   : > { %339 = vst.msk [vmem:[#allocation2 + $0x141] sm:$0xff] %vm225_vm0, %v5814_v57  ;;  %v5842_v57 = vld [vmem:[#allocation2 + $0xf0] sm:$0xff]  ;;  %557 = vrot.lane.b32.xlu2 %v487_v55, %s5386_s20  ;;  %v5870_v55 = vld [vmem:[%s5510_s24 + $0xe0] sm:$0xff]  ;;  %549 = vrot.lane.b32.xlu1 %v477_v60, %s5386_s20  ;;  %v496_v60 = vrot.slane %v5882_v24, 1  ;;  %v5916_v6 = vld [vmem:[#allocation2 + $0x128] sm:$0xff] }
  0x85   : > { %9499 = vst [vmem:[#allocation44_spill] sm:$0xff] %v5844_v36  ;;  %v493_v48 = vrot.slane %v5842_v57, 1  ;;  %559 = vrot.lane.b32.xlu0 %v5877_v40, %s5386_s20  ;;  %v5968_v54 = vld [vmem:[#allocation2 + $0x130] sm:$0x3] }
  0x86   : > { %9500 = vst [vmem:[#allocation45_spill] sm:$0xff] %v5848_v33  ;;  %v497_v21 = vsel %vm442_vm1, %v5861_v27, %v496_v60  ;;  %v503_v60 = vrot.slane %v5914_v7, 1 }
  0x87   : > { %9501 = vst [vmem:[#allocation46_spill] sm:$0xff] %v5852_v30 }
  0x88   : > { %9502 = vst [vmem:[#allocation47_spill] sm:$0xff] %v5855_v28 }
  0x89   : > { %9503 = vst [vmem:[#allocation48_spill] sm:$0xff] %v5861_v27 }
  0x8a   : > { %340 = vst.msk [vmem:[#allocation2 + $0x151] sm:$0xff] %vm225_vm0, %v5852_v30  ;;  %v5889_v30 = vsel %vm442_vm1, %v493_v48, %v5861_v27  ;;  %v501_v48 = vrot.slane %v5895_v23, 1  ;;  %v5922_v18 = vld [vmem:[#allocation2 + $0x138] sm:$0xff] }
  0x8b   : > { %341 = vst.msk [vmem:[#allocation2 + $0x159] sm:$0xff] %vm225_vm0, %v5855_v28  ;;  %v483_v28 = vrot.slane %v5865_v26, 1  ;;  %v508_v4 = vrot.slane %v5922_v18, 1 }
  0x8c   : > { %9504 = vst [vmem:[#allocation49_spill] sm:$0xff] %v5870_v55  ;;  %563 = vrot.lane.b32.xlu2 %v5889_v30, %s5386_s20 }
  0x8d   : > { %9505 = vst [vmem:[#allocation50_spill] sm:$0xff] %v5873_v25  ;;  %565 = vrot.lane.b32.xlu0 %v497_v21, %s5386_s20  ;;  %v5937_v21 = vld [vmem:[#allocation2 + $0x108] sm:$0xff] }
  0x8e   : > { %9506 = vst [vmem:[#allocation51_spill] sm:$0xff] %v5877_v40 }
  0x8f   : > { %342 = vst.msk [vmem:[#allocation2 + $0x169] sm:$0xff] %vm225_vm0, %v5870_v55  ;;  %v5905_v55 = vrot.slane %v5893_v32, 1 }
  0x90   : > { %343 = vst.msk [vmem:[#allocation2 + $0x171] sm:$0xff] %vm225_vm0, %v5873_v25  ;;  %v5902_v25 = vsel %vm442_vm1, %v483_v28, %v5821_v17  ;;  %v491_v28 = vrot.slane %v5908_v22, 1  ;;  %v5928_v17 = vrot.slane %v5916_v6, 1 }
  0x91   : > { %9507 = vst [vmem:[#allocation52_spill] sm:$0xff] %v5889_v30  ;;  %555 = vrot.lane.b32.xlu1 %v5902_v25, %s5386_s20  ;;  %v502_v19 = vsel %vm442_vm1, %v5905_v55, %v501_v48  ;;  %v5924_v30 = vld [vmem:[#allocation2 + $0x140] sm:$0xff]  ;;  %v5991_v11 = vld [vmem:[#allocation2 + $0x150] sm:$0xff] }
  0x92   : > { %9508 = vst [vmem:[#allocation53_spill] sm:$0xff] %v5893_v32  ;;  %v492_v27 = vsel %vm442_vm1, %v5848_v33, %v491_v28  ;;  %v5935_v48 = vrot.slane %v5924_v30, 1  ;;  %v5941_v40 = vsel %vm442_vm1, %v503_v60, %v5928_v17  ;;  %v5953_v33 = vld [vmem:[#allocation2 + $0x158] sm:$0xff]  ;;  %v5955_v58 = vld [vmem:[#allocation2 + $0x160] sm:$0x3] }
  0x93   : > { %9509 = vst [vmem:[#allocation54_spill] sm:$0xff] %v5902_v25  ;;  %v5944_v25 = vld [vmem:[#allocation2 + $0x148] sm:$0x3]  ;;  %v5965_v46 = vrot.slane %v5953_v33, 1 }
  0x94   : > { %9510 = vst [vmem:[#allocation55_spill] sm:$0xff] %v5905_v55  ;;  %569 = vrot.lane.b32.xlu2 %v502_v19, %s5386_s20  ;;  %v498_v19 = vrot.slane %v5937_v21, 1  ;;  %v5949_v28 = vsel %vm442_vm1, %v508_v4, %v5935_v48  ;;  %v511_v60 = vrot.slane %v5944_v25, 1  ;;  %v516_v4 = vrot.slane %v5955_v58, 1 }
  0x95   : > { %9511 = vst [vmem:[#allocation56_spill] sm:$0xff] %v5914_v7  ;;  %571 = vrot.lane.b32.xlu0 %v5941_v40, %s5386_s20 }
  0x96   : > { %9512 = vst [vmem:[#allocation57_spill] sm:$0xff] %v5916_v6  ;;  %v5974_v16 = vld [vmem:[#allocation2 + $0x168] sm:$0xff] }
  0x97   : > { %9513 = vst [vmem:[#allocation58_spill] sm:$0xff] %v5922_v18  ;;  %v518_v59 = vrot.slane %v5974_v16, 1 }
  0x98   : > { %9514 = vst [vmem:[#allocation59_spill] sm:$0xff] %v5924_v30 }
  0x99   : > { %9515 = vst [vmem:[#allocation60_spill] sm:$0xff] %v5928_v17  ;;  %561 = vrot.lane.b32.xlu1 %v492_v27, %s5386_s20  ;;  %v5962_v27 = vsel %vm442_vm1, %v498_v19, %v5905_v55  ;;  %v506_v19 = vrot.slane %v5968_v54, 1  ;;  %v517_v55 = vsel %vm442_vm1, %v5965_v46, %v516_v4  ;;  %v513_v4 = vrot.slane %v5991_v11, 1 }
  0x9a   : > { %9516 = vst [vmem:[#allocation61_spill] sm:$0xff] %v5935_v48 }
  0x9b   : > { %9517 = vst [vmem:[#allocation62_spill] sm:$0xff] %v5937_v21 }
  0x9c   : > { %9518 = vst [vmem:[#allocation63_spill] sm:$0xff] %v5941_v40  ;;  %575 = vrot.lane.b32.xlu2 %v5949_v28, %s5386_s20  ;;  %v512_v40 = vsel %vm442_vm1, %v5935_v48, %v511_v60  ;;  %v507_v60 = vsel %vm442_vm1, %v5928_v17, %v506_v19  ;;  %v620_v48 = vrot.slane %v5440_v1, 2  ;;  %v623_v19 = vrot.slane %v5556_v12, 2 }
  0x9d   : > { %9519 = vst [vmem:[#allocation64_spill] sm:$0xff] %v5949_v28  ;;  %v5976_v28 = vld [vmem:[#allocation2 + $0x170] sm:$0xff]  ;;  %577 = vrot.lane.b32.xlu0 %v512_v40, %s5386_s20  ;;  %v6006_v17 = vsel %vm442_vm1, %v513_v4, %v5965_v46  ;;  %v6021_v4 = vpop.permute.xlu2 %531 }
  0x9e   : > { %9520 = vst [vmem:[#allocation65_spill] sm:$0xff] %v5962_v27  ;;  %v5984_v39 = vrot.slane %v5976_v28, 1 }
  0x9f   : > { %9521 = vst [vmem:[#allocation66_spill] sm:$0xff] %v5965_v46  ;;  %v630_v46 = vrot.slane %v5542_v8, 2 }
  0xa0   : > { %9522 = vst [vmem:[#allocation67_spill] sm:$0xff] %v5991_v11  ;;  %v5995_v40 = vsel %vm442_vm1, %v518_v59, %v5984_v39  ;;  %v6009_v59 = vrot.slane %v5642_v31, 2 }
  0xa1   : > { %567 = vrot.lane.b32.xlu1 %v5962_v27, %s5386_s20  ;;  %v621_v27 = vrot.slane %v5444_v2, 2  ;;  %9523 = vst [vmem:[#allocation68_spill] sm:$0xff] %v5995_v40  ;;  %v6012_v2 = vld [vmem:[#allocation2 + $0x178] sm:$0x3] }
  0xa2   : > { %9524 = vst [vmem:[#allocation69_spill] sm:$0xff] %v6006_v17  ;;  %v521_v12 = vrot.slane %v6012_v2, 1 }
  0xa3   : > { %9525 = vst [vmem:[#allocation70_spill] sm:$0xff] %v6009_v59 }
  0xa4   : > { %581 = vrot.lane.b32.xlu2 %v517_v55, %s5386_s20  ;;  %v622_v55 = vsel %vm619_vm3, %v620_v48, %v621_v27  ;;  %v624_v48 = vsel %vm619_vm3, %v621_v27, %v623_v19  ;;  %v522_v27 = vsel %vm442_vm1, %v5984_v39, %v521_v12  ;;  %v635_v19 = vrot.slane %v5653_v35, 2 }
  0xa5   : > { %583 = vrot.lane.b32.xlu0 %v5995_v40, %s5386_s20  ;;  %v6032_v40 = vrot.slane %v5662_v38, 2  ;;  %v638_v12 = vrot.slane %v5737_v61, 2  ;;  %v633_v61 = vrot.slane %v5561_v14, 2 }
  0xa7   : > { %v639_v38 = vsel %vm619_vm3, %v6032_v40, %v638_v12  ;;  %v650_v12 = vrot.slane %v5744_v63, 2  ;;  %v658_v63 = vrot.slane %v5792_v62, 2  ;;  %v6119_v62 = vrot.slane %v5803_v13, 2 }
  0xa9   : > { %573 = vrot.lane.b32.xlu1 %v507_v60, %s5386_s20  ;;  %v628_v60 = vrot.slane %v5660_v37, 2  ;;  %v6025_v37 = vrot.slane %v5546_v9, 2 }
  0xac   : > { %700 = vrot.lane.b32.xlu2 %v622_v55, %s5387_s25  ;;  %v629_v55 = vsel %vm619_vm3, %v6009_v59, %v628_v60  ;;  %v6036_v60 = vsel %vm619_vm3, %v630_v46, %v6025_v37 }
  0xad   : > { %702 = vrot.lane.b32.xlu0 %v624_v48, %s5387_s25  ;;  %v625_v48 = vrot.slane %v5635_v29, 2 }
  0xaf   : > { %v6053_v46 = vsel %vm619_vm3, %v625_v48, %v6009_v59  ;;  %v645_v48 = vrot.slane %v5775_v49, 2  ;;  %v6076_v59 = vrot.slane %v5746_v0, 2  ;;  %v653_v0 = vrot.slane %v5826_v56, 2 }
  0xb0   : > { %v648_v56 = vrot.slane %v5710_v53, 2  ;;  %v6126_v53 = vrot.slane %v5836_v44, 2 }
  0xb1   : > { %579 = vrot.lane.b32.xlu1 %v6006_v17, %s5386_s20  ;;  %v6042_v17 = vsel %vm619_vm3, %v635_v19, %v6032_v40  ;;  %v643_v19 = vrot.slane %v5689_v47, 2  ;;  %v634_v47 = vsel %vm619_vm3, %v6025_v37, %v633_v61  ;;  %9528 = vst [vmem:[#allocation73_spill] sm:$0xff] %v6076_v59  ;;  %v6090_v61 = vsel %vm619_vm3, %v650_v12, %v6076_v59 }
  0xb2   : > { %9526 = vst [vmem:[#allocation71_spill] sm:$0xff] %v6042_v17  ;;  %v654_v12 = vsel %vm619_vm3, %v6076_v59, %v653_v0  ;;  %v668_v59 = vrot.slane %v5908_v22, 2  ;;  %v663_v22 = vrot.slane %v5805_v20, 2  ;;  %v680_v20 = vrot.slane %v5914_v7, 2 }
  0xb3   : > { %9529 = vst [vmem:[#allocation74_spill] sm:$0xff] %v6090_v61 }
  0xb4   : > { %706 = vrot.lane.b32.xlu2 %v629_v55, %s5387_s25  ;;  %v6049_v55 = vpop.permute.xlu2 %533  ;;  %9532 = vst [vmem:[#allocation77_spill] sm:$0xff] %v6126_v53 }
  0xb5   : > { %708 = vrot.lane.b32.xlu0 %v6036_v60, %s5387_s25 }
  0xb9   : > { %585 = vrot.lane.b32.xlu1 %v522_v27, %s5386_s20  ;;  %v6056_v27 = vrot.slane %v5686_v45, 2  ;;  %v6069_v45 = vrot.slane %v5708_v52, 2 }
  0xbb   : > { %9527 = vst [vmem:[#allocation72_spill] sm:$0xff] %v6056_v27  ;;  %v649_v0 = vsel %vm619_vm3, %v6069_v45, %v648_v56 }
  0xbc   : > { %712 = vrot.lane.b32.xlu2 %v6042_v17, %s5387_s25  ;;  %v644_v17 = vsel %vm619_vm3, %v6056_v27, %v643_v19  ;;  %v6078_v14 = vpop.permute.xlu2 %539  ;;  %v6085_v19 = vpop.permute.xlu0 %523 }
  0xbd   : > { %714 = vrot.lane.b32.xlu0 %v639_v38, %s5387_s25  ;;  %v6082_v38 = vsel %vm619_vm3, %v645_v48, %v6069_v45 }
  0xc1   : > { %704 = vrot.lane.b32.xlu1 %v6053_v46, %s5387_s25 }
  0xc4   : > { %718 = vrot.lane.b32.xlu2 %v644_v17, %s5387_s25  ;;  %v640_v17 = vrot.slane %v5677_v43, 2  ;;  %v6105_v52 = vpop.permute.xlu2 %545 }
  0xc5   : > { %720 = vrot.lane.b32.xlu0 %v6082_v38, %s5387_s25  ;;  %9531 = vst [vmem:[#allocation76_spill] sm:$0xff] %v6105_v52  ;;  %v665_v52 = vrot.slane %v5834_v3, 2 }
  0xc6   : > { %v6099_v48 = vsel %vm619_vm3, %v640_v17, %v6056_v27  ;;  %v6115_v17 = vpop.permute.xlu0 %525  ;;  %v655_v27 = vrot.slane %v5752_v5, 2  ;;  %v6154_v5 = vrot.slane %v5844_v36, 2 }
  0xc8   : > { %9536 = vst [vmem:[#allocation81_spill] sm:$0xff] %v6154_v5 }
  0xc9   : > { %710 = vrot.lane.b32.xlu1 %v634_v47, %s5387_s25  ;;  %v6102_v47 = vrot.slane %v5754_v10, 2  ;;  %v660_v10 = vrot.slane %v5865_v26, 2 }
  0xca   : > { %v6140_v56 = vpop.permute.xlu1 %527 }
  0xcb   : > { %9530 = vst [vmem:[#allocation75_spill] sm:$0xff] %v6102_v47 }
  0xcc   : > { %724 = vrot.lane.b32.xlu2 %v6090_v61, %s5387_s25  ;;  %v659_v61 = vsel %vm619_vm3, %v6102_v47, %v658_v63  ;;  %v6128_v63 = vpop.permute.xlu2 %551 }
  0xcd   : > { %726 = vrot.lane.b32.xlu0 %v654_v12, %s5387_s25  ;;  %9533 = vst [vmem:[#allocation78_spill] sm:$0xff] %v6128_v63  ;;  %v6132_v12 = vsel %vm619_vm3, %v660_v10, %v6119_v62  ;;  %v6151_v10 = vsel %vm619_vm3, %v655_v27, %v6102_v47  ;;  %v675_v47 = vrot.slane %v5937_v21, 2 }
  0xce   : > { %9534 = vst [vmem:[#allocation79_spill] sm:$0xff] %v6132_v12  ;;  %v6145_v63 = vpop.permute.xlu0 %535 }
  0xd1   : > { %716 = vrot.lane.b32.xlu1 %v6099_v48, %s5387_s25 }
  0xd2   : > { %v6166_v27 = vpop.permute.xlu1 %529 }
  0xd4   : > { %730 = vrot.lane.b32.xlu2 %v659_v61, %s5387_s25  ;;  %v6138_v61 = vsel %vm619_vm3, %v665_v52, %v6126_v53  ;;  %v673_v52 = vrot.slane %v5882_v24, 2  ;;  %v6171_v24 = vrot.slane %v5893_v32, 2  ;;  %v670_v32 = vrot.slane %v5842_v57, 2 }
  0xd5   : > { %9535 = vst [vmem:[#allocation80_spill] sm:$0xff] %v6138_v61  ;;  %732 = vrot.lane.b32.xlu0 %v6132_v12, %s5387_s25  ;;  %v669_v12 = vsel %vm619_vm3, %v6126_v53, %v668_v59  ;;  %v664_v59 = vsel %vm619_vm3, %v6119_v62, %v663_v22 }
  0xd6   : > { %9537 = vst [vmem:[#allocation82_spill] sm:$0xff] %v6171_v24  ;;  %v6173_v36 = vpop.permute.xlu0 %541 }
  0xd9   : > { %722 = vrot.lane.b32.xlu1 %v649_v0, %s5387_s25 }
  0xda   : > { %v6194_v22 = vpop.permute.xlu1 %537 }
  0xdc   : > { %736 = vrot.lane.b32.xlu2 %v6138_v61, %s5387_s25  ;;  %v674_v61 = vsel %vm619_vm3, %v6154_v5, %v673_v52  ;;  %v6180_v52 = vrot.slane %v5916_v6, 2  ;;  %v683_v6 = vrot.slane %v5968_v54, 2  ;;  %v862_v54 = vld [vmem:[%s9314_s1 + $0x8] sm:$0xf] }
  0xdd   : > { %738 = vrot.lane.b32.xlu0 %v669_v12, %s5387_s25  ;;  %v6186_v12 = vsel %vm619_vm3, %v675_v47, %v6171_v24  ;;  %v6205_v47 = vsel %vm619_vm3, %v670_v32, %v6154_v5  ;;  %v678_v32 = vrot.slane %v5895_v23, 2  ;;  %5107 = vmatpush.msk.msra.mxu1 %vm1475_vm4, %v862_v54  ;;  %v6233_v5 = vrot.slane %v5953_v33, 2 }
  0xde   : > { %v6157_v0 = vpop.permute.xlu2 %557  ;;  %9538 = vst [vmem:[#allocation83_spill] sm:$0xff] %v6180_v52  ;;  %v6199_v7 = vpop.permute.xlu0 %547  ;;  %5284 = vmatpush.msk.msra.mxu3 %vm1475_vm4, %v862_v54  ;;  %v6242_v54 = vrot.slane %v5976_v28, 2  ;;  %v698_v28 = vrot.slane %v6012_v2, 2  ;;  %v693_v2 = vrot.slane %v5955_v58, 2  ;;  %v796_v58 = vsel %vm225_vm0, %v5440_v1, %v6085_v19  ;;  %v6309_v19 = vld [vmem:[#allocation2 + $0x40] sm:$0x3] }
  0xdf   : > { %9539 = vst [vmem:[#allocation84_spill] sm:$0xff] %v6186_v12 }
  0xe0   : > { %9541 = vst [vmem:[#allocation86_spill] sm:$0xff] %v6205_v47 }
  0xe1   : > { %728 = vrot.lane.b32.xlu1 %v6151_v10, %s5387_s25  ;;  %9544 = vst [vmem:[#allocation89_spill] sm:$0xff] %v6233_v5 }
  0xe2   : > { %9546 = vst [vmem:[#allocation91_spill] sm:$0xff] %v6242_v54 }
  0xe4   : > { %742 = vrot.lane.b32.xlu2 %v674_v61, %s5387_s25  ;;  %v6192_v61 = vsel %vm619_vm3, %v680_v20, %v6180_v52  ;;  %v688_v20 = vrot.slane %v5944_v25, 2  ;;  %v6225_v25 = vpop.permute.xlu1 %543 }
  0xe5   : > { %9540 = vst [vmem:[#allocation85_spill] sm:$0xff] %v6192_v61  ;;  %744 = vrot.lane.b32.xlu0 %v6186_v12, %s5387_s25  ;;  %v684_v12 = vsel %vm619_vm3, %v6180_v52, %v683_v6  ;;  %v861_v6 = vld [vmem:[%s9314_s1] sm:$0xff] }
  0xe6   : > { %v6182_v53 = vpop.permute.xlu2 %563  ;;  %1706 = vmatpush.msra.mxu1 %v861_v6  ;;  %5285 = vmatpush.msra.mxu3 %v861_v6  ;;  %v6235_v23 = vpop.permute.xlu0 %553  ;;  %v685_v6 = vrot.slane %v5922_v18, 2  ;;  %v699_v18 = vsel %vm619_vm3, %v6242_v54, %v698_v28  ;;  %v694_v28 = vsel %vm619_vm3, %v6233_v5, %v693_v2 }
  0xe7   : > { %9545 = vst [vmem:[#allocation90_spill] sm:$0xff] %v6235_v23  ;;  %v9562_v23 = vld [vmem:[#allocation35_spill] sm:$0xff] }
  0xe9   : > { %734 = vrot.lane.b32.xlu1 %v664_v59, %s5387_s25  ;;  %v6208_v59 = vrot.slane %v5924_v30, 2 }
  0xeb   : > { %9542 = vst [vmem:[#allocation87_spill] sm:$0xff] %v6208_v59  ;;  %v689_v30 = vsel %vm619_vm3, %v6208_v59, %v688_v20  ;;  %v679_v20 = vsel %vm619_vm3, %v6171_v24, %v678_v32 }
  0xec   : > { %748 = vrot.lane.b32.xlu2 %v6192_v61, %s5387_s25  ;;  %v690_v61 = vrot.slane %v5991_v11, 2 }
  0xed   : > { %750 = vrot.lane.b32.xlu0 %v684_v12, %s5387_s25  ;;  %v695_v12 = vrot.slane %v5974_v16, 2  ;;  %v6260_v16 = vld [vmem:[#allocation2 + $0x28] sm:$0x3] }
  0xee   : > { %v6211_v21 = vpop.permute.xlu2 %569  ;;  %v6248_v33 = vsel %vm619_vm3, %v690_v61, %v6233_v5  ;;  %v6269_v61 = vsel %vm619_vm3, %v685_v6, %v6208_v59 }
  0xef   : > { %9543 = vst [vmem:[#allocation88_spill] sm:$0xff] %v6211_v21 }
  0xf0   : > { %9548 = vst [vmem:[#allocation93_spill] sm:$0xff] %v6248_v33 }
  0xf1   : > { %740 = vrot.lane.b32.xlu1 %v6205_v47, %s5387_s25  ;;  %9551 = vst [vmem:[#allocation96_spill] sm:$0xff] %v6269_v61 }
  0xf4   : > { %754 = vrot.lane.b32.xlu2 %v689_v30, %s5387_s25  ;;  %v6254_v30 = vsel %vm619_vm3, %v695_v12, %v6242_v54  ;;  %v9555_v54 = vld [vmem:[#allocation6_spill] sm:$0xff] }
  0xf5   : > { %9549 = vst [vmem:[#allocation94_spill] sm:$0xff] %v6254_v30  ;;  %756 = vrot.lane.b32.xlu0 %v6248_v33, %s5387_s25  ;;  %v9560_v33 = vld [vmem:[#allocation32_spill] sm:$0xff] }
  0xf6   : > { %v6244_v52 = vpop.permute.xlu2 %575  ;;  %v6256_v32 = vpop.permute.xlu1 %549 }
  0xf7   : > { %9547 = vst [vmem:[#allocation92_spill] sm:$0xff] %v6244_v52  ;;  %v6263_v11 = vpop.permute.xlu0 %559 }
  0xf8   : > { %9550 = vst [vmem:[#allocation95_spill] sm:$0xff] %v6256_v32 }
  0xf9   : > { %746 = vrot.lane.b32.xlu1 %v679_v20, %s5387_s25  ;;  %v962_v20 = vrot.slane %v6260_v16, 1 }
  0xfb   : > { %v963_v52 = vsel %vm442_vm1, %v5651_v34, %v962_v20 }
  0xfc   : > { %760 = vrot.lane.b32.xlu2 %v6254_v30, %s5387_s25 }
  0xfd   : > { %762 = vrot.lane.b32.xlu0 %v699_v18, %s5387_s25  ;;  %v6295_v18 = vld [vmem:[#allocation2 + $0x58] sm:$0x3] }
  0xfe   : > { %v6272_v12 = vpop.permute.xlu2 %581  ;;  %v972_v2 = vrot.slane %v6295_v18, 1 }
  0xff   : > { %9552 = vst [vmem:[#allocation97_spill] sm:$0xff] %v6272_v12  ;;  %v6284_v6 = vpop.permute.xlu0 %565 }
 0x101   : > { %752 = vrot.lane.b32.xlu1 %v6269_v61, %s5387_s25 }
 0x103   : > { %v6281_v30 = vpop.permute.xlu1 %555 }
 0x104   : > { %1041 = vrot.lane.b32.xlu2 %v963_v52, %s5386_s20  ;;  %v6301_v52 = vld [vmem:[#allocation2 + $0x70] sm:$0x3] }
 0x105   : > { %1043 = vrot.lane.b32.xlu0 %v5565_v15, %s5386_s20  ;;  %v977_v1 = vrot.slane %v6301_v52, 1  ;;  %v967_v15 = vrot.slane %v6309_v19, 1 }
 0x106   : > { %v701_v12 = vpop.permute.xlu2 %700 }
 0x107   : > { %v829_v34 = vsel %vm828_vm5, %v796_v58, %v701_v12  ;;  %v6304_v59 = vpop.permute.xlu0 %571  ;;  %v978_v58 = vsel %vm442_vm1, %v5702_v51, %v977_v1  ;;  %v968_v5 = vsel %vm442_vm1, %v9555_v54, %v967_v15  ;;  %v9557_v51 = vld [vmem:[#allocation42_spill] sm:$0xff]  ;;  %v6337_v1 = vld [vmem:[#allocation2 + $0xb8] sm:$0x3] }
 0x108   : > { %5108 = vmatmul.msk.f32.vlgmr.msra.gmra.mxu1 %vm1378_vm6, %v829_v34  ;;  %9553 = vst [vmem:[#allocation98_spill] sm:$0xff] %v6304_v59  ;;  %v992_v54 = vrot.slane %v6337_v1, 1  ;;  %v6345_v15 = vld [vmem:[#allocation2 + $0x88] sm:$0x3] }
 0x109   : > { %758 = vrot.lane.b32.xlu1 %v694_v28, %s5387_s25  ;;  %v973_v28 = vsel %vm442_vm1, %v5675_v42, %v972_v2 }
 0x10b   : > { %v6297_v20 = vpop.permute.xlu1 %561 }
 0x10c   : > { %1047 = vrot.lane.b32.xlu2 %v5699_v50, %s5386_s20 }
 0x10d   : > { %1049 = vrot.lane.b32.xlu0 %v973_v28, %s5386_s20 }
 0x10e   : > { %v6311_v12 = vpop.permute.xlu2 %706 }
 0x10f   : > { %v6323_v50 = vpop.permute.xlu0 %577 }
 0x110   : > { %9554 = vst [vmem:[#allocation99_spill] sm:$0xff] %v6323_v50 }
 0x111   : > { %1039 = vrot.lane.b32.xlu1 %v5672_v41, %s5386_s20  ;;  %v6331_v41 = vld [vmem:[#allocation2 + $0xa0] sm:$0x3] }
 0x112   : > { %v987_v28 = vrot.slane %v6331_v41, 1 }
 0x113   : > { %v6320_v34 = vpop.permute.xlu1 %567 }
 0x114   : > { %1053 = vrot.lane.b32.xlu2 %v978_v58, %s5386_s20  ;;  %v9559_v58 = vld [vmem:[#allocation38_spill] sm:$0xff]  ;;  %v988_v61 = vsel %vm442_vm1, %v9560_v33, %v987_v28  ;;  %v9565_v33 = vld [vmem:[#allocation28_spill] sm:$0xff] }
 0x115   : > { %1055 = vrot.lane.b32.xlu0 %v9557_v51, %s5386_s20  ;;  %v9561_v51 = vld [vmem:[#allocation26_spill] sm:$0xff] }
 0x116   : > { %v6328_v42 = vpop.permute.xlu2 %712 }
 0x117   : > { %v6340_v50 = vpop.permute.xlu0 %583 }
 0x118   : > { %9558 = vst [vmem:[#allocation42_spill] sm:$0xff] %v6340_v50  ;;  %v993_v50 = vsel %vm442_vm1, %v9562_v23, %v992_v54  ;;  %v6370_v23 = vld [vmem:[#allocation2 + $0xe8] sm:$0x3]  ;;  %v6376_v54 = vld [vmem:[#allocation2 + $0x100] sm:$0x3] }
 0x119   : > { %1045 = vrot.lane.b32.xlu1 %v968_v5, %s5386_s20  ;;  %9569 = vst [vmem:[#allocation35_spill] sm:$0xff] %v6376_v54 }
 0x11b   : > { %v6333_v2 = vpop.permute.xlu1 %573 }
 0x11c   : > { %9556 = vst [vmem:[#allocation6_spill] sm:$0xff] %v6333_v2  ;;  %1059 = vrot.lane.b32.xlu2 %v9559_v58, %s5386_s20  ;;  %v982_v2 = vrot.slane %v6345_v15, 1  ;;  %v9564_v58 = vld [vmem:[#allocation3_spill] sm:$0xff] }
 0x11d   : > { %1061 = vrot.lane.b32.xlu0 %v988_v61, %s5386_s20  ;;  %v797_v24 = vsel %vm225_vm0, %v9564_v58, %v6115_v17  ;;  %v9568_v17 = vld [vmem:[#allocation54_spill] sm:$0xff]  ;;  %v6382_v58 = vld [vmem:[#allocation2 + $0xd0] sm:$0x3] }
 0x11e   : > { %v6347_v5 = vpop.permute.xlu2 %718  ;;  %v983_v28 = vsel %vm442_vm1, %v9565_v33, %v982_v2 }
 0x11f   : > { %v703_v47 = vpop.permute.xlu0 %702 }
 0x121   : > { %1051 = vrot.lane.b32.xlu1 %v9561_v51, %s5386_s20  ;;  %v830_v51 = vsel %vm828_vm5, %v797_v24, %v703_v47  ;;  %v9570_v24 = vld [vmem:[#allocation51_spill] sm:$0xff]  ;;  %v1007_v47 = vrot.slane %v6376_v54, 1 }
 0x122   : > { %5109 = vmatmul.msk.f32.gmra.mxu1 %vm1378_vm6, %v830_v51 }
 0x123   : > { %v6356_v59 = vpop.permute.xlu1 %579 }
 0x124   : > { %9563 = vst [vmem:[#allocation38_spill] sm:$0xff] %v6356_v59  ;;  %1065 = vrot.lane.b32.xlu2 %v993_v50, %s5386_s20  ;;  %v1002_v50 = vrot.slane %v6370_v23, 1  ;;  %v9574_v59 = vld [vmem:[#allocation48_spill] sm:$0xff] }
 0x125   : > { %1067 = vrot.lane.b32.xlu0 %v9568_v17, %s5386_s20  ;;  %v9573_v17 = vld [vmem:[#allocation39_spill] sm:$0xff]  ;;  %v1008_v21 = vsel %vm442_vm1, %v9574_v59, %v1007_v47 }
 0x126   : > { %v6367_v32 = vpop.permute.xlu2 %724  ;;  %v9577_v59 = vld [vmem:[#allocation43_spill] sm:$0xff] }
 0x127   : > { %9566 = vst [vmem:[#allocation32_spill] sm:$0xff] %v6367_v32  ;;  %v709_v2 = vpop.permute.xlu0 %708 }
 0x129   : > { %1057 = vrot.lane.b32.xlu1 %v983_v28, %s5386_s20  ;;  %v9572_v28 = vld [vmem:[#allocation45_spill] sm:$0xff] }
 0x12a   : > { %v1003_v51 = vsel %vm442_vm1, %v9572_v28, %v1002_v50  ;;  %v6403_v28 = vld [vmem:[%s5510_s24 + $0xf0] sm:$0xff] }
 0x12b   : > { %v6372_v61 = vpop.permute.xlu1 %585  ;;  %9575 = vst [vmem:[#allocation28_spill] sm:$0xff] %v6403_v28 }
 0x12c   : > { %9567 = vst [vmem:[#allocation26_spill] sm:$0xff] %v6372_v61  ;;  %1071 = vrot.lane.b32.xlu2 %v9570_v24, %s5386_s20  ;;  %v997_v61 = vrot.slane %v6382_v58, 1  ;;  %v798_v24 = vsel %vm225_vm0, %v5635_v29, %v6140_v56  ;;  %v6417_v56 = vld [vmem:[#allocation2 + $0x130] sm:$0x3] }
 0x12d   : > { %1073 = vrot.lane.b32.xlu0 %v1003_v51, %s5386_s20  ;;  %344 = vst.msk [vmem:[#allocation2 + $0x181] sm:$0xff] %vm225_vm0, %v6403_v28 }
 0x12e   : > { %v6384_v33 = vpop.permute.xlu2 %730  ;;  %v998_v47 = vsel %vm442_vm1, %v9577_v59, %v997_v61  ;;  %9578 = vst [vmem:[#allocation51_spill] sm:$0xff] %v6417_v56  ;;  %v6424_v61 = vld [vmem:[#allocation2 + $0x148] sm:$0x3] }
 0x12f   : > { %9571 = vst [vmem:[#allocation3_spill] sm:$0xff] %v6384_v33  ;;  %v6399_v50 = vpop.permute.xlu0 %714 }
 0x130   : > { %9580 = vst [vmem:[#allocation45_spill] sm:$0xff] %v6424_v61 }
 0x131   : > { %1063 = vrot.lane.b32.xlu1 %v9573_v17, %s5386_s20  ;;  %v6406_v17 = vld [vmem:[%s5510_s24 + $0xf8] sm:$0xff] }
 0x132   : > { %9576 = vst [vmem:[#allocation54_spill] sm:$0xff] %v6406_v17 }
 0x133   : > { %v705_v54 = vpop.permute.xlu1 %704  ;;  %345 = vst.msk [vmem:[#allocation2 + $0x189] sm:$0xff] %vm225_vm0, %v6406_v17 }
 0x134   : > { %v831_v33 = vsel %vm828_vm5, %v798_v24, %v705_v54  ;;  %1077 = vrot.lane.b32.xlu2 %v1008_v21, %s5386_s20  ;;  %v799_v21 = vsel %vm225_vm0, %v5642_v31, %v6166_v27  ;;  %v1017_v24 = vrot.slane %v6417_v56, 1  ;;  %v1022_v31 = vrot.slane %v6424_v61, 1  ;;  %v6435_v27 = vld [vmem:[#allocation2 + $0x118] sm:$0x3] }
 0x135   : > { %5110 = vmatmul.msk.f32.gmra.mxu1 %vm1378_vm6, %v831_v33  ;;  %v9579_v33 = vld [vmem:[#allocation65_spill] sm:$0xff]  ;;  %v832_v51 = vsel %vm828_vm5, %v799_v21, %v6311_v12  ;;  %v9583_v12 = vld [vmem:[#allocation52_spill] sm:$0xff]  ;;  %v1012_v21 = vrot.slane %v6435_v27, 1 }
 0x136   : > { %v6412_v29 = vpop.permute.xlu2 %736  ;;  %1079 = vrot.lane.b32.xlu0 %v9579_v33, %s5386_s20  ;;  %v9582_v33 = vld [vmem:[#allocation60_spill] sm:$0xff] }
 0x137   : > { %v6430_v59 = vpop.permute.xlu0 %720  ;;  %v1018_v28 = vsel %vm442_vm1, %v9582_v33, %v1017_v24  ;;  %v9585_v33 = vld [vmem:[#allocation55_spill] sm:$0xff] }
 0x139   : > { %1069 = vrot.lane.b32.xlu1 %v998_v47, %s5386_s20  ;;  %v9581_v47 = vld [vmem:[#allocation63_spill] sm:$0xff] }
 0x13b   : > { %v711_v54 = vpop.permute.xlu1 %710 }
 0x13c   : > { %1083 = vrot.lane.b32.xlu2 %v9581_v47, %s5386_s20  ;;  %v800_v47 = vsel %vm225_vm0, %v5542_v8, %v6021_v4  ;;  %v6462_v8 = vld [vmem:[#allocation2 + $0x178] sm:$0x3]  ;;  %v801_v4 = vsel %vm225_vm0, %v5546_v9, %v6049_v55 }
 0x13d   : > { %5111 = vmatmul.msk.f32.gmra.mxu1 %vm1378_vm6, %v832_v51  ;;  %v9584_v51 = vld [vmem:[#allocation61_spill] sm:$0xff]  ;;  %v833_v32 = vsel %vm828_vm5, %v800_v47, %v709_v2  ;;  %v812_v47 = vsel %vm225_vm0, %v5865_v26, %v6281_v30  ;;  %v9588_v55 = vld [vmem:[#allocation68_spill] sm:$0xff] }
 0x13e   : > { %v6437_v17 = vpop.permute.xlu2 %742  ;;  %v1023_v56 = vsel %vm442_vm1, %v9584_v51, %v1022_v31  ;;  %1085 = vrot.lane.b32.xlu0 %v1018_v28, %s5386_s20  ;;  %v6471_v28 = vld [vmem:[#allocation2 + $0x188] sm:$0xff]  ;;  %v1032_v51 = vrot.slane %v6462_v8, 1  ;;  %v9589_v30 = vld [vmem:[#allocation64_spill] sm:$0xff] }
 0x13f   : > { %v6454_v24 = vpop.permute.xlu0 %726 }
 0x140   : > { %v1033_v26 = vsel %vm442_vm1, %v5984_v39, %v1032_v51  ;;  %v9590_v51 = vld [vmem:[#allocation66_spill] sm:$0xff] }
 0x141   : > { %1075 = vrot.lane.b32.xlu1 %v9583_v12, %s5386_s20  ;;  %v1013_v12 = vsel %vm442_vm1, %v9585_v33, %v1012_v21  ;;  %v834_v21 = vsel %vm828_vm5, %v801_v4, %v711_v54  ;;  %v6489_v54 = vld [vmem:[#allocation2 + $0x160] sm:$0x3] }
 0x143   : > { %v6449_v61 = vpop.permute.xlu1 %716 }
 0x144   : > { %1089 = vrot.lane.b32.xlu2 %v1023_v56, %s5386_s20  ;;  %v6473_v56 = vld [vmem:[#allocation2 + $0x190] sm:$0x3] }
 0x145   : > { %5112 = vmatmul.msk.f32.gmra.mxu1 %vm1378_vm6, %v833_v32  ;;  %v9586_v32 = vld [vmem:[#allocation69_spill] sm:$0xff]  ;;  %9587 = vst [vmem:[#allocation39_spill] sm:$0xff] %v6473_v56 }
 0x146   : > { %v6459_v31 = vpop.permute.xlu2 %748  ;;  %1091 = vrot.lane.b32.xlu0 %v9586_v32, %s5386_s20  ;;  %v1037_v32 = vrot.slane %v6473_v56, 1 }
 0x147   : > { %v733_v9 = vpop.permute.xlu0 %732 }
 0x148   : > { %v845_v33 = vsel %vm828_vm5, %v812_v47, %v733_v9  ;;  %v802_v9 = vsel %vm225_vm0, %v5653_v35, %v6145_v63  ;;  %v813_v63 = vsel %vm225_vm0, %v5803_v13, %v6157_v0 }
 0x149   : > { %1081 = vrot.lane.b32.xlu1 %v1013_v12, %s5386_s20  ;;  %v6485_v12 = vrot.slane %v6471_v28, 1  ;;  %5124 = vmatmul.msk.f32.vlgmr.msra.gmra.mxu3 %vm1378_vm6, %v845_v33  ;;  %v835_v33 = vsel %vm828_vm5, %v802_v9, %v6328_v42  ;;  %v9591_v42 = vld [vmem:[#allocation20_spill] sm:$0xff] }
 0x14b   : > { %v6467_v2 = vpop.permute.xlu1 %722  ;;  %v1038_v47 = vsel %vm442_vm1, %v6485_v12, %v1037_v32  ;;  %v6512_v32 = vld [vmem:[#allocation2 + $0x180] sm:$0xff] }
 0x14c   : > { %1095 = vrot.lane.b32.xlu2 %v9588_v55, %s5386_s20  ;;  %v1034_v35 = vrot.slane %v6512_v32, 1 }
 0x14d   : > { %5113 = vmatmul.msk.f32.gmra.mxu1 %vm1378_vm6, %v834_v21  ;;  %v1027_v21 = vrot.slane %v6489_v54, 1 }
 0x14e   : > { %v6491_v4 = vpop.permute.xlu2 %754  ;;  %1097 = vrot.lane.b32.xlu0 %v1033_v26, %s5386_s20  ;;  %v803_v26 = vsel %vm225_vm0, %v9591_v42, %v6194_v22  ;;  %v6536_v0 = vsel %vm442_vm1, %v1034_v35, %v6485_v12  ;;  %v1148_v22 = vrot.slane %v6295_v18, 2 }
 0x14f   : > { %v739_v39 = vpop.permute.xlu0 %738 }
 0x150   : > { %v1149_v18 = vsel %vm619_vm3, %v6032_v40, %v1148_v22  ;;  %v9593_v40 = vld [vmem:[#allocation23_spill] sm:$0xff]  ;;  %v9599_v22 = vld [vmem:[#allocation44_spill] sm:$0xff] }
 0x151   : > { %1087 = vrot.lane.b32.xlu1 %v9589_v30, %s5386_s20  ;;  %v1028_v30 = vsel %vm442_vm1, %v9590_v51, %v1027_v21  ;;  %v836_v21 = vsel %vm828_vm5, %v803_v26, %v6399_v50  ;;  %v1138_v50 = vrot.slane %v6260_v16, 2  ;;  %v804_v51 = vsel %vm225_vm0, %v5677_v43, %v6078_v14  ;;  %v9592_v14 = vld [vmem:[#allocation70_spill] sm:$0xff] }
 0x152   : > { %v1158_v26 = vrot.slane %v6345_v15, 2  ;;  %v1153_v15 = vrot.slane %v6301_v52, 2 }
 0x153   : > { %v6503_v55 = vpop.permute.xlu1 %728 }
 0x154   : > { %1101 = vrot.lane.b32.xlu2 %v1038_v47, %s5386_s20 }
 0x155   : > { %5114 = vmatmul.msk.f32.gmra.mxu1 %vm1378_vm6, %v835_v33  ;;  %v1143_v33 = vrot.slane %v6309_v19, 2 }
 0x156   : > { %v6514_v56 = vpop.permute.xlu2 %760  ;;  %1215 = vrot.lane.b32.xlu0 %v6053_v46, %s5387_s25 }
 0x157   : > { %v6532_v13 = vpop.permute.xlu0 %744  ;;  %v1144_v19 = vsel %vm619_vm3, %v6025_v37, %v1143_v33  ;;  %v837_v37 = vsel %vm828_vm5, %v804_v51, %v6449_v61  ;;  %v805_v61 = vsel %vm225_vm0, %v9593_v40, %v6173_v36  ;;  %v9598_v33 = vld [vmem:[#allocation25_spill] sm:$0xff] }
 0x159   : > { %1093 = vrot.lane.b32.xlu1 %v1028_v30, %s5386_s20 }
 0x15b   : > { %v735_v47 = vpop.permute.xlu1 %734 }
 0x15c   : > { %v846_v9 = vsel %vm828_vm5, %v813_v63, %v735_v47  ;;  %1219 = vrot.lane.b32.xlu2 %v6036_v60, %s5387_s25  ;;  %v814_v60 = vsel %vm225_vm0, %v5834_v3, %v6263_v11  ;;  %v1139_v11 = vsel %vm619_vm3, %v9592_v14, %v1138_v50  ;;  %v838_v63 = vsel %vm828_vm5, %v805_v61, %v6347_v5  ;;  %v9594_v5 = vld [vmem:[#allocation71_spill] sm:$0xff] }
 0x15d   : > { %5115 = vmatmul.msk.f32.gmra.mxu1 %vm1378_vm6, %v836_v21  ;;  %5125 = vmatmul.msk.f32.gmra.mxu3 %vm1378_vm6, %v846_v9  ;;  %v847_v16 = vsel %vm828_vm5, %v814_v60, %v6412_v29  ;;  %v815_v29 = vsel %vm225_vm0, %v5836_v44, %v6297_v20  ;;  %v1159_v20 = vsel %vm619_vm3, %v6069_v45, %v1158_v26  ;;  %v9597_v9 = vld [vmem:[#allocation76_spill] sm:$0xff] }
 0x15e   : > { %v6540_v46 = vpop.permute.xlu2 %1041  ;;  %1221 = vrot.lane.b32.xlu0 %v1144_v19, %s5387_s25  ;;  %v848_v42 = vsel %vm828_vm5, %v815_v29, %v739_v39  ;;  %v816_v39 = vsel %vm225_vm0, %v5842_v57, %v6182_v53  ;;  %v9596_v53 = vld [vmem:[#allocation72_spill] sm:$0xff]  ;;  %v817_v19 = vsel %vm225_vm0, %v9599_v22, %v6284_v6  ;;  %v9600_v6 = vld [vmem:[#allocation79_spill] sm:$0xff]  ;;  %v9615_v22 = vld [vmem:[#allocation82_spill] sm:$0xff] }
 0x15f   : > { %v6563_v43 = vpop.permute.xlu0 %750  ;;  %v850_v60 = vsel %vm828_vm5, %v817_v19, %v6437_v17  ;;  %v9602_v17 = vld [vmem:[#allocation74_spill] sm:$0xff]  ;;  %v9606_v29 = vld [vmem:[#allocation32_spill] sm:$0xff] }
 0x161   : > { %1099 = vrot.lane.b32.xlu1 %v6536_v0, %s5386_s20 }
 0x163   : > { %v741_v30 = vpop.permute.xlu1 %740 }
 0x164   : > { %1225 = vrot.lane.b32.xlu2 %v1149_v18, %s5387_s25  ;;  %v849_v52 = vsel %vm828_vm5, %v816_v39, %v741_v30  ;;  %v1173_v30 = vrot.slane %v6382_v58, 2  ;;  %v1168_v58 = vrot.slane %v6337_v1, 2 }
 0x165   : > { %5116 = vmatmul.msk.f32.gmra.mxu1 %vm1378_vm6, %v837_v37  ;;  %5126 = vmatmul.msk.f32.gmra.mxu3 %vm1378_vm6, %v847_v16  ;;  %v9603_v16 = vld [vmem:[#allocation30_spill] sm:$0xff] }
 0x166   : > { %v6568_v3 = vpop.permute.xlu2 %1047  ;;  %1227 = vrot.lane.b32.xlu0 %v6099_v48, %s5387_s25  ;;  %v1163_v48 = vrot.slane %v6331_v41, 2  ;;  %v9595_v41 = vld [vmem:[#allocation73_spill] sm:$0xff]  ;;  %v808_v14 = vsel %vm225_vm0, %v9603_v16, %v6199_v7 }
 0x167   : > { %v6587_v36 = vpop.permute.xlu0 %756 }
 0x168   : > { %v1164_v45 = vsel %vm619_vm3, %v9595_v41, %v1163_v48  ;;  %v9608_v48 = vld [vmem:[#allocation88_spill] sm:$0xff]  ;;  %v9612_v41 = vld [vmem:[#allocation86_spill] sm:$0xff] }
 0x169   : > { %1217 = vrot.lane.b32.xlu1 %v1139_v11, %s5387_s25  ;;  %v9604_v11 = vld [vmem:[#allocation62_spill] sm:$0xff] }
 0x16a   : > { %v818_v40 = vsel %vm225_vm0, %v9604_v11, %v6320_v34  ;;  %v9607_v34 = vld [vmem:[#allocation75_spill] sm:$0xff] }
 0x16b   : > { %v6577_v35 = vpop.permute.xlu1 %746  ;;  %v851_v1 = vsel %vm828_vm5, %v818_v40, %v6532_v13  ;;  %v9610_v13 = vld [vmem:[#allocation95_spill] sm:$0xff] }
 0x16c   : > { %1231 = vrot.lane.b32.xlu2 %v6082_v38, %s5387_s25  ;;  %v806_v38 = vsel %vm225_vm0, %v5775_v49, %v6225_v25  ;;  %v1154_v49 = vsel %vm619_vm3, %v9596_v53, %v1153_v15  ;;  %v9611_v15 = vld [vmem:[#allocation31_spill] sm:$0xff] }
 0x16d   : > { %5117 = vmatmul.msk.f32.gmra.mxu1 %vm1378_vm6, %v838_v63  ;;  %5127 = vmatmul.msk.f32.gmra.mxu3 %vm1378_vm6, %v848_v42  ;;  %v839_v21 = vsel %vm828_vm5, %v806_v38, %v6430_v59  ;;  %v807_v59 = vsel %vm225_vm0, %v9598_v33, %v9597_v9  ;;  %v841_v63 = vsel %vm828_vm5, %v808_v14, %v9606_v29  ;;  %v9614_v33 = vld [vmem:[#allocation51_spill] sm:$0xff] }
 0x16e   : > { %v6591_v44 = vpop.permute.xlu2 %1053  ;;  %1233 = vrot.lane.b32.xlu0 %v1159_v20, %s5387_s25  ;;  %v840_v51 = vsel %vm828_vm5, %v807_v59, %v6467_v2  ;;  %v1174_v2 = vsel %vm619_vm3, %v6119_v62, %v1173_v30  ;;  %v1169_v42 = vsel %vm619_vm3, %v9607_v34, %v1168_v58  ;;  %v9609_v20 = vld [vmem:[#allocation53_spill] sm:$0xff]  ;;  %v809_v39 = vsel %vm225_vm0, %v9611_v15, %v9610_v13  ;;  %v9622_v58 = vld [vmem:[#allocation83_spill] sm:$0xff] }
 0x16f   : > { %v6615_v57 = vpop.permute.xlu0 %762  ;;  %v1193_v59 = vrot.slane %v9614_v33, 2  ;;  %v9628_v34 = vld [vmem:[#allocation57_spill] sm:$0xff] }
 0x171   : > { %1223 = vrot.lane.b32.xlu1 %v9594_v5, %s5387_s25  ;;  %v819_v5 = vsel %vm225_vm0, %v9609_v20, %v9608_v48  ;;  %v1194_v16 = vsel %vm619_vm3, %v9622_v58, %v1193_v59  ;;  %v9629_v20 = vld [vmem:[#allocation96_spill] sm:$0xff] }
 0x173   : > { %v6605_v47 = vpop.permute.xlu1 %752 }
 0x174   : > { %1237 = vrot.lane.b32.xlu2 %v1164_v45, %s5387_s25  ;;  %v842_v45 = vsel %vm828_vm5, %v809_v39, %v6454_v24  ;;  %v1203_v39 = vrot.slane %v6489_v54, 2  ;;  %v9636_v54 = vld [vmem:[#allocation45_spill] sm:$0xff] }
 0x175   : > { %5118 = vmatmul.msk.f32.gmra.mxu1 %vm1378_vm6, %v839_v21  ;;  %5128 = vmatmul.msk.f32.gmra.mxu3 %vm1378_vm6, %v849_v52  ;;  %v852_v21 = vsel %vm828_vm5, %v819_v5, %v6577_v35  ;;  %v1188_v52 = vrot.slane %v6435_v27, 2  ;;  %v9616_v35 = vld [vmem:[#allocation80_spill] sm:$0xff]  ;;  %v9617_v27 = vld [vmem:[#allocation35_spill] sm:$0xff]  ;;  %v1198_v59 = vrot.slane %v9636_v54, 2 }
 0x176   : > { %v6620_v25 = vpop.permute.xlu2 %1059  ;;  %1239 = vrot.lane.b32.xlu0 %v6151_v10, %s5387_s25  ;;  %v1178_v10 = vrot.slane %v6370_v23, 2  ;;  %v9605_v23 = vld [vmem:[#allocation77_spill] sm:$0xff]  ;;  %v1183_v19 = vrot.slane %v9617_v27, 2  ;;  %v9630_v5 = vld [vmem:[#allocation3_spill] sm:$0xff] }
 0x177   : > { %v6640_v18 = vpop.permute.xlu0 %1043  ;;  %v1189_v24 = vsel %vm619_vm3, %v9615_v22, %v1188_v52  ;;  %v1208_v52 = vrot.slane %v6462_v8, 2  ;;  %v9637_v22 = vld [vmem:[#allocation92_spill] sm:$0xff]  ;;  %v9650_v54 = vld [vmem:[#allocation39_spill] sm:$0xff] }
 0x178   : > { %v1179_v62 = vsel %vm619_vm3, %v9605_v23, %v1178_v10  ;;  %v9621_v10 = vld [vmem:[#allocation56_spill] sm:$0xff]  ;;  %v9623_v23 = vld [vmem:[#allocation81_spill] sm:$0xff] }
 0x179   : > { %1229 = vrot.lane.b32.xlu1 %v1154_v49, %s5387_s25  ;;  %v9613_v49 = vld [vmem:[#allocation84_spill] sm:$0xff] }
 0x17b   : > { %v6629_v50 = vpop.permute.xlu1 %758 }
 0x17c   : > { %1243 = vrot.lane.b32.xlu2 %v9600_v6, %s5387_s25  ;;  %v9620_v6 = vld [vmem:[#allocation98_spill] sm:$0xff] }
 0x17d   : > { %5119 = vmatmul.msk.f32.gmra.mxu1 %vm1378_vm6, %v840_v51  ;;  %5129 = vmatmul.msk.f32.gmra.mxu3 %vm1378_vm6, %v850_v60  ;;  %v6706_v51 = vld [vmem:[#allocation2 + $0xa8] sm:$0xff] }
 0x17e   : > { %v6644_v37 = vpop.permute.xlu2 %1065  ;;  %1245 = vrot.lane.b32.xlu0 %v1174_v2, %s5387_s25  ;;  %9618 = vst [vmem:[#allocation43_spill] sm:$0xff] %v6706_v51  ;;  %v9619_v60 = vld [vmem:[#allocation78_spill] sm:$0xff]  ;;  %v820_v2 = vsel %vm225_vm0, %v9621_v10, %v9620_v6  ;;  %v6776_v6 = vrot.slane %v6471_v28, 2  ;;  %v6778_v10 = vld [vmem:[#allocation2 + $0x30] sm:$0xff] }
 0x17f   : > { %9601 = vst [vmem:[#allocation48_spill] sm:$0xff] %v6644_v37  ;;  %v6669_v7 = vpop.permute.xlu0 %1049  ;;  %v810_v30 = vsel %vm225_vm0, %v6706_v51, %v9619_v60  ;;  %v853_v11 = vsel %vm828_vm5, %v820_v2, %v6459_v31  ;;  %v6780_v2 = vld [vmem:[#allocation2 + $0x38] sm:$0xff] }
 0x180   : > { %v843_v14 = vsel %vm828_vm5, %v810_v30, %v6503_v55  ;;  %v9626_v55 = vld [vmem:[#allocation90_spill] sm:$0xff]  ;;  %v1210_v30 = vrot.slane %v6512_v32, 2  ;;  %9641 = vst [vmem:[#allocation55_spill] sm:$0xff] %v6776_v6  ;;  %v1901_v32 = vrot.slane %v6778_v10, 1  ;;  %v1902_v28 = vrot.slane %v6780_v2, 1 }
 0x181   : > { %1235 = vrot.lane.b32.xlu1 %v9602_v17, %s5387_s25 }
 0x183   : > { %v6658_v61 = vpop.permute.xlu1 %1039 }
 0x184   : > { %1249 = vrot.lane.b32.xlu2 %v1179_v62, %s5387_s25  ;;  %v1184_v62 = vsel %vm619_vm3, %v9623_v23, %v1183_v19  ;;  %v9640_v19 = vld [vmem:[#allocation91_spill] sm:$0xff]  ;;  %v6797_v23 = vld [vmem:[#allocation2 + $0x40] sm:$0x3] }
 0x185   : > { %5120 = vmatmul.msk.f32.gmra.mxu1 %vm1378_vm6, %v841_v63  ;;  %5130 = vmatmul.msk.f32.gmra.mxu3 %vm1378_vm6, %v851_v1  ;;  %v6733_v63 = vld [vmem:[#allocation2 + $0xb0] sm:$0xff]  ;;  %v9627_v1 = vld [vmem:[#allocation6_spill] sm:$0xff]  ;;  %v1209_v60 = vsel %vm619_vm3, %v9640_v19, %v1208_v52 }
 0x186   : > { %v6674_v26 = vpop.permute.xlu2 %1071  ;;  %1251 = vrot.lane.b32.xlu0 %v9612_v41, %s5387_s25  ;;  %9625 = vst [vmem:[#allocation63_spill] sm:$0xff] %v6733_v63  ;;  %v811_v31 = vsel %vm225_vm0, %v6733_v63, %v9626_v55  ;;  %v9646_v55 = vld [vmem:[#allocation59_spill] sm:$0xff]  ;;  %v5304_v63 = vld [vmem:[#allocation2 + $0x18] sm:$0xff] }
 0x187   : > { %v6694_v53 = vpop.permute.xlu0 %1055  ;;  %v844_v13 = vsel %vm828_vm5, %v811_v31, %v9630_v5  ;;  %v6810_v5 = vld [vmem:[#allocation2 + $0x50] sm:$0xff] }
 0x189   : > { %1241 = vrot.lane.b32.xlu1 %v1169_v42, %s5387_s25  ;;  %v821_v42 = vsel %vm225_vm0, %v9628_v34, %v9627_v1  ;;  %v1903_v34 = vsel %vm442_vm1, %v1901_v32, %v1902_v28  ;;  %v6844_v32 = vld [vmem:[#allocation2 + $0x78] sm:$0xff] }
 0x18a   : > { %v854_v15 = vsel %vm828_vm5, %v821_v42, %v6563_v43  ;;  %v9635_v43 = vld [vmem:[#allocation85_spill] sm:$0xff] }
 0x18b   : > { %v6683_v38 = vpop.permute.xlu1 %1045 }
 0x18c   : > { %1255 = vrot.lane.b32.xlu2 %v9613_v49, %s5387_s25  ;;  %v9634_v49 = vld [vmem:[#allocation89_spill] sm:$0xff] }
 0x18d   : > { %5121 = vmatmul.msk.f32.gmra.mxu1 %vm1378_vm6, %v842_v45  ;;  %5131 = vmatmul.msk.f32.gmra.mxu3 %vm1378_vm6, %v852_v21  ;;  %v9632_v45 = vld [vmem:[#allocation93_spill] sm:$0xff]  ;;  %v1204_v33 = vsel %vm619_vm3, %v9634_v49, %v1203_v39  ;;  %v9649_v49 = vld [vmem:[#allocation94_spill] sm:$0xff] }
 0x18e   : > { %v6698_v9 = vpop.permute.xlu2 %1077  ;;  %1257 = vrot.lane.b32.xlu0 %v1189_v24, %s5387_s25  ;;  %v9638_v24 = vld [vmem:[#allocation58_spill] sm:$0xff] }
 0x18f   : > { %v6725_v40 = vpop.permute.xlu0 %1061 }
 0x191   : > { %1247 = vrot.lane.b32.xlu1 %v9616_v35, %s5387_s25  ;;  %v822_v35 = vsel %vm225_vm0, %v9638_v24, %v9637_v22  ;;  %v9651_v22 = vld [vmem:[#allocation38_spill] sm:$0xff]  ;;  %v9652_v24 = vld [vmem:[#allocation67_spill] sm:$0xff] }
 0x192   : > { %v855_v8 = vsel %vm828_vm5, %v822_v35, %v6605_v47  ;;  %v6794_v47 = vsel %vm619_vm3, %v1210_v30, %v6776_v6  ;;  %v824_v35 = vsel %vm225_vm0, %v9652_v24, %v9651_v22 }
 0x193   : > { %v6714_v17 = vpop.permute.xlu1 %1051  ;;  %9644 = vst [vmem:[#allocation68_spill] sm:$0xff] %v6794_v47  ;;  %v857_v30 = vsel %vm828_vm5, %v824_v35, %v6587_v36 }
 0x194   : > { %1261 = vrot.lane.b32.xlu2 %v1194_v16, %s5387_s25  ;;  %v9642_v16 = vld [vmem:[#allocation87_spill] sm:$0xff] }
 0x195   : > { %5122 = vmatmul.msk.f32.gmra.mxu1 %vm1378_vm6, %v843_v14  ;;  %5132 = vmatmul.msk.f32.gmra.mxu3 %vm1378_vm6, %v853_v11  ;;  %v1199_v14 = vsel %vm619_vm3, %v9642_v16, %v1198_v59  ;;  %v1213_v59 = vrot.slane %v9650_v54, 2  ;;  %v6870_v54 = vld [vmem:[#allocation2 + $0x158] sm:$0xff] }
 0x196   : > { %v6730_v29 = vpop.permute.xlu2 %1083  ;;  %1263 = vrot.lane.b32.xlu0 %v9629_v20, %s5387_s25  ;;  %v1904_v20 = vrot.slane %v6797_v23, 1  ;;  %9654 = vst [vmem:[#allocation70_spill] sm:$0xff] %v6870_v54 }
 0x197   : > { %9624 = vst [vmem:[#allocation65_spill] sm:$0xff] %v6730_v29  ;;  %v6752_v41 = vpop.permute.xlu0 %1067  ;;  %v1214_v36 = vsel %vm619_vm3, %v6776_v6, %v1213_v59  ;;  %v9655_v59 = vld [vmem:[#allocation97_spill] sm:$0xff] }
 0x198   : > { %9631 = vst [vmem:[#allocation60_spill] sm:$0xff] %v6752_v41  ;;  %v825_v22 = vsel %vm225_vm0, %v6870_v54, %v9655_v59  ;;  %v6917_v6 = vld [vmem:[#allocation2 + $0xc0] sm:$0xff] }
 0x199   : > { %1253 = vrot.lane.b32.xlu1 %v1184_v62, %s5387_s25  ;;  %v9645_v62 = vld [vmem:[#allocation99_spill] sm:$0xff]  ;;  %v6949_v41 = vld [vmem:[#allocation2 + $0xe0] sm:$0xff] }
 0x19a   : > { %v823_v31 = vsel %vm225_vm0, %v9646_v55, %v9645_v62  ;;  %v5072_v62 = vld [vmem:[%s9314_s1 + $0x10] sm:$0xff] }
 0x19b   : > { %v6741_v48 = vpop.permute.xlu1 %1057  ;;  %v856_v42 = vsel %vm828_vm5, %v823_v31, %v6491_v4  ;;  %v1905_v4 = vsel %vm442_vm1, %v1902_v28, %v1904_v20  ;;  %v6846_v28 = vld [vmem:[#allocation2 + $0x80] sm:$0xff]  ;;  %v6859_v31 = vld [vmem:[#allocation2 + $0x48] sm:$0xff] }
 0x19c   : > { %1267 = vrot.lane.b32.xlu2 %v9632_v45, %s5387_s25  ;;  %v1907_v45 = vrot.slane %v6810_v5, 1 }
 0x19d   : > { %5123 = vmatmul.msk.f32.gmra.mxu1 %vm1378_vm6, %v844_v13  ;;  %5133 = vmatmul.msk.f32.gmra.mxu3 %vm1378_vm6, %v854_v15  ;;  %v6812_v13 = vld [vmem:[#allocation2 + $0x58] sm:$0x3] }
 0x19e   : > { %v6756_v21 = vpop.permute.xlu2 %1089  ;;  %1269 = vrot.lane.b32.xlu0 %v1204_v33, %s5387_s25  ;;  %v1909_v52 = vrot.slane %v6812_v13, 1  ;;  %v6825_v33 = vld [vmem:[#allocation2 + $0x60] sm:$0xff] }
 0x19f   : > { %9633 = vst [vmem:[#allocation52_spill] sm:$0xff] %v6756_v21  ;;  %v6783_v58 = vpop.permute.xlu0 %1073  ;;  %v1911_v16 = vrot.slane %v6825_v33, 1  ;;  %v6935_v21 = vld [vmem:[#allocation2 + $0x170] sm:$0xff] }
 0x1a0   : > { %9662 = vst [vmem:[#allocation25_spill] sm:$0xff] %v6935_v21 }
 0x1a1   : > { %1259 = vrot.lane.b32.xlu1 %v9635_v43, %s5387_s25  ;;  %v6827_v43 = vld [vmem:[#allocation2 + $0x68] sm:$0xff] }
 0x1a3   : > { %v6767_v27 = vpop.permute.xlu1 %1063 }
 0x1a4   : > { %9639 = vst [vmem:[#allocation61_spill] sm:$0xff] %v6767_v27  ;;  %1273 = vrot.lane.b32.xlu2 %v1209_v60, %s5387_s25  ;;  %v1910_v60 = vsel %vm442_vm1, %v1907_v45, %v1909_v52  ;;  %v6991_v27 = vld [vmem:[#allocation2 + $0x118] sm:$0x3] }
 0x1a5   : > { %5134 = vmatmul.msk.f32.gmra.mxu3 %vm1378_vm6, %v855_v8  ;;  %v5073_v8 = vld [vmem:[%s9314_s1 + $0x18] sm:$0xf]  ;;  %9670 = vst [vmem:[#allocation32_spill] sm:$0xff] %v6991_v27 }
 0x1a6   : > { %v6788_v11 = vpop.permute.xlu2 %1095  ;;  %1275 = vrot.lane.b32.xlu0 %v6794_v47, %s5387_s25  ;;  %5074 = vmatpush.msk.msra.mxu0 %vm1475_vm4, %v5073_v8  ;;  %v6919_v47 = vld [vmem:[#allocation2 + $0xc8] sm:$0xff] }
 0x1a7   : > { %9643 = vst [vmem:[#allocation69_spill] sm:$0xff] %v6788_v11  ;;  %5282 = vmatpush.msk.msra.mxu2 %vm1475_vm4, %v5073_v8 }
 0x1a8   : > { %v6815_v15 = vpop.permute.xlu0 %1079  ;;  %1494 = vmatpush.msra.mxu0 %v5072_v62 }
 0x1a9   : > { %1265 = vrot.lane.b32.xlu1 %v1199_v14, %s5387_s25  ;;  %v1912_v14 = vrot.slane %v6827_v43, 1  ;;  %5283 = vmatpush.msra.mxu2 %v5072_v62 }
 0x1ab   : > { %v6802_v1 = vpop.permute.xlu1 %1069  ;;  %v1913_v20 = vsel %vm442_vm1, %v1911_v16, %v1912_v14  ;;  %v6884_v16 = vld [vmem:[#allocation2 + $0xa0] sm:$0x3] }
 0x1ac   : > { %9647 = vst [vmem:[#allocation64_spill] sm:$0xff] %v6802_v1  ;;  %1981 = vrot.lane.b32.xlu2 %v1903_v34, %s5386_s20  ;;  %v1916_v34 = vrot.slane %v6844_v32, 1  ;;  %v6932_v1 = vld [vmem:[#allocation2 + $0xd0] sm:$0x3] }
 0x1ad   : > { %5135 = vmatmul.msk.f32.gmra.mxu3 %vm1378_vm6, %v856_v42  ;;  %v1917_v42 = vrot.slane %v6846_v28, 1 }
 0x1ae   : > { %v6818_v39 = vpop.permute.xlu2 %1101  ;;  %1983 = vrot.lane.b32.xlu0 %v1905_v4, %s5386_s20  ;;  %v6867_v4 = vld [vmem:[#allocation2 + $0x88] sm:$0x3] }
 0x1af   : > { %9648 = vst [vmem:[#allocation66_spill] sm:$0xff] %v6818_v39  ;;  %v1918_v35 = vsel %vm442_vm1, %v1916_v34, %v1917_v42  ;;  %v1919_v8 = vrot.slane %v6867_v4, 1  ;;  %v6899_v39 = vld [vmem:[#allocation2 + $0xa8] sm:$0xff] }
 0x1b0   : > { %v6854_v55 = vpop.permute.xlu0 %1085 }
 0x1b1   : > { %1271 = vrot.lane.b32.xlu1 %v9649_v49, %s5387_s25  ;;  %9653 = vst [vmem:[#allocation20_spill] sm:$0xff] %v6854_v55  ;;  %v1906_v49 = vrot.slane %v6859_v31, 1  ;;  %v1920_v59 = vsel %vm442_vm1, %v1917_v42, %v1919_v8  ;;  %v6951_v55 = vld [vmem:[#allocation2 + $0xe8] sm:$0x3] }
 0x1b2   : > { %9665 = vst [vmem:[#allocation79_spill] sm:$0xff] %v6951_v55 }
 0x1b3   : > { %v6833_v19 = vpop.permute.xlu1 %1075 }
 0x1b4   : > { %1987 = vrot.lane.b32.xlu2 %v1910_v60, %s5386_s20  ;;  %v858_v60 = vsel %vm828_vm5, %v825_v22, %v6629_v50  ;;  %v1924_v50 = vrot.slane %v6884_v16, 1 }
 0x1b5   : > { %5136 = vmatmul.msk.f32.gmra.mxu3 %vm1378_vm6, %v857_v30  ;;  %v6882_v30 = vld [vmem:[#allocation2 + $0x98] sm:$0xff] }
 0x1b6   : > { %v6864_v52 = vpop.permute.xlu2 %1219  ;;  %1989 = vrot.lane.b32.xlu0 %v1913_v20, %s5386_s20  ;;  %v6891_v20 = vld [vmem:[#allocation2 + $0x70] sm:$0x3]  ;;  %v1922_v34 = vrot.slane %v6882_v30, 1 }
 0x1b8   : > { %v6887_v62 = vpop.permute.xlu0 %1091  ;;  %v1925_v42 = vsel %vm442_vm1, %v1922_v34, %v1924_v50  ;;  %v6926_v50 = vld [vmem:[#allocation2 + $0x90] sm:$0xff] }
 0x1b9   : > { %1277 = vrot.lane.b32.xlu1 %v1214_v36, %s5387_s25  ;;  %9657 = vst [vmem:[#allocation71_spill] sm:$0xff] %v6887_v62  ;;  %v1908_v36 = vsel %vm442_vm1, %v1906_v49, %v1907_v45  ;;  %v1914_v45 = vrot.slane %v6891_v20, 1  ;;  %v6904_v49 = vld [vmem:[#allocation2 + $0x168] sm:$0xff] }
 0x1ba   : > { %9658 = vst [vmem:[#allocation73_spill] sm:$0xff] %v6904_v49 }
 0x1bb   : > { %v6875_v24 = vpop.permute.xlu1 %1081 }
 0x1bc   : > { %9656 = vst [vmem:[#allocation23_spill] sm:$0xff] %v6875_v24  ;;  %1993 = vrot.lane.b32.xlu2 %v1918_v35, %s5386_s20  ;;  %v9659_v35 = vld [vmem:[#allocation42_spill] sm:$0xff] }
 0x1bd   : > { %5137 = vmatmul.msk.f32.gmra.mxu3 %vm1378_vm6, %v858_v60  ;;  %v6901_v60 = vld [vmem:[#allocation2 + $0xb0] sm:$0xff]  ;;  %v826_v11 = vsel %vm225_vm0, %v6904_v49, %v9659_v35  ;;  %v1915_v49 = vsel %vm442_vm1, %v1912_v14, %v1914_v45 }
 0x1be   : > { %v6897_v22 = vpop.permute.xlu2 %1225  ;;  %1995 = vrot.lane.b32.xlu0 %v1920_v59, %s5386_s20  ;;  %v859_v8 = vsel %vm828_vm5, %v826_v11, %v6514_v56  ;;  %v1927_v62 = vrot.slane %v6901_v60, 1  ;;  %v1931_v56 = vrot.slane %v6917_v6, 1  ;;  %v1932_v11 = vrot.slane %v6919_v47, 1 }
 0x1c0   : > { %v6922_v35 = vpop.permute.xlu0 %1097 }
 0x1c1   : > { %1985 = vrot.lane.b32.xlu1 %v1908_v36, %s5386_s20  ;;  %v1926_v36 = vrot.slane %v6899_v39, 1  ;;  %9661 = vst [vmem:[#allocation76_spill] sm:$0xff] %v6922_v35  ;;  %v9663_v35 = vld [vmem:[#allocation26_spill] sm:$0xff] }
 0x1c2   : > { %v827_v14 = vsel %vm225_vm0, %v6935_v21, %v9663_v35  ;;  %v1311_v35 = vsel %vm225_vm0, %v5304_v63, %v6658_v61  ;;  %v6966_v61 = vld [vmem:[#allocation2 + $0xf0] sm:$0xff]  ;;  %v6968_v63 = vld [vmem:[#allocation2 + $0xf8] sm:$0xff] }
 0x1c3   : > { %v6909_v54 = vpop.permute.xlu1 %1087  ;;  %v1928_v59 = vsel %vm442_vm1, %v1926_v36, %v1927_v62  ;;  %v1933_v36 = vsel %vm442_vm1, %v1931_v56, %v1932_v11 }
 0x1c4   : > { %9660 = vst [vmem:[#allocation72_spill] sm:$0xff] %v6909_v54  ;;  %1999 = vrot.lane.b32.xlu2 %v1925_v42, %s5386_s20  ;;  %v1934_v54 = vrot.slane %v6932_v1, 1 }
 0x1c5   : > { %5138 = vmatmul.msk.f32.gmra.mxu3 %vm1378_vm6, %v859_v8  ;;  %v1921_v8 = vrot.slane %v6926_v50, 1 }
 0x1c6   : > { %2001 = vrot.lane.b32.xlu0 %v1928_v59, %s5386_s20  ;;  %v6943_v42 = vpop.permute.xlu2 %1231  ;;  %v1935_v37 = vsel %vm442_vm1, %v1932_v11, %v1934_v54  ;;  %v6979_v54 = vld [vmem:[#allocation2 + $0x110] sm:$0xff] }
 0x1c7   : > { %v1923_v21 = vsel %vm442_vm1, %v1921_v8, %v1922_v34  ;;  %9668 = vst [vmem:[#allocation62_spill] sm:$0xff] %v6979_v54 }
 0x1c8   : > { %v1216_v59 = vpop.permute.xlu0 %1215 }
 0x1c9   : > { %1991 = vrot.lane.b32.xlu1 %v1915_v49, %s5386_s20  ;;  %v860_v49 = vsel %vm828_vm5, %v827_v14, %v6615_v57  ;;  %v1343_v56 = vsel %vm828_vm5, %v1311_v35, %v1216_v59  ;;  %v6960_v57 = vld [vmem:[#allocation2 + $0xb8] sm:$0x3]  ;;  %v1937_v14 = vrot.slane %v6949_v41, 1  ;;  %v1942_v35 = vrot.slane %v6968_v63, 1  ;;  %v6977_v59 = vld [vmem:[#allocation2 + $0x108] sm:$0xff] }
 0x1ca   : > { %5075 = vmatmul.msk.f32.vlgmr.msra.gmra.mxu0 %vm1378_vm6, %v1343_v56  ;;  %v1929_v34 = vrot.slane %v6960_v57, 1  ;;  %9667 = vst [vmem:[#allocation30_spill] sm:$0xff] %v6977_v59 }
 0x1cb   : > { %v6940_v45 = vpop.permute.xlu1 %1093 }
 0x1cc   : > { %9664 = vst [vmem:[#allocation44_spill] sm:$0xff] %v6940_v45  ;;  %2005 = vrot.lane.b32.xlu2 %v1933_v36, %s5386_s20  ;;  %v1939_v45 = vrot.slane %v6951_v55, 1  ;;  %v1930_v56 = vsel %vm442_vm1, %v1927_v62, %v1929_v34  ;;  %v5305_v55 = vld [vmem:[#allocation2 + $0x20] sm:$0xff] }
 0x1cd   : > { %5139 = vmatmul.msk.f32.gmra.mxu3 %vm1378_vm6, %v860_v49  ;;  %v1941_v49 = vrot.slane %v6966_v61, 1  ;;  %v1312_v62 = vsel %vm225_vm0, %v5305_v55, %v6540_v46 }
 0x1ce   : > { %2007 = vrot.lane.b32.xlu0 %v1935_v37, %s5386_s20  ;;  %v1940_v36 = vsel %vm442_vm1, %v1937_v14, %v1939_v45  ;;  %v1946_v37 = vrot.slane %v6977_v59, 1  ;;  %v1947_v45 = vrot.slane %v6979_v54, 1  ;;  %v1949_v54 = vrot.slane %v6991_v27, 1  ;;  %v7033_v27 = vld [vmem:[#allocation2 + $0x150] sm:$0xff] }
 0x1cf   : > { %v1943_v51 = vsel %vm442_vm1, %v1941_v49, %v1942_v35  ;;  %v7000_v49 = vld [vmem:[#allocation2 + $0x128] sm:$0xff]  ;;  %9677 = vst [vmem:[#allocation84_spill] sm:$0xff] %v7033_v27 }
 0x1d0   : > { %v1222_v11 = vpop.permute.xlu0 %1221  ;;  %9671 = vst [vmem:[#allocation75_spill] sm:$0xff] %v7000_v49  ;;  %v1952_v55 = vrot.slane %v7000_v49, 1 }
 0x1d1   : > { %1997 = vrot.lane.b32.xlu1 %v1923_v21, %s5386_s20  ;;  %v6981_v21 = vpop.permute.xlu2 %1237 }
 0x1d2   : > { %9669 = vst [vmem:[#allocation77_spill] sm:$0xff] %v6981_v21 }
 0x1d3   : > { %v6971_v8 = vpop.permute.xlu1 %1099 }
 0x1d4   : > { %9666 = vst [vmem:[#allocation74_spill] sm:$0xff] %v6971_v8  ;;  %2011 = vrot.lane.b32.xlu2 %v1940_v36, %s5386_s20  ;;  %v6985_v8 = vld [vmem:[#allocation2 + $0xd8] sm:$0xff]  ;;  %v1948_v36 = vsel %vm442_vm1, %v1946_v37, %v1947_v45 }
 0x1d5   : > { %v1936_v29 = vrot.slane %v6985_v8, 1 }
 0x1d6   : > { %2013 = vrot.lane.b32.xlu0 %v1943_v51, %s5386_s20  ;;  %v7011_v51 = vld [vmem:[#allocation2 + $0x100] sm:$0x3] }
 0x1d7   : > { %v1938_v24 = vsel %vm442_vm1, %v1936_v29, %v1937_v14  ;;  %9674 = vst [vmem:[#allocation95_spill] sm:$0xff] %v7011_v51  ;;  %v1944_v29 = vrot.slane %v7011_v51, 1  ;;  %v5306_v14 = vld [vmem:[#allocation2 + $0x30] sm:$0xff]  ;;  %v7035_v51 = vld [vmem:[#allocation2 + $0x158] sm:$0xff] }
 0x1d8   : > { %v7005_v21 = vpop.permute.xlu0 %1227  ;;  %9678 = vst [vmem:[#allocation51_spill] sm:$0xff] %v7035_v51 }
 0x1d9   : > { %2003 = vrot.lane.b32.xlu1 %v1930_v56, %s5386_s20  ;;  %v7002_v56 = vld [vmem:[#allocation2 + $0x130] sm:$0x3]  ;;  %v7009_v46 = vpop.permute.xlu2 %1243 }
 0x1da   : > { %9672 = vst [vmem:[#allocation88_spill] sm:$0xff] %v7002_v56  ;;  %v1954_v37 = vrot.slane %v7002_v56, 1 }
 0x1db   : > { %v1218_v34 = vpop.permute.xlu1 %1217  ;;  %9673 = vst [vmem:[#allocation53_spill] sm:$0xff] %v7009_v46 }
 0x1dc   : > { %v1344_v59 = vsel %vm828_vm5, %v1312_v62, %v1218_v34  ;;  %2017 = vrot.lane.b32.xlu2 %v1948_v36, %s5386_s20  ;;  %v1950_v62 = vsel %vm442_vm1, %v1947_v45, %v1949_v54  ;;  %v7017_v34 = vld [vmem:[#allocation2 + $0x138] sm:$0xff]  ;;  %v1313_v36 = vsel %vm225_vm0, %v5306_v14, %v6640_v18  ;;  %v1955_v49 = vsel %vm442_vm1, %v1952_v55, %v1954_v37  ;;  %v5141_v54 = vld [vmem:[%s9314_s1 + $0x28] sm:$0xf] }
 0x1dd   : > { %5076 = vmatmul.msk.f32.gmra.mxu0 %vm1378_vm6, %v1344_v59  ;;  %9675 = vst [vmem:[#allocation31_spill] sm:$0xff] %v7017_v34  ;;  %v7019_v59 = vld [vmem:[#allocation2 + $0x140] sm:$0xff]  ;;  %v1956_v45 = vrot.slane %v7017_v34, 1  ;;  %5142 = vmatpush.msk.msrb.mxu2 %vm1475_vm4, %v5141_v54  ;;  %v1945_v37 = vsel %vm442_vm1, %v1942_v35, %v1944_v29  ;;  %v1962_v14 = vrot.slane %v7035_v51, 1  ;;  %v5307_v34 = vld [vmem:[#allocation2 + $0x38] sm:$0xff] }
 0x1de   : > { %9676 = vst [vmem:[#allocation86_spill] sm:$0xff] %v7019_v59  ;;  %2019 = vrot.lane.b32.xlu0 %v1950_v62, %s5386_s20  ;;  %v1957_v56 = vrot.slane %v7019_v59, 1  ;;  %v7043_v62 = vld [vmem:[#allocation2 + $0x120] sm:$0xff]  ;;  %v1314_v35 = vsel %vm225_vm0, %v5307_v34, %v6683_v38  ;;  %v7064_v51 = vld [vmem:[#allocation2 + $0x178] sm:$0x3] }
 0x1df   : > { %9679 = vst [vmem:[#allocation82_spill] sm:$0xff] %v7043_v62  ;;  %v7051_v54 = vld [vmem:[#allocation2 + $0x160] sm:$0x3]  ;;  %v7071_v34 = vld [vmem:[#allocation2 + $0x148] sm:$0x3] }
 0x1e0   : > { %v7039_v18 = vpop.permute.xlu0 %1233  ;;  %9680 = vst [vmem:[#allocation80_spill] sm:$0xff] %v7051_v54 }
 0x1e1   : > { %2009 = vrot.lane.b32.xlu1 %v1938_v24, %s5386_s20  ;;  %v1345_v24 = vsel %vm828_vm5, %v1313_v36, %v6864_v52  ;;  %v1961_v52 = vrot.slane %v7033_v27, 1  ;;  %v1958_v36 = vsel %vm442_vm1, %v1956_v45, %v1957_v56  ;;  %v7049_v59 = vpop.permute.xlu2 %1249  ;;  %v1346_v45 = vsel %vm828_vm5, %v1314_v35, %v1222_v11  ;;  %v7062_v27 = vld [vmem:[#allocation2 + $0x170] sm:$0xff]  ;;  %9681 = vst [vmem:[#allocation35_spill] sm:$0xff] %v7064_v51 }
 0x1e2   : > { %v1969_v11 = vrot.slane %v7064_v51, 1  ;;  %v1959_v35 = vrot.slane %v7071_v34, 1  ;;  %v7087_v51 = vld [vmem:[#allocation2 + $0x198] sm:$0xff] }
 0x1e3   : > { %v1224_v46 = vpop.permute.xlu1 %1223  ;;  %v1963_v29 = vsel %vm442_vm1, %v1961_v52, %v1962_v14  ;;  %v1967_v52 = vrot.slane %v7062_v27, 1  ;;  %9683 = vst [vmem:[#allocation98_spill] sm:$0xff] %v7087_v51 }
 0x1e4   : > { %2023 = vrot.lane.b32.xlu2 %v1955_v49, %s5386_s20 }
 0x1e5   : > { %5077 = vmatmul.msk.f32.gmra.mxu0 %vm1378_vm6, %v1345_v24  ;;  %v1951_v24 = vrot.slane %v7043_v62, 1 }
 0x1e6   : > { %2025 = vrot.lane.b32.xlu0 %v1958_v36, %s5386_s20 }
 0x1e7   : > { %v1953_v38 = vsel %vm442_vm1, %v1951_v24, %v1952_v55  ;;  %v1970_v24 = vsel %vm442_vm1, %v1967_v52, %v1969_v11 }
 0x1e8   : > { %v7067_v62 = vpop.permute.xlu0 %1239 }
 0x1e9   : > { %2015 = vrot.lane.b32.xlu1 %v1945_v37, %s5386_s20  ;;  %v1964_v37 = vrot.slane %v7051_v54, 1  ;;  %9682 = vst [vmem:[#allocation78_spill] sm:$0xff] %v7067_v62  ;;  %v5308_v54 = vld [vmem:[#allocation2 + $0x48] sm:$0xff]  ;;  %v7080_v62 = vpop.permute.xlu2 %1255 }
 0x1eb   : > { %v7056_v49 = vpop.permute.xlu1 %1229  ;;  %v1965_v36 = vsel %vm442_vm1, %v1962_v14, %v1964_v37  ;;  %v7089_v14 = vld [vmem:[#allocation2 + $0x1a0] sm:$0xff] }
 0x1ec   : > { %2029 = vrot.lane.b32.xlu2 %v1963_v29, %s5386_s20  ;;  %9684 = vst [vmem:[#allocation56_spill] sm:$0xff] %v7089_v14  ;;  %v1977_v11 = vrot.slane %v7089_v14, 1 }
 0x1ed   : > { %5078 = vmatmul.msk.f32.gmra.mxu0 %vm1378_vm6, %v1346_v45  ;;  %v1315_v45 = vsel %vm225_vm0, %v5308_v54, %v6568_v3  ;;  %v1960_v3 = vsel %vm442_vm1, %v1957_v56, %v1959_v35  ;;  %v7096_v54 = vld [vmem:[#allocation2 + $0x168] sm:$0xff] }
 0x1ee   : > { %2031 = vrot.lane.b32.xlu0 %v1965_v36, %s5386_s20  ;;  %v1347_v29 = vsel %vm828_vm5, %v1315_v45, %v1224_v46  ;;  %v7101_v46 = vld [vmem:[#allocation2 + $0x1a8] sm:$0x3]  ;;  %v1966_v36 = vrot.slane %v7096_v54, 1  ;;  %v5309_v45 = vld [vmem:[#allocation2 + $0x50] sm:$0xff] }
 0x1ef   : > { %9686 = vst [vmem:[#allocation81_spill] sm:$0xff] %v7101_v46 }
 0x1f0   : > { %v7092_v37 = vpop.permute.xlu0 %1245  ;;  %v1968_v14 = vsel %vm442_vm1, %v1966_v36, %v1967_v52 }
 0x1f1   : > { %2021 = vrot.lane.b32.xlu1 %v1953_v38, %s5386_s20  ;;  %9685 = vst [vmem:[#allocation83_spill] sm:$0xff] %v7092_v37  ;;  %v1976_v38 = vrot.slane %v7087_v51, 1 }
 0x1f3   : > { %v7082_v55 = vpop.permute.xlu1 %1235  ;;  %v1978_v56 = vsel %vm442_vm1, %v1976_v38, %v1977_v11  ;;  %v2080_v38 = vrot.slane %v6797_v23, 2 }
 0x1f4   : > { %2035 = vrot.lane.b32.xlu2 %v1970_v24, %s5386_s20  ;;  %v1979_v24 = vrot.slane %v7101_v46, 1  ;;  %v5311_v46 = vld [vmem:[#allocation2 + $0x60] sm:$0xff] }
 0x1f5   : > { %5079 = vmatmul.msk.f32.gmra.mxu0 %vm1378_vm6, %v1347_v29  ;;  %v1316_v29 = vsel %vm225_vm0, %v5309_v45, %v6669_v7  ;;  %v7119_v7 = vld [vmem:[#allocation2 + $0x190] sm:$0x3]  ;;  %v1317_v52 = vsel %vm225_vm0, %v5311_v46, %v6714_v17 }
 0x1f6   : > { %2037 = vrot.lane.b32.xlu0 %v6536_v0, %s5386_s20  ;;  %v1348_v35 = vsel %vm828_vm5, %v1316_v29, %v6897_v22  ;;  %v2078_v0 = vrot.slane %v6780_v2, 2  ;;  %v1980_v45 = vsel %vm442_vm1, %v1977_v11, %v1979_v24  ;;  %v1974_v22 = vrot.slane %v7119_v7, 1  ;;  %v5310_v29 = vld [vmem:[#allocation2 + $0xd8] sm:$0xff] }
 0x1f7   : > { %v2082_v11 = vrot.slane %v6859_v31, 2  ;;  %v2083_v24 = vrot.slane %v6810_v5, 2 }
 0x1f8   : > { %v1252_v51 = vpop.permute.xlu0 %1251  ;;  %v1975_v17 = vsel %vm442_vm1, %v6485_v12, %v1974_v22 }
 0x1f9   : > { %2027 = vrot.lane.b32.xlu1 %v1960_v3, %s5386_s20  ;;  %v7114_v3 = vpop.permute.xlu2 %1261 }
 0x1fb   : > { %v7106_v37 = vpop.permute.xlu1 %1241 }
 0x1fc   : > { %2041 = vrot.lane.b32.xlu2 %v1978_v56, %s5386_s20  ;;  %v2081_v56 = vsel %vm619_vm3, %v2078_v0, %v2080_v38  ;;  %v2087_v38 = vrot.slane %v6825_v33, 2 }
 0x1fd   : > { %5080 = vmatmul.msk.f32.gmra.mxu0 %vm1378_vm6, %v1348_v35  ;;  %v1327_v35 = vsel %vm225_vm0, %v5310_v29, %v6674_v26  ;;  %v2077_v29 = vrot.slane %v6778_v10, 2 }
 0x1fe   : > { %2043 = vrot.lane.b32.xlu0 %v1980_v45, %s5386_s20  ;;  %v2084_v45 = vsel %vm619_vm3, %v2082_v11, %v2083_v24  ;;  %v2090_v11 = vrot.slane %v6891_v20, 2  ;;  %v2085_v20 = vrot.slane %v6812_v13, 2  ;;  %v2097_v13 = vrot.slane %v6926_v50, 2 }
 0x200   : > { %v7139_v26 = vpop.permute.xlu0 %1257 }
 0x201   : > { %2033 = vrot.lane.b32.xlu1 %v1968_v14, %s5386_s20  ;;  %v1349_v14 = vsel %vm828_vm5, %v1317_v52, %v7005_v21  ;;  %v7144_v46 = vpop.permute.xlu2 %1267  ;;  %v2088_v21 = vrot.slane %v6827_v43, 2 }
 0x203   : > { %v1248_v36 = vpop.permute.xlu1 %1247 }
 0x204   : > { %v1359_v23 = vsel %vm828_vm5, %v1327_v35, %v1248_v36  ;;  %2159 = vrot.lane.b32.xlu2 %v2081_v56, %s5387_s25  ;;  %v5312_v35 = vld [vmem:[#allocation2 + $0x68] sm:$0xff]  ;;  %v5313_v36 = vld [vmem:[#allocation2 + $0xe0] sm:$0xff]  ;;  %v2089_v56 = vsel %vm619_vm3, %v2087_v38, %v2088_v21  ;;  %v2095_v38 = vrot.slane %v6867_v4, 2 }
 0x205   : > { %5091 = vmatmul.msk.f32.vlgmr.msra.gmra.mxu2 %vm1378_vm6, %v1359_v23  ;;  %5081 = vmatmul.msk.f32.gmra.mxu0 %vm1378_vm6, %v1349_v14  ;;  %v1318_v52 = vsel %vm225_vm0, %v5312_v35, %v6591_v44  ;;  %v1328_v12 = vsel %vm225_vm0, %v5313_v36, %v6783_v58  ;;  %v2079_v58 = vsel %vm619_vm3, %v2077_v29, %v2078_v0 }
 0x206   : > { %2161 = vrot.lane.b32.xlu0 %v2084_v45, %s5387_s25  ;;  %v1360_v23 = vsel %vm828_vm5, %v1328_v12, %v7049_v59  ;;  %v1350_v14 = vsel %vm828_vm5, %v1318_v52, %v7056_v49  ;;  %v2091_v59 = vsel %vm619_vm3, %v2088_v21, %v2090_v11  ;;  %v5314_v49 = vld [vmem:[#allocation2 + $0x78] sm:$0xff]  ;;  %v5315_v52 = vld [vmem:[#allocation2 + $0xf0] sm:$0xff]  ;;  %v2098_v12 = vrot.slane %v6882_v30, 2 }
 0x207   : > { %v1319_v35 = vsel %vm225_vm0, %v5314_v49, %v6694_v53  ;;  %v1329_v0 = vsel %vm225_vm0, %v5315_v52, %v6833_v19  ;;  %v2086_v19 = vsel %vm619_vm3, %v2083_v24, %v2085_v20  ;;  %v2105_v52 = vrot.slane %v6960_v57, 2 }
 0x208   : > { %v7164_v44 = vpop.permute.xlu0 %1263  ;;  %v1361_v21 = vsel %vm828_vm5, %v1329_v0, %v1252_v51  ;;  %v1351_v36 = vsel %vm828_vm5, %v1319_v35, %v6943_v42  ;;  %v2103_v51 = vrot.slane %v6901_v60, 2  ;;  %v2099_v42 = vsel %vm619_vm3, %v2097_v13, %v2098_v12 }
 0x209   : > { %2039 = vrot.lane.b32.xlu1 %v1975_v17, %s5386_s20  ;;  %v2093_v17 = vrot.slane %v6846_v28, 2  ;;  %v7171_v45 = vpop.permute.xlu2 %1273  ;;  %v2108_v0 = vrot.slane %v6919_v47, 2  ;;  %v2100_v57 = vrot.slane %v6884_v16, 2 }
 0x20b   : > { %v1254_v22 = vpop.permute.xlu1 %1253  ;;  %v2096_v4 = vsel %vm619_vm3, %v2093_v17, %v2095_v38 }
 0x20c   : > { %2165 = vrot.lane.b32.xlu2 %v2089_v56, %s5387_s25  ;;  %v2102_v56 = vrot.slane %v6899_v39, 2 }
 0x20d   : > { %5092 = vmatmul.msk.f32.gmra.mxu2 %vm1378_vm6, %v1360_v23  ;;  %5082 = vmatmul.msk.f32.gmra.mxu0 %vm1378_vm6, %v1350_v14  ;;  %v2092_v23 = vrot.slane %v6844_v32, 2  ;;  %v5316_v14 = vld [vmem:[#allocation2 + $0xf8] sm:$0xff] }
 0x20e   : > { %2167 = vrot.lane.b32.xlu0 %v2091_v59, %s5387_s25  ;;  %v1330_v11 = vsel %vm225_vm0, %v5316_v14, %v6698_v9  ;;  %v2104_v20 = vsel %vm619_vm3, %v2102_v56, %v2103_v51  ;;  %v2112_v56 = vrot.slane %v6985_v8, 2 }
 0x20f   : > { %v1362_v49 = vsel %vm828_vm5, %v1330_v11, %v1254_v22  ;;  %v2106_v22 = vsel %vm619_vm3, %v2103_v51, %v2105_v52  ;;  %v2107_v11 = vrot.slane %v6917_v6, 2 }
 0x210   : > { %v7190_v53 = vpop.permute.xlu0 %1269 }
 0x211   : > { %2157 = vrot.lane.b32.xlu1 %v2079_v58, %s5387_s25  ;;  %v5317_v58 = vld [vmem:[#allocation2 + $0x80] sm:$0xff]  ;;  %v7203_v38 = vpop.permute.xlu2 %1981 }
 0x212   : > { %v1320_v24 = vsel %vm225_vm0, %v5317_v58, %v6741_v48  ;;  %v2094_v48 = vsel %vm619_vm3, %v2092_v23, %v2093_v17  ;;  %v2118_v23 = vrot.slane %v6968_v63, 2  ;;  %v5320_v58 = vld [vmem:[#allocation2 + $0x98] sm:$0xff] }
 0x213   : > { %v7179_v29 = vpop.permute.xlu1 %1259  ;;  %v1352_v35 = vsel %vm828_vm5, %v1320_v24, %v7039_v18  ;;  %v5318_v18 = vld [vmem:[#allocation2 + $0x90] sm:$0xff]  ;;  %v1322_v24 = vsel %vm225_vm0, %v5320_v58, %v6725_v40  ;;  %v9694_v58 = vld [vmem:[#allocation61_spill] sm:$0xff] }
 0x214   : > { %2171 = vrot.lane.b32.xlu2 %v2096_v4, %s5387_s25  ;;  %v2110_v4 = vrot.slane %v6932_v1, 2 }
 0x215   : > { %5093 = vmatmul.msk.f32.gmra.mxu2 %vm1378_vm6, %v1361_v21  ;;  %5083 = vmatmul.msk.f32.gmra.mxu0 %vm1378_vm6, %v1351_v36  ;;  %v1321_v21 = vsel %vm225_vm0, %v5318_v18, %v6620_v25  ;;  %v5319_v36 = vld [vmem:[#allocation2 + $0x108] sm:$0xff]  ;;  %v2113_v25 = vrot.slane %v6949_v41, 2 }
 0x216   : > { %2173 = vrot.lane.b32.xlu0 %v2099_v42, %s5387_s25  ;;  %v1331_v17 = vsel %vm225_vm0, %v5319_v36, %v6815_v15  ;;  %v2111_v1 = vsel %vm619_vm3, %v2108_v0, %v2110_v4  ;;  %v1353_v16 = vsel %vm828_vm5, %v1321_v21, %v7082_v55  ;;  %v5140_v15 = vld [vmem:[%s9314_s1 + $0x20] sm:$0xff]  ;;  %v2117_v55 = vrot.slane %v6966_v61, 2 }
 0x217   : > { %2434 = vmatpush.msrb.mxu2 %v5140_v15  ;;  %v2114_v14 = vsel %vm619_vm3, %v2112_v56, %v2113_v25  ;;  %v9688_v4 = vld [vmem:[#allocation77_spill] sm:$0xff]  ;;  %v2109_v21 = vsel %vm619_vm3, %v2107_v11, %v2108_v0  ;;  %v9692_v56 = vld [vmem:[#allocation79_spill] sm:$0xff] }
 0x218   : > { %v7215_v9 = vpop.permute.xlu0 %1275  ;;  %v2119_v52 = vsel %vm619_vm3, %v2117_v55, %v2118_v23  ;;  %v2115_v15 = vrot.slane %v9692_v56, 2  ;;  %v9693_v55 = vld [vmem:[#allocation65_spill] sm:$0xff]  ;;  %v9695_v0 = vld [vmem:[#allocation43_spill] sm:$0xff] }
 0x219   : > { %2163 = vrot.lane.b32.xlu1 %v2086_v19, %s5387_s25  ;;  %v1363_v19 = vsel %vm828_vm5, %v1331_v17, %v7080_v62  ;;  %v7241_v51 = vpop.permute.xlu2 %1987  ;;  %v2101_v62 = vsel %vm619_vm3, %v2098_v12, %v2100_v57  ;;  %v9689_v57 = vld [vmem:[#allocation95_spill] sm:$0xff]  ;;  %v9690_v17 = vld [vmem:[#allocation62_spill] sm:$0xff]  ;;  %v1323_v11 = vsel %vm225_vm0, %v9695_v0, %v9694_v58  ;;  %v9704_v0 = vld [vmem:[#allocation20_spill] sm:$0xff] }
 0x21a   : > { %v2120_v18 = vrot.slane %v9689_v57, 2  ;;  %v2116_v57 = vsel %vm619_vm3, %v2113_v25, %v2115_v15  ;;  %v9703_v58 = vld [vmem:[#allocation63_spill] sm:$0xff]  ;;  %v5323_v15 = vld [vmem:[#allocation2 + $0x128] sm:$0xff] }
 0x21b   : > { %v7205_v59 = vpop.permute.xlu1 %1265 }
 0x21c   : > { %2177 = vrot.lane.b32.xlu2 %v2104_v20, %s5387_s25  ;;  %v5321_v20 = vld [vmem:[#allocation2 + $0x110] sm:$0xff] }
 0x21d   : > { %5094 = vmatmul.msk.f32.gmra.mxu2 %vm1378_vm6, %v1362_v49  ;;  %5084 = vmatmul.msk.f32.gmra.mxu0 %vm1378_vm6, %v1352_v35  ;;  %v9687_v49 = vld [vmem:[#allocation23_spill] sm:$0xff] }
 0x21e   : > { %2179 = vrot.lane.b32.xlu0 %v2106_v22, %s5387_s25  ;;  %v1332_v12 = vsel %vm225_vm0, %v5321_v20, %v9687_v49  ;;  %v1354_v22 = vsel %vm828_vm5, %v1322_v24, %v9688_v4  ;;  %v9696_v49 = vld [vmem:[#allocation78_spill] sm:$0xff]  ;;  %v9698_v4 = vld [vmem:[#allocation75_spill] sm:$0xff] }
 0x220   : > { %v7245_v42 = vpop.permute.xlu0 %1983 }
 0x221   : > { %2169 = vrot.lane.b32.xlu1 %v2094_v48, %s5387_s25  ;;  %v1364_v48 = vsel %vm828_vm5, %v1332_v12, %v7139_v26  ;;  %v7273_v36 = vpop.permute.xlu2 %1993  ;;  %v9691_v26 = vld [vmem:[#allocation32_spill] sm:$0xff]  ;;  %v1355_v12 = vsel %vm828_vm5, %v1323_v11, %v9696_v49  ;;  %v1334_v11 = vsel %vm225_vm0, %v5323_v15, %v9704_v0 }
 0x222   : > { %v1366_v49 = vsel %vm828_vm5, %v1334_v11, %v7114_v3  ;;  %v9708_v0 = vld [vmem:[#allocation60_spill] sm:$0xff] }
 0x223   : > { %v7228_v13 = vpop.permute.xlu1 %1271 }
 0x224   : > { %2183 = vrot.lane.b32.xlu2 %v2111_v1, %s5387_s25  ;;  %v2123_v1 = vrot.slane %v9690_v17, 2 }
 0x225   : > { %5095 = vmatmul.msk.f32.gmra.mxu2 %vm1378_vm6, %v1363_v19  ;;  %5085 = vmatmul.msk.f32.gmra.mxu0 %vm1378_vm6, %v1353_v16  ;;  %v2125_v19 = vrot.slane %v9691_v26, 2  ;;  %v2121_v16 = vsel %vm619_vm3, %v2118_v23, %v2120_v18 }
 0x226   : > { %2185 = vrot.lane.b32.xlu0 %v2114_v14, %s5387_s25 }
 0x227   : > { %v2126_v20 = vsel %vm619_vm3, %v2123_v1, %v2125_v19 }
 0x228   : > { %v7269_v40 = vpop.permute.xlu0 %1989 }
 0x229   : > { %2175 = vrot.lane.b32.xlu1 %v2101_v62, %s5387_s25  ;;  %v5322_v62 = vld [vmem:[#allocation2 + $0x120] sm:$0xff]  ;;  %v7304_v56 = vpop.permute.xlu2 %1999 }
 0x22a   : > { %v1333_v14 = vsel %vm225_vm0, %v5322_v62, %v9693_v55  ;;  %v9701_v62 = vld [vmem:[#allocation30_spill] sm:$0xff] }
 0x22b   : > { %v7258_v35 = vpop.permute.xlu1 %1277  ;;  %v1365_v23 = vsel %vm828_vm5, %v1333_v14, %v7179_v29  ;;  %v9700_v29 = vld [vmem:[#allocation86_spill] sm:$0xff]  ;;  %v2122_v55 = vrot.slane %v9701_v62, 2  ;;  %v9702_v14 = vld [vmem:[#allocation48_spill] sm:$0xff] }
 0x22c   : > { %2189 = vrot.lane.b32.xlu2 %v2119_v52, %s5387_s25  ;;  %v9697_v52 = vld [vmem:[#allocation82_spill] sm:$0xff]  ;;  %v2133_v19 = vrot.slane %v9700_v29, 2  ;;  %v1324_v25 = vsel %vm225_vm0, %v9703_v58, %v9702_v14  ;;  %v9705_v14 = vld [vmem:[#allocation51_spill] sm:$0xff]  ;;  %v9706_v58 = vld [vmem:[#allocation80_spill] sm:$0xff] }
 0x22d   : > { %5096 = vmatmul.msk.f32.gmra.mxu2 %vm1378_vm6, %v1364_v48  ;;  %5086 = vmatmul.msk.f32.gmra.mxu0 %vm1378_vm6, %v1354_v22  ;;  %v2127_v48 = vrot.slane %v9697_v52, 2  ;;  %v2128_v22 = vrot.slane %v9698_v4, 2 }
 0x22e   : > { %2191 = vrot.lane.b32.xlu0 %v2121_v16, %s5387_s25 }
 0x22f   : > { %v2129_v16 = vsel %vm619_vm3, %v2127_v48, %v2128_v22  ;;  %v2135_v48 = vrot.slane %v7071_v34, 2 }
 0x230   : > { %v7299_v18 = vpop.permute.xlu0 %1995 }
 0x231   : > { %2181 = vrot.lane.b32.xlu1 %v2109_v21, %s5387_s25  ;;  %v9699_v21 = vld [vmem:[#allocation31_spill] sm:$0xff]  ;;  %v2136_v15 = vsel %vm619_vm3, %v2133_v19, %v2135_v48 }
 0x232   : > { %v2132_v26 = vrot.slane %v9699_v21, 2 }
 0x233   : > { %v7285_v24 = vpop.permute.xlu1 %1985 }
 0x234   : > { %2195 = vrot.lane.b32.xlu2 %v2126_v20, %s5387_s25 }
 0x235   : > { %5097 = vmatmul.msk.f32.gmra.mxu2 %vm1378_vm6, %v1365_v23  ;;  %5087 = vmatmul.msk.f32.gmra.mxu0 %vm1378_vm6, %v1355_v12  ;;  %v2134_v23 = vsel %vm619_vm3, %v2132_v26, %v2133_v19  ;;  %v1356_v12 = vsel %vm828_vm5, %v1324_v25, %v7106_v37  ;;  %v2140_v26 = vrot.slane %v9706_v58, 2  ;;  %v9707_v37 = vld [vmem:[#allocation88_spill] sm:$0xff]  ;;  %v5324_v25 = vld [vmem:[#allocation2 + $0xc0] sm:$0xff]  ;;  %v2142_v58 = vrot.slane %v7096_v54, 2 }
 0x236   : > { %2197 = vrot.lane.b32.xlu0 %v2129_v16, %s5387_s25  ;;  %v2138_v16 = vrot.slane %v9705_v14, 2  ;;  %v2130_v34 = vrot.slane %v9707_v37, 2  ;;  %v1325_v11 = vsel %vm225_vm0, %v5324_v25, %v9708_v0  ;;  %v2143_v37 = vrot.slane %v7062_v27, 2  ;;  %v5326_v0 = vld [vmem:[#allocation2 + $0x140] sm:$0xff]  ;;  %v9713_v27 = vld [vmem:[#allocation64_spill] sm:$0xff] }
 0x238   : > { %v7330_v3 = vpop.permute.xlu0 %2001  ;;  %v2141_v19 = vsel %vm619_vm3, %v2138_v16, %v2140_v26  ;;  %v2131_v25 = vsel %vm619_vm3, %v2128_v22, %v2130_v34  ;;  %v2144_v26 = vsel %vm619_vm3, %v2142_v58, %v2143_v37  ;;  %v9714_v34 = vld [vmem:[#allocation83_spill] sm:$0xff] }
 0x239   : > { %2187 = vrot.lane.b32.xlu1 %v2116_v57, %s5387_s25  ;;  %v2124_v57 = vsel %vm619_vm3, %v2122_v55, %v2123_v1  ;;  %v9709_v1 = vld [vmem:[#allocation72_spill] sm:$0xff] }
 0x23b   : > { %v7313_v20 = vpop.permute.xlu1 %1991 }
 0x23c   : > { %2201 = vrot.lane.b32.xlu2 %v2134_v23, %s5387_s25  ;;  %v7337_v23 = vpop.permute.xlu2 %2005 }
 0x23d   : > { %5098 = vmatmul.msk.f32.gmra.mxu2 %vm1378_vm6, %v1366_v49  ;;  %5088 = vmatmul.msk.f32.gmra.mxu0 %vm1378_vm6, %v1356_v12  ;;  %v5325_v49 = vld [vmem:[#allocation2 + $0x138] sm:$0xff] }
 0x23e   : > { %v1335_v55 = vsel %vm225_vm0, %v5325_v49, %v9709_v1  ;;  %2203 = vrot.lane.b32.xlu0 %v2136_v15, %s5387_s25  ;;  %v5327_v1 = vld [vmem:[#allocation2 + $0xc8] sm:$0xff] }
 0x23f   : > { %v1367_v48 = vsel %vm828_vm5, %v1335_v55, %v7164_v44  ;;  %v9711_v44 = vld [vmem:[#allocation84_spill] sm:$0xff]  ;;  %v1326_v55 = vsel %vm225_vm0, %v5327_v1, %v9713_v27 }
 0x240   : > { %v2137_v15 = vrot.slane %v9711_v44, 2  ;;  %v9715_v44 = vld [vmem:[#allocation68_spill] sm:$0xff] }
 0x241   : > { %2193 = vrot.lane.b32.xlu1 %v2124_v57, %s5387_s25  ;;  %v9710_v57 = vld [vmem:[#allocation53_spill] sm:$0xff] }
 0x242   : > { %v1357_v14 = vsel %vm828_vm5, %v1325_v11, %v9710_v57  ;;  %v9712_v11 = vld [vmem:[#allocation52_spill] sm:$0xff]  ;;  %v7362_v57 = vpop.permute.xlu0 %2007 }
 0x243   : > { %v7339_v12 = vpop.permute.xlu1 %1997  ;;  %v1336_v49 = vsel %vm225_vm0, %v5326_v0, %v9712_v11  ;;  %v9717_v11 = vld [vmem:[#allocation81_spill] sm:$0xff] }
 0x244   : > { %2207 = vrot.lane.b32.xlu2 %v2141_v19, %s5387_s25  ;;  %v1368_v22 = vsel %vm828_vm5, %v1336_v49, %v7205_v59  ;;  %v1358_v19 = vsel %vm828_vm5, %v1326_v55, %v9714_v34  ;;  %v7370_v58 = vpop.permute.xlu2 %2011  ;;  %v2155_v59 = vrot.slane %v9717_v11, 2  ;;  %v9718_v49 = vld [vmem:[#allocation55_spill] sm:$0xff] }
 0x245   : > { %5099 = vmatmul.msk.f32.gmra.mxu2 %vm1378_vm6, %v1367_v48  ;;  %5089 = vmatmul.msk.f32.gmra.mxu0 %vm1378_vm6, %v1357_v14  ;;  %v2150_v14 = vrot.slane %v7119_v7, 2  ;;  %v9719_v7 = vld [vmem:[#allocation35_spill] sm:$0xff] }
 0x246   : > { %2209 = vrot.lane.b32.xlu0 %v2144_v26, %s5387_s25  ;;  %v9716_v26 = vld [vmem:[#allocation56_spill] sm:$0xff]  ;;  %v2145_v27 = vrot.slane %v9719_v7, 2  ;;  %v5328_v55 = vld [vmem:[#allocation2 + $0x150] sm:$0xff] }
 0x247   : > { %v2153_v0 = vrot.slane %v9716_v26, 2  ;;  %v2151_v1 = vsel %vm619_vm3, %v9718_v49, %v2150_v14  ;;  %v9721_v26 = vld [vmem:[#allocation98_spill] sm:$0xff]  ;;  %v9722_v49 = vld [vmem:[#allocation44_spill] sm:$0xff] }
 0x248   : > { %v2146_v14 = vsel %vm619_vm3, %v2143_v37, %v2145_v27  ;;  %v2152_v11 = vrot.slane %v9721_v26, 2  ;;  %v9727_v26 = vld [vmem:[#allocation25_spill] sm:$0xff] }
 0x249   : > { %2199 = vrot.lane.b32.xlu1 %v2131_v25, %s5387_s25  ;;  %v2139_v25 = vsel %vm619_vm3, %v2137_v15, %v2138_v16  ;;  %v2156_v16 = vsel %vm619_vm3, %v2153_v0, %v2155_v59 }
 0x24a   : > { %v2154_v37 = vsel %vm619_vm3, %v2152_v11, %v2153_v0  ;;  %v9726_v0 = vld [vmem:[#allocation76_spill] sm:$0xff] }
 0x24b   : > { %v7360_v48 = vpop.permute.xlu1 %2003  ;;  %v1340_v11 = vsel %vm225_vm0, %v9727_v26, %v9726_v0  ;;  %v9731_v0 = vld [vmem:[#allocation66_spill] sm:$0xff] }
 0x24c   : > { %2213 = vrot.lane.b32.xlu2 %v9715_v44, %s5387_s25  ;;  %v7391_v44 = vpop.permute.xlu0 %2013 }
 0x24d   : > { %5100 = vmatmul.msk.f32.gmra.mxu2 %vm1378_vm6, %v1368_v22  ;;  %5090 = vmatmul.msk.f32.gmra.mxu0 %vm1378_vm6, %v1358_v19  ;;  %v9720_v22 = vld [vmem:[#allocation71_spill] sm:$0xff] }
 0x24e   : > { %v1337_v34 = vsel %vm225_vm0, %v5328_v55, %v9720_v22  ;;  %2215 = vrot.lane.b32.xlu0 %v2151_v1, %s5387_s25  ;;  %v9723_v1 = vld [vmem:[#allocation70_spill] sm:$0xff]  ;;  %v9724_v22 = vld [vmem:[#allocation69_spill] sm:$0xff] }
 0x24f   : > { %v1369_v15 = vsel %vm828_vm5, %v1337_v34, %v7144_v46  ;;  %v1338_v59 = vsel %vm225_vm0, %v9723_v1, %v9722_v49  ;;  %v9725_v34 = vld [vmem:[#allocation73_spill] sm:$0xff] }
 0x250   : > { %v1370_v46 = vsel %vm828_vm5, %v1338_v59, %v7190_v53  ;;  %v1372_v59 = vsel %vm828_vm5, %v1340_v11, %v7171_v45  ;;  %v7448_v45 = vld [vmem:[#allocation2 + $0x188] sm:$0xff] }
 0x251   : > { %2205 = vrot.lane.b32.xlu1 %v2139_v25, %s5387_s25  ;;  %v7396_v25 = vpop.permute.xlu2 %2017  ;;  %9730 = vst [vmem:[#allocation6_spill] sm:$0xff] %v7448_v45  ;;  %v1342_v26 = vsel %vm225_vm0, %v7448_v45, %v9731_v0 }
 0x253   : > { %v7385_v19 = vpop.permute.xlu1 %2009 }
 0x254   : > { %2219 = vrot.lane.b32.xlu2 %v2156_v16, %s5387_s25  ;;  %v7409_v27 = vpop.permute.xlu0 %2019  ;;  %v1339_v16 = vsel %vm225_vm0, %v9725_v34, %v9724_v22 }
 0x255   : > { %5101 = vmatmul.msk.f32.gmra.mxu2 %vm1378_vm6, %v1369_v15 }
 0x259   : > { %2211 = vrot.lane.b32.xlu1 %v2146_v14, %s5387_s25  ;;  %v7411_v55 = vpop.permute.xlu2 %2023  ;;  %v1371_v14 = vsel %vm828_vm5, %v1339_v16, %v7228_v13  ;;  %v9729_v13 = vld [vmem:[#allocation74_spill] sm:$0xff] }
 0x25b   : > { %v7403_v7 = vpop.permute.xlu1 %2015 }
 0x25c   : > { %v7422_v53 = vpop.permute.xlu0 %2025 }
 0x25d   : > { %5102 = vmatmul.msk.f32.gmra.mxu2 %vm1378_vm6, %v1370_v46  ;;  %v7434_v46 = vld [vmem:[#allocation2 + $0x180] sm:$0xff] }
 0x25e   : > { %9728 = vst [vmem:[#allocation90_spill] sm:$0xff] %v7434_v46 }
 0x261   : > { %2217 = vrot.lane.b32.xlu1 %v2154_v37, %s5387_s25  ;;  %v7427_v49 = vpop.permute.xlu2 %2029  ;;  %v1341_v37 = vsel %vm225_vm0, %v7434_v46, %v9729_v13 }
 0x262   : > { %v1373_v16 = vsel %vm828_vm5, %v1341_v37, %v7215_v9  ;;  %v2253_v37 = vsel %vm225_vm0, %v6778_v10, %v7203_v38  ;;  %v2255_v38 = vsel %vm225_vm0, %v6859_v31, %v7285_v24  ;;  %v2257_v31 = vsel %vm225_vm0, %v6825_v33, %v7269_v40 }
 0x263   : > { %v7417_v15 = vpop.permute.xlu1 %2021  ;;  %v2259_v33 = vsel %vm225_vm0, %v6844_v32, %v7273_v36  ;;  %v2261_v32 = vsel %vm225_vm0, %v6926_v50, %v7339_v12  ;;  %v2263_v50 = vsel %vm225_vm0, %v6899_v39, %v7330_v3  ;;  %v2265_v39 = vsel %vm225_vm0, %v6917_v6, %v7337_v23 }
 0x264   : > { %v7439_v22 = vpop.permute.xlu0 %2031 }
 0x265   : > { %5103 = vmatmul.msk.f32.gmra.mxu2 %vm1378_vm6, %v1371_v14 }
 0x269   : > { %v7445_v14 = vpop.permute.xlu2 %2035 }
 0x26b   : > { %v7429_v1 = vpop.permute.xlu1 %2027 }
 0x26c   : > { %v7457_v13 = vpop.permute.xlu0 %2037 }
 0x26d   : > { %5104 = vmatmul.msk.f32.gmra.mxu2 %vm1378_vm6, %v1372_v59  ;;  %v1374_v59 = vsel %vm828_vm5, %v1342_v26, %v7258_v35  ;;  %v2254_v26 = vsel %vm225_vm0, %v6780_v2, %v7245_v42  ;;  %v2256_v2 = vsel %vm225_vm0, %v6810_v5, %v7241_v51  ;;  %v2258_v5 = vsel %vm225_vm0, %v6827_v43, %v7313_v20 }
 0x26e   : > { %v2260_v43 = vsel %vm225_vm0, %v6846_v28, %v7299_v18  ;;  %v2262_v28 = vsel %vm225_vm0, %v6882_v30, %v7304_v56  ;;  %v2264_v30 = vsel %vm225_vm0, %v6901_v60, %v7360_v48  ;;  %v1708_v60 = vpop.f32.mrf.mxu1  ;;  %v2266_v48 = vsel %vm225_vm0, %v6919_v47, %v7362_v57  ;;  %v7569_v47 = vld [vmem:[#allocation2 + $0x8] sm:$0xff] }
 0x271   : > { %v7460_v9 = vpop.permute.xlu2 %2041 }
 0x272   : > { %9732 = vst [vmem:[#allocation57_spill] sm:$0xff] %v7460_v9 }
 0x273   : > { %v7441_v34 = vpop.permute.xlu1 %2033 }
 0x274   : > { %v7467_v0 = vpop.permute.xlu0 %2043 }
 0x275   : > { %5105 = vmatmul.msk.f32.gmra.mxu2 %vm1378_vm6, %v1373_v16 }
 0x276   : > { %v1711_v23 = vpop.f32.mrf.mxu1 }
 0x279   : > { %v2160_v35 = vpop.permute.xlu2 %2159 }
 0x27b   : > { %v7453_v11 = vpop.permute.xlu1 %2039 }
 0x27c   : > { %v2162_v10 = vpop.permute.xlu0 %2161 }
 0x27d   : > { %5106 = vmatmul.msk.f32.gmra.mxu2 %vm1378_vm6, %v1374_v59  ;;  %v2286_v59 = vsel %vm828_vm5, %v2254_v26, %v2160_v35 }
 0x281   : > { %v2166_v26 = vpop.permute.xlu2 %2165 }
 0x282   : > { %v2289_v24 = vsel %vm828_vm5, %v2257_v31, %v2166_v26 }
 0x283   : > { %v2158_v16 = vpop.permute.xlu1 %2157 }
 0x284   : > { %v2285_v46 = vsel %vm828_vm5, %v2253_v37, %v2158_v16 }
 0x285   : > { %5143 = vmatmul.msk.f32.vlgmr.msrb.gmra.mxu2 %vm1378_vm6, %v2285_v46  ;;  %v2287_v46 = vsel %vm828_vm5, %v2255_v38, %v2162_v10  ;;  %v2168_v10 = vpop.permute.xlu0 %2167 }
 0x286   : > { %v2290_v51 = vsel %vm828_vm5, %v2258_v5, %v2168_v10 }
 0x288   : > { %v7469_v45 = vpop.f32.mrf.mxu2 }
 0x28b   : > { %v2164_v16 = vpop.permute.xlu1 %2163 }
 0x28c   : > { %v2288_v42 = vsel %vm828_vm5, %v2256_v2, %v2164_v16  ;;  %v2172_v2 = vpop.permute.xlu2 %2171 }
 0x28d   : > { %5144 = vmatmul.msk.f32.gmra.mxu2 %vm1378_vm6, %v2286_v59  ;;  %v2292_v20 = vsel %vm828_vm5, %v2260_v43, %v2172_v2  ;;  %v2174_v26 = vpop.permute.xlu0 %2173  ;;  %v1496_v2 = vpop.f32.mrf.mxu0 }
 0x28e   : > { %v2293_v36 = vsel %vm828_vm5, %v2261_v32, %v2174_v26 }
 0x290   : > { %v7476_v9 = vpop.f32.mrf.mxu2 }
 0x294   : > { %v2178_v5 = vpop.permute.xlu2 %2177 }
 0x295   : > { %5145 = vmatmul.msk.f32.gmra.mxu2 %vm1378_vm6, %v2287_v46  ;;  %v2170_v46 = vpop.permute.xlu1 %2169  ;;  %v2295_v12 = vsel %vm828_vm5, %v2263_v50, %v2178_v5  ;;  %v1499_v32 = vpop.f32.mrf.mxu0  ;;  %v2761_v5 = vrot.slane %v7569_v47, 1 }
 0x296   : > { %v2291_v40 = vsel %vm828_vm5, %v2259_v33, %v2170_v46  ;;  %v2180_v46 = vpop.permute.xlu0 %2179 }
 0x297   : > { %v2296_v56 = vsel %vm828_vm5, %v2264_v30, %v2180_v46 }
 0x298   : > { %v7483_v37 = vpop.f32.mrf.mxu2 }
 0x29d   : > { %5146 = vmatmul.msk.f32.gmra.mxu2 %vm1378_vm6, %v2288_v42  ;;  %v1502_v30 = vpop.f32.mrf.mxu0 }
 0x29e   : > { %v2186_v6 = vpop.permute.xlu0 %2185 }
 0x2a0   : > { %v7490_v35 = vpop.f32.mrf.mxu2 }
 0x2a5   : > { %5147 = vmatmul.msk.f32.gmra.mxu2 %vm1378_vm6, %v2289_v24  ;;  %v2176_v24 = vpop.permute.xlu1 %2175 }
 0x2a6   : > { %v2294_v18 = vsel %vm828_vm5, %v2262_v28, %v2176_v24  ;;  %v2267_v24 = vsel %vm225_vm0, %v6985_v8, %v7385_v19  ;;  %v2268_v8 = vsel %vm225_vm0, %v6949_v41, %v7370_v58  ;;  %v1714_v19 = vpop.f32.mrf.mxu1  ;;  %v1709_v41 = vadd.f32 %v1708_v60, %v1496_v2  ;;  %v7594_v58 = vld [vmem:[%s9315_s2] ss:$0 sm:$0xff] }
 0x2a7   : > { %v2299_v28 = vsel %vm828_vm5, %v2267_v24, %v2186_v6  ;;  %v7589_v6 = vld [vmem:[#allocation2 + $0x10] sm:$0x3] }
 0x2a8   : > { %v7497_v59 = vpop.f32.mrf.mxu2  ;;  %v2763_v24 = vrot.slane %v7589_v6, 1 }
 0x2ad   : > { %5148 = vmatmul.msk.f32.gmra.mxu2 %vm1378_vm6, %v2290_v51 }
 0x2b0   : > { %v7504_v38 = vpop.f32.mrf.mxu2 }
 0x2b5   : > { %5149 = vmatmul.msk.f32.gmra.mxu2 %vm1378_vm6, %v2291_v40  ;;  %v2182_v40 = vpop.permute.xlu1 %2181 }
 0x2b6   : > { %v2297_v3 = vsel %vm828_vm5, %v2265_v39, %v2182_v40 }
 0x2b8   : > { %v7511_v16 = vpop.f32.mrf.mxu2 }
 0x2bd   : > { %5150 = vmatmul.msk.f32.gmra.mxu2 %vm1378_vm6, %v2292_v20  ;;  %v2184_v20 = vpop.permute.xlu2 %2183 }
 0x2be   : > { %v2298_v26 = vsel %vm828_vm5, %v2266_v48, %v2184_v20  ;;  %v1505_v20 = vpop.f32.mrf.mxu0 }
 0x2c0   : > { %v7518_v42 = vpop.f32.mrf.mxu2 }
 0x2c5   : > { %5151 = vmatmul.msk.f32.gmra.mxu2 %vm1378_vm6, %v2293_v36  ;;  %v2190_v39 = vpop.permute.xlu2 %2189 }
 0x2c8   : > { %v7525_v31 = vpop.f32.mrf.mxu2 }
 0x2cd   : > { %5152 = vmatmul.msk.f32.gmra.mxu2 %vm1378_vm6, %v2294_v18  ;;  %v7567_v18 = vld [vmem:[#allocation2] sm:$0xff] }
 0x2ce   : > { %v2760_v57 = vrot.slane %v7567_v18, 1 }
 0x2d0   : > { %v7532_v10 = vpop.f32.mrf.mxu2  ;;  %v2762_v46 = vsel %vm442_vm1, %v2760_v57, %v2761_v5  ;;  %v2192_v57 = vpop.permute.xlu0 %2191 }
 0x2d1   : > { %2840 = vrot.lane.b32.xlu0 %v2762_v46, %s5386_s20 }
 0x2d5   : > { %5153 = vmatmul.msk.f32.gmra.mxu2 %vm1378_vm6, %v2295_v12  ;;  %v2188_v12 = vpop.permute.xlu1 %2187 }
 0x2d8   : > { %v7539_v51 = vpop.f32.mrf.mxu2 }
 0x2dd   : > { %5154 = vmatmul.msk.f32.gmra.mxu2 %vm1378_vm6, %v2296_v56  ;;  %v2300_v56 = vsel %vm828_vm5, %v2268_v8, %v2188_v12  ;;  %v1508_v8 = vpop.f32.mrf.mxu0 }
 0x2e0   : > { %v7546_v33 = vpop.f32.mrf.mxu2 }
 0x2e5   : > { %5155 = vmatmul.msk.f32.gmra.mxu2 %vm1378_vm6, %v2297_v3  ;;  %v2269_v3 = vsel %vm225_vm0, %v6966_v61, %v7391_v44  ;;  %v2764_v61 = vsel %vm442_vm1, %v2761_v5, %v2763_v24  ;;  %v2270_v44 = vsel %vm225_vm0, %v6968_v63, %v7403_v7  ;;  %v2194_v5 = vpop.permute.xlu1 %2193 }
 0x2e6   : > { %v2301_v48 = vsel %vm828_vm5, %v2269_v3, %v2190_v39  ;;  %2842 = vrot.lane.b32.xlu1 %v2764_v61, %s5386_s20  ;;  %v2302_v60 = vsel %vm828_vm5, %v2270_v44, %v2192_v57  ;;  %v2196_v57 = vpop.permute.xlu2 %2195  ;;  %v2272_v44 = vsel %vm225_vm0, %v9690_v17, %v7409_v27 }
 0x2e8   : > { %v7553_v43 = vpop.f32.mrf.mxu2 }
 0x2ed   : > { %5156 = vmatmul.msk.f32.gmra.mxu2 %vm1378_vm6, %v2298_v26  ;;  %v1717_v26 = vpop.f32.mrf.mxu1 }
 0x2f0   : > { %v7560_v36 = vpop.f32.mrf.mxu2 }
 0x2f5   : > { %5157 = vmatmul.msk.f32.gmra.mxu2 %vm1378_vm6, %v2299_v28  ;;  %v1720_v39 = vpop.f32.mrf.mxu1 }
 0x2f8   : > { %v7573_v50 = vpop.f32.mrf.mxu2 }
 0x2fd   : > { %5158 = vmatmul.msk.f32.gmra.mxu2 %vm1378_vm6, %v2300_v56  ;;  %v1712_v56 = vadd.f32 %v1711_v23, %v1499_v32  ;;  %v1511_v32 = vpop.f32.mrf.mxu0  ;;  %v1723_v61 = vpop.f32.mrf.mxu1 }
 0x300   : > { %v7582_v40 = vpop.f32.mrf.mxu2 }
 0x305   : > { %5159 = vmatmul.msk.f32.gmra.mxu2 %vm1378_vm6, %v2301_v48 }
 0x308   : > { %v2436_v28 = vpop.f32.mrf.mxu2 }
 0x309   : > { %v2532_v12 = vadd.f32 %v2436_v28, %v1709_v41  ;;  %v2271_v41 = vsel %vm225_vm0, %v9701_v62, %v7396_v25  ;;  %v1715_v28 = vadd.f32 %v1714_v19, %v1502_v30  ;;  %v2304_v25 = vsel %vm828_vm5, %v2272_v44, %v2196_v57  ;;  %v2200_v44 = vpop.permute.xlu1 %2199 }
 0x30a   : > { %v2303_v7 = vsel %vm828_vm5, %v2271_v41, %v2194_v5  ;;  %v2198_v5 = vpop.permute.xlu0 %2197  ;;  %v1721_v57 = vadd.f32 %v1720_v39, %v1508_v8 }
 0x30b   : > { %v2568_v2 = vadd.f32 %v7594_v58, %v2532_v12 }
 0x30d   : > { %v2600_v46 = vmax.f32 %v2568_v2, 0.0  ;;  %5160 = vmatmul.msk.f32.gmra.mxu2 %vm1378_vm6, %v2302_v60 }
 0x30f   : > { %2632 = vst.msk [vmem:[#allocation2 + $0x19] sm:$0xff] %vm225_vm0, %v2600_v46  ;;  %v1718_v46 = vadd.f32 %v1717_v26, %v1505_v20  ;;  %v1514_v20 = vpop.f32.mrf.mxu0  ;;  %v2273_v26 = vsel %vm225_vm0, %v9697_v52, %v7417_v15 }
 0x310   : > { %v2439_v3 = vpop.f32.mrf.mxu2 }
 0x311   : > { %v2533_v48 = vadd.f32 %v2439_v3, %v1712_v56 }
 0x313   : > { %v2569_v63 = vadd.f32 %v7594_v58, %v2533_v48 }
 0x315   : > { %v2601_v24 = vmax.f32 %v2569_v63, 0.0  ;;  %5161 = vmatmul.msk.f32.gmra.mxu2 %vm1378_vm6, %v2303_v7 }
 0x316   : > { %v7618_v2 = vld [vmem:[#allocation2 + $0x18] sm:$0xff] }
 0x317   : > { %2633 = vst.msk [vmem:[#allocation2 + $0x21] sm:$0xff] %vm225_vm0, %v2601_v24  ;;  %v2765_v27 = vrot.slane %v7618_v2, 1  ;;  %v1726_v24 = vpop.f32.mrf.mxu1  ;;  %v1517_v15 = vpop.f32.mrf.mxu0 }
 0x318   : > { %v2442_v23 = vpop.f32.mrf.mxu2 }
 0x319   : > { %v2534_v12 = vadd.f32 %v2442_v23, %v1715_v28  ;;  %v2305_v28 = vsel %vm828_vm5, %v2273_v26, %v2198_v5 }
 0x31b   : > { %v2570_v62 = vadd.f32 %v7594_v58, %v2534_v12 }
 0x31d   : > { %v2602_v60 = vmax.f32 %v2570_v62, 0.0  ;;  %5162 = vmatmul.msk.f32.gmra.mxu2 %vm1378_vm6, %v2304_v25  ;;  %v2274_v25 = vsel %vm225_vm0, %v9698_v4, %v7411_v55 }
 0x31e   : > { %v7621_v30 = vld [vmem:[#allocation2 + $0x20] sm:$0xff]  ;;  %v7623_v19 = vld [vmem:[#allocation2 + $0x28] sm:$0x3] }
 0x31f   : > { %2634 = vst.msk [vmem:[#allocation2 + $0x31] sm:$0xff] %vm225_vm0, %v2602_v60  ;;  %v7627_v56 = vrot.slane %v7621_v30, 1  ;;  %v2768_v17 = vrot.slane %v7623_v19, 1  ;;  %v2306_v60 = vsel %vm828_vm5, %v2274_v25, %v2200_v44  ;;  %v1729_v8 = vpop.f32.mrf.mxu1  ;;  %v1727_v44 = vadd.f32 %v1726_v24, %v1514_v20 }
 0x320   : > { %v2445_v3 = vpop.f32.mrf.mxu2 }
 0x321   : > { %v2535_v48 = vadd.f32 %v2445_v3, %v1718_v46  ;;  %v2769_v41 = vsel %vm442_vm1, %v7627_v56, %v2768_v17  ;;  %v7635_v63 = vsel %vm442_vm1, %v2765_v27, %v7627_v56  ;;  %v1724_v3 = vadd.f32 %v1723_v61, %v1511_v32 }
 0x322   : > { %2846 = vrot.lane.b32.xlu0 %v2769_v41, %s5386_s20  ;;  %2844 = vrot.lane.b32.xlu2 %v7635_v63, %s5386_s20  ;;  %v2202_v41 = vpop.permute.xlu2 %2201  ;;  %v2275_v32 = vsel %vm225_vm0, %v9699_v21, %v7422_v53 }
 0x323   : > { %v2571_v7 = vadd.f32 %v7594_v58, %v2535_v48 }
 0x325   : > { %v2603_v23 = vmax.f32 %v2571_v7, 0.0  ;;  %5163 = vmatmul.msk.f32.gmra.mxu2 %vm1378_vm6, %v2305_v28 }
 0x326   : > { %v7652_v46 = vld [vmem:[#allocation2 + $0x30] sm:$0xff] }
 0x327   : > { %2635 = vst.msk [vmem:[#allocation2 + $0x39] sm:$0xff] %vm225_vm0, %v2603_v23  ;;  %v2770_v5 = vrot.slane %v7652_v46, 1  ;;  %v2307_v23 = vsel %vm828_vm5, %v2275_v32, %v2202_v41 }
 0x328   : > { %v2448_v12 = vpop.f32.mrf.mxu2 }
 0x329   : > { %v2536_v62 = vadd.f32 %v2448_v12, %v1721_v57  ;;  %v1520_v12 = vpop.f32.mrf.mxu0 }
 0x32b   : > { %v2572_v52 = vadd.f32 %v7594_v58, %v2536_v62  ;;  %v1732_v62 = vpop.f32.mrf.mxu1 }
 0x32d   : > { %v2604_v17 = vmax.f32 %v2572_v52, 0.0  ;;  %5164 = vmatmul.msk.f32.gmra.mxu2 %vm1378_vm6, %v2306_v60  ;;  %v2204_v52 = vpop.permute.xlu0 %2203 }
 0x32e   : > { %v7655_v39 = vld [vmem:[#allocation2 + $0x38] sm:$0xff]  ;;  %v7657_v27 = vld [vmem:[#allocation2 + $0x40] sm:$0x3] }
 0x32f   : > { %2636 = vst.msk [vmem:[#allocation2 + $0x49] sm:$0xff] %vm225_vm0, %v2604_v17  ;;  %v7661_v4 = vrot.slane %v7655_v39, 1  ;;  %v2773_v55 = vrot.slane %v7657_v27, 1  ;;  %v2276_v17 = vsel %vm225_vm0, %v9700_v29, %v7429_v1 }
 0x330   : > { %v2451_v48 = vpop.f32.mrf.mxu2  ;;  %v2308_v53 = vsel %vm828_vm5, %v2276_v17, %v2204_v52 }
 0x331   : > { %v2537_v26 = vadd.f32 %v2451_v48, %v1724_v3  ;;  %v2774_v7 = vsel %vm442_vm1, %v7661_v4, %v2773_v55  ;;  %v7669_v28 = vsel %vm442_vm1, %v2770_v5, %v7661_v4  ;;  %v1730_v5 = vadd.f32 %v1729_v8, %v1517_v15  ;;  %v1523_v41 = vpop.f32.mrf.mxu0  ;;  %v5331_v8 = vld [vmem:[#allocation2 + $0x150] sm:$0xff] }
 0x332   : > { %2850 = vrot.lane.b32.xlu2 %v2774_v7, %s5386_s20  ;;  %2848 = vrot.lane.b32.xlu1 %v7669_v28, %s5386_s20  ;;  %v2206_v7 = vpop.permute.xlu1 %2205 }
 0x333   : > { %v2573_v61 = vadd.f32 %v7594_v58, %v2537_v26  ;;  %v1735_v15 = vpop.f32.mrf.mxu1 }
 0x335   : > { %v2605_v57 = vmax.f32 %v2573_v61, 0.0  ;;  %5165 = vmatmul.msk.f32.gmra.mxu2 %vm1378_vm6, %v2307_v23 }
 0x336   : > { %v7686_v3 = vld [vmem:[#allocation2 + $0x48] sm:$0xff] }
 0x337   : > { %2637 = vst.msk [vmem:[#allocation2 + $0x51] sm:$0xff] %vm225_vm0, %v2605_v57  ;;  %v2775_v1 = vrot.slane %v7686_v3, 1  ;;  %v2277_v57 = vsel %vm225_vm0, %v5331_v8, %v7427_v49 }
 0x338   : > { %v2454_v25 = vpop.f32.mrf.mxu2 }
 0x339   : > { %v2538_v60 = vadd.f32 %v2454_v25, %v1727_v44  ;;  %v2309_v25 = vsel %vm828_vm5, %v2277_v57, %v2206_v7 }
 0x33b   : > { %v2574_v21 = vadd.f32 %v7594_v58, %v2538_v60  ;;  %v1733_v60 = vadd.f32 %v1732_v62, %v1520_v12 }
 0x33d   : > { %v2606_v55 = vmax.f32 %v2574_v21, 0.0  ;;  %5166 = vmatmul.msk.f32.gmra.mxu2 %vm1378_vm6, %v2308_v53  ;;  %v2208_v21 = vpop.permute.xlu2 %2207 }
 0x33e   : > { %v7689_v20 = vld [vmem:[#allocation2 + $0x50] sm:$0xff]  ;;  %v7691_v24 = vld [vmem:[#allocation2 + $0x58] sm:$0x3] }
 0x33f   : > { %2638 = vst.msk [vmem:[#allocation2 + $0x61] sm:$0xff] %vm225_vm0, %v2606_v55  ;;  %v7695_v48 = vrot.slane %v7689_v20, 1  ;;  %v2778_v29 = vrot.slane %v7691_v24, 1  ;;  %v1526_v55 = vpop.f32.mrf.mxu0 }
 0x340   : > { %v2457_v26 = vpop.f32.mrf.mxu2 }
 0x341   : > { %9733 = vst [vmem:[#allocation96_spill] sm:$0xff] %v7695_v48  ;;  %v2539_v32 = vadd.f32 %v2457_v26, %v1730_v5  ;;  %v2779_v61 = vsel %vm442_vm1, %v7695_v48, %v2778_v29  ;;  %v7703_v23 = vsel %vm442_vm1, %v2775_v1, %v7695_v48  ;;  %v5332_v5 = vld [vmem:[#allocation2 + $0x158] sm:$0xff]  ;;  %v1738_v1 = vpop.f32.mrf.mxu1 }
 0x342   : > { %2854 = vrot.lane.b32.xlu1 %v2779_v61, %s5386_s20  ;;  %2852 = vrot.lane.b32.xlu0 %v7703_v23, %s5386_s20  ;;  %v2278_v29 = vsel %vm225_vm0, %v5332_v5, %v7439_v22  ;;  %v1736_v61 = vadd.f32 %v1735_v15, %v1523_v41  ;;  %v2279_v41 = vsel %vm225_vm0, %v7096_v54, %v7441_v34 }
 0x343   : > { %v2575_v44 = vadd.f32 %v7594_v58, %v2539_v32  ;;  %v2310_v26 = vsel %vm828_vm5, %v2278_v29, %v2208_v21 }
 0x345   : > { %v2607_v52 = vmax.f32 %v2575_v44, 0.0  ;;  %5167 = vmatmul.msk.f32.gmra.mxu2 %vm1378_vm6, %v2309_v25  ;;  %v2210_v25 = vpop.permute.xlu0 %2209 }
 0x346   : > { %v7718_v7 = vld [vmem:[#allocation2 + $0x60] sm:$0xff] }
 0x347   : > { %2639 = vst.msk [vmem:[#allocation2 + $0x69] sm:$0xff] %vm225_vm0, %v2607_v52  ;;  %v2780_v57 = vrot.slane %v7718_v7, 1  ;;  %v1529_v21 = vpop.f32.mrf.mxu0 }
 0x348   : > { %v2460_v17 = vpop.f32.mrf.mxu2 }
 0x349   : > { %v2540_v53 = vadd.f32 %v2460_v17, %v1733_v60  ;;  %v1741_v29 = vpop.f32.mrf.mxu1 }
 0x34b   : > { %v2576_v49 = vadd.f32 %v7594_v58, %v2540_v53  ;;  %v2311_v53 = vsel %vm828_vm5, %v2279_v41, %v2210_v25 }
 0x34d   : > { %v2608_v32 = vmax.f32 %v2576_v49, 0.0  ;;  %5168 = vmatmul.msk.f32.gmra.mxu2 %vm1378_vm6, %v2310_v26  ;;  %v1739_v49 = vadd.f32 %v1738_v1, %v1526_v55 }
 0x34e   : > { %v7721_v12 = vld [vmem:[#allocation2 + $0x68] sm:$0xff]  ;;  %v7723_v62 = vld [vmem:[#allocation2 + $0x70] sm:$0x3] }
 0x34f   : > { %2640 = vst.msk [vmem:[#allocation2 + $0x79] sm:$0xff] %vm225_vm0, %v2608_v32  ;;  %v7727_v8 = vrot.slane %v7721_v12, 1  ;;  %v2783_v22 = vrot.slane %v7723_v62, 1  ;;  %v2212_v32 = vpop.permute.xlu1 %2211 }
 0x350   : > { %v2463_v44 = vpop.f32.mrf.mxu2 }
 0x351   : > { %9734 = vst [vmem:[#allocation3_spill] sm:$0xff] %v7727_v8  ;;  %v2541_v52 = vadd.f32 %v2463_v44, %v1736_v61  ;;  %v2784_v60 = vsel %vm442_vm1, %v7727_v8, %v2783_v22  ;;  %v7735_v17 = vsel %vm442_vm1, %v2780_v57, %v7727_v8  ;;  %v5333_v22 = vld [vmem:[#allocation2 + $0x170] sm:$0xff] }
 0x352   : > { %9735 = vst [vmem:[#allocation93_spill] sm:$0xff] %v7735_v17  ;;  %2858 = vrot.lane.b32.xlu0 %v2784_v60, %s5386_s20  ;;  %2856 = vrot.lane.b32.xlu2 %v7735_v17, %s5386_s20  ;;  %v2280_v57 = vsel %vm225_vm0, %v5333_v22, %v7445_v14  ;;  %v1742_v60 = vadd.f32 %v1741_v29, %v1529_v21  ;;  %v9738_v21 = vld [vmem:[#allocation90_spill] sm:$0xff] }
 0x353   : > { %v2577_v15 = vadd.f32 %v7594_v58, %v2541_v52  ;;  %v2312_v34 = vsel %vm828_vm5, %v2280_v57, %v2212_v32  ;;  %v1532_v52 = vpop.f32.mrf.mxu0  ;;  %v2281_v29 = vsel %vm225_vm0, %v9738_v21, %v7457_v13 }
 0x355   : > { %v2609_v5 = vmax.f32 %v2577_v15, 0.0  ;;  %5169 = vmatmul.msk.f32.gmra.mxu2 %vm1378_vm6, %v2311_v53  ;;  %v1744_v53 = vpop.f32.mrf.mxu1 }
 0x356   : > { %v7751_v44 = vld [vmem:[#allocation2 + $0x78] sm:$0xff] }
 0x357   : > { %2641 = vst.msk [vmem:[#allocation2 + $0x81] sm:$0xff] %vm225_vm0, %v2609_v5  ;;  %v2785_v15 = vrot.slane %v7751_v44, 1 }
 0x358   : > { %v2466_v26 = vpop.f32.mrf.mxu2 }
 0x359   : > { %v2542_v61 = vadd.f32 %v2466_v26, %v1739_v49  ;;  %v2214_v49 = vpop.permute.xlu2 %2213 }
 0x35a   : > { %v2313_v57 = vsel %vm828_vm5, %v2281_v29, %v2214_v49 }
 0x35b   : > { %v2578_v54 = vadd.f32 %v7594_v58, %v2542_v61 }
 0x35d   : > { %v2610_v25 = vmax.f32 %v2578_v54, 0.0  ;;  %5170 = vmatmul.msk.f32.gmra.mxu2 %vm1378_vm6, %v2312_v34  ;;  %v7779_v34 = vpop.f32.mrf.mxu3 }
 0x35e   : > { %v7754_v55 = vld [vmem:[#allocation2 + $0x80] sm:$0xff]  ;;  %v7756_v1 = vld [vmem:[#allocation2 + $0x88] sm:$0x3] }
 0x35f   : > { %2642 = vst.msk [vmem:[#allocation2 + $0x91] sm:$0xff] %vm225_vm0, %v2610_v25  ;;  %v7760_v41 = vrot.slane %v7754_v55, 1  ;;  %v2788_v14 = vrot.slane %v7756_v1, 1  ;;  %v1745_v25 = vadd.f32 %v1744_v53, %v1532_v52 }
 0x360   : > { %v2469_v5 = vpop.f32.mrf.mxu2 }
 0x361   : > { %9736 = vst [vmem:[#allocation89_spill] sm:$0xff] %v7760_v41  ;;  %v2543_v26 = vadd.f32 %v2469_v5, %v1742_v60  ;;  %v2789_v32 = vsel %vm442_vm1, %v7760_v41, %v2788_v14  ;;  %v7768_v61 = vsel %vm442_vm1, %v2785_v15, %v7760_v41  ;;  %v1535_v60 = vpop.f32.mrf.mxu0  ;;  %v2216_v15 = vpop.permute.xlu0 %2215  ;;  %v9739_v41 = vld [vmem:[#allocation6_spill] sm:$0xff] }
 0x362   : > { %9737 = vst [vmem:[#allocation85_spill] sm:$0xff] %v7768_v61  ;;  %2862 = vrot.lane.b32.xlu2 %v2789_v32, %s5386_s20  ;;  %2860 = vrot.lane.b32.xlu1 %v7768_v61, %s5386_s20  ;;  %v1747_v32 = vpop.f32.mrf.mxu1  ;;  %v2282_v13 = vsel %vm225_vm0, %v9739_v41, %v7453_v11 }
 0x363   : > { %v2579_v22 = vadd.f32 %v7594_v58, %v2543_v26  ;;  %v2314_v49 = vsel %vm828_vm5, %v2282_v13, %v2216_v15 }
 0x365   : > { %v2611_v54 = vmax.f32 %v2579_v22, 0.0  ;;  %5171 = vmatmul.msk.f32.gmra.mxu2 %vm1378_vm6, %v2313_v57  ;;  %v1748_v22 = vadd.f32 %v1747_v32, %v1535_v60  ;;  %v5334_v32 = vld [vmem:[#allocation2 + $0x198] sm:$0xff] }
 0x366   : > { %v7787_v21 = vld [vmem:[#allocation2 + $0x90] sm:$0xff] }
 0x367   : > { %2643 = vst.msk [vmem:[#allocation2 + $0x99] sm:$0xff] %vm225_vm0, %v2611_v54  ;;  %v2790_v41 = vrot.slane %v7787_v21, 1 }
 0x368   : > { %v2472_v14 = vpop.f32.mrf.mxu2 }
 0x369   : > { %v2544_v5 = vadd.f32 %v2472_v14, %v1745_v25  ;;  %v1759_v25 = vpop.f32.mrf.mxu3  ;;  %v2218_v14 = vpop.permute.xlu1 %2217 }
 0x36a   : > { %v1538_v60 = vpop.f32.mrf.mxu0 }
 0x36b   : > { %v2580_v26 = vadd.f32 %v7594_v58, %v2544_v5 }
 0x36d   : > { %v2612_v29 = vmax.f32 %v2580_v26, 0.0  ;;  %5172 = vmatmul.msk.f32.gmra.mxu2 %vm1378_vm6, %v2314_v49  ;;  %v9742_v26 = vld [vmem:[#allocation57_spill] sm:$0xff] }
 0x36e   : > { %v7790_v52 = vld [vmem:[#allocation2 + $0x98] sm:$0xff]  ;;  %v7792_v53 = vld [vmem:[#allocation2 + $0xa0] sm:$0x3]  ;;  %v2283_v49 = vsel %vm225_vm0, %v5334_v32, %v9742_v26 }
 0x36f   : > { %2644 = vst.msk [vmem:[#allocation2 + $0xa9] sm:$0xff] %vm225_vm0, %v2612_v29  ;;  %v7796_v57 = vrot.slane %v7790_v52, 1  ;;  %v2793_v11 = vrot.slane %v7792_v53, 1 }
 0x370   : > { %v2475_v54 = vpop.f32.mrf.mxu2 }
 0x371   : > { %9740 = vst [vmem:[#allocation45_spill] sm:$0xff] %v7796_v57  ;;  %v2545_v15 = vadd.f32 %v2475_v54, %v1748_v22  ;;  %v2794_v5 = vsel %vm442_vm1, %v7796_v57, %v2793_v11  ;;  %v7804_v13 = vsel %vm442_vm1, %v2790_v41, %v7796_v57  ;;  %v1750_v22 = vpop.f32.mrf.mxu1  ;;  %v2315_v54 = vsel %vm828_vm5, %v2283_v49, %v2218_v14  ;;  %v1762_v8 = vpop.f32.mrf.mxu3 }
 0x372   : > { %9741 = vst [vmem:[#allocation92_spill] sm:$0xff] %v7804_v13  ;;  %2866 = vrot.lane.b32.xlu1 %v2794_v5, %s5386_s20  ;;  %2864 = vrot.lane.b32.xlu0 %v7804_v13, %s5386_s20  ;;  %v1751_v41 = vadd.f32 %v1750_v22, %v1538_v60  ;;  %v2220_v5 = vpop.permute.xlu2 %2219  ;;  %v5335_v13 = vld [vmem:[#allocation2 + $0x1a0] sm:$0xff]  ;;  %v1541_v26 = vpop.f32.mrf.mxu0  ;;  %v1763_v48 = vadd.f32 %v1762_v8, %v7483_v37 }
 0x373   : > { %v2581_v29 = vadd.f32 %v7594_v58, %v2545_v15  ;;  %v2284_v17 = vsel %vm225_vm0, %v5335_v13, %v7467_v0 }
 0x374   : > { %v2316_v15 = vsel %vm828_vm5, %v2284_v17, %v2220_v5 }
 0x375   : > { %v2613_v11 = vmax.f32 %v2581_v29, 0.0  ;;  %5173 = vmatmul.msk.f32.gmra.mxu2 %vm1378_vm6, %v2315_v54 }
 0x376   : > { %v7819_v14 = vld [vmem:[#allocation2 + $0xa8] sm:$0xff] }
 0x377   : > { %2645 = vst.msk [vmem:[#allocation2 + $0xb1] sm:$0xff] %vm225_vm0, %v2613_v11  ;;  %v2795_v17 = vrot.slane %v7819_v14, 1 }
 0x378   : > { %v2478_v57 = vpop.f32.mrf.mxu2 }
 0x379   : > { %v2546_v61 = vadd.f32 %v2478_v57, %v1751_v41  ;;  %v1753_v60 = vpop.f32.mrf.mxu1 }
 0x37a   : > { %v1754_v57 = vadd.f32 %v1753_v60, %v1541_v26  ;;  %v1757_v26 = vadd.f32 %v7779_v34, %v7469_v45 }
 0x37b   : > { %v2582_v32 = vadd.f32 %v7594_v58, %v2546_v61 }
 0x37d   : > { %v2614_v49 = vmax.f32 %v2582_v32, 0.0  ;;  %5174 = vmatmul.msk.f32.gmra.mxu2 %vm1378_vm6, %v2316_v15  ;;  %v1765_v32 = vpop.f32.mrf.mxu3 }
 0x37e   : > { %v7822_v29 = vld [vmem:[#allocation2 + $0xb0] sm:$0xff]  ;;  %v7824_v22 = vld [vmem:[#allocation2 + $0xb8] sm:$0x3] }
 0x37f   : > { %2646 = vst.msk [vmem:[#allocation2 + $0xc1] sm:$0xff] %vm225_vm0, %v2614_v49  ;;  %v2796_v0 = vrot.slane %v7822_v29, 1  ;;  %v2798_v61 = vrot.slane %v7824_v22, 1 }
 0x380   : > { %v2481_v13 = vpop.f32.mrf.mxu2 }
 0x381   : > { %v2547_v54 = vadd.f32 %v2481_v13, %v1754_v57  ;;  %v2799_v11 = vsel %vm442_vm1, %v2796_v0, %v2798_v61  ;;  %v2797_v41 = vsel %vm442_vm1, %v2795_v17, %v2796_v0  ;;  %v1760_v17 = vadd.f32 %v1759_v25, %v7476_v9 }
 0x382   : > { %2870 = vrot.lane.b32.xlu0 %v2799_v11, %s5386_s20  ;;  %2868 = vrot.lane.b32.xlu2 %v2797_v41, %s5386_s20 }
 0x383   : > { %v2583_v5 = vadd.f32 %v7594_v58, %v2547_v54 }
 0x385   : > { %v2615_v15 = vmax.f32 %v2583_v5, 0.0  ;;  %v1768_v54 = vpop.f32.mrf.mxu3 }
 0x386   : > { %v7839_v61 = vld [vmem:[#allocation2 + $0xc0] sm:$0xff] }
 0x387   : > { %2647 = vst.msk [vmem:[#allocation2 + $0xc9] sm:$0xff] %vm225_vm0, %v2615_v15  ;;  %v2800_v34 = vrot.slane %v7839_v61, 1 }
 0x388   : > { %v2484_v49 = vpop.f32.mrf.mxu2 }
 0x389   : > { %v2548_v60 = vadd.f32 %v2484_v49, %v1757_v26 }
 0x38b   : > { %v2584_v57 = vadd.f32 %v7594_v58, %v2548_v60 }
 0x38d   : > { %v2616_v0 = vmax.f32 %v2584_v57, 0.0 }
 0x38e   : > { %v7842_v13 = vld [vmem:[#allocation2 + $0xc8] sm:$0xff]  ;;  %v2690_v11 = vld [vmem:[#allocation2 + $0xd0] sm:$0x3] }
 0x38f   : > { %2648 = vst.msk [vmem:[#allocation2 + $0xd9] sm:$0xff] %vm225_vm0, %v2616_v0  ;;  %v2801_v41 = vrot.slane %v7842_v13, 1  ;;  %v2803_v45 = vrot.slane %v2690_v11, 1  ;;  %v9457_v5 = vrot.slane %v7842_v13, 2  ;;  %v2979_v26 = vrot.slane %v2690_v11, 2  ;;  %v1771_v11 = vpop.f32.mrf.mxu3 }
 0x390   : > { %v2487_v15 = vpop.f32.mrf.mxu2 }
 0x391   : > { %v2549_v49 = vadd.f32 %v2487_v15, %v1760_v17  ;;  %v2804_v60 = vsel %vm442_vm1, %v2801_v41, %v2803_v45  ;;  %v2802_v9 = vsel %vm442_vm1, %v2800_v34, %v2801_v41  ;;  %v7856_v57 = vsel %vm619_vm3, %v9457_v5, %v2979_v26 }
 0x392   : > { %2874 = vrot.lane.b32.xlu2 %v2804_v60, %s5386_s20  ;;  %2872 = vrot.lane.b32.xlu1 %v2802_v9, %s5386_s20  ;;  %9743 = vst [vmem:[#allocation58_spill] sm:$0xff] %v7856_v57 }
 0x393   : > { %v2585_v25 = vadd.f32 %v7594_v58, %v2549_v49  ;;  %v1766_v49 = vadd.f32 %v1765_v32, %v7490_v35  ;;  %v7869_v35 = vrot.slane %v7621_v30, 2  ;;  %v1769_v32 = vadd.f32 %v1768_v54, %v7497_v59 }
 0x394   : > { %v1772_v54 = vadd.f32 %v1771_v11, %v7504_v38  ;;  %v2939_v38 = vrot.slane %v7589_v6, 2  ;;  %v2936_v11 = vrot.slane %v7567_v18, 2 }
 0x395   : > { %v2617_v0 = vmax.f32 %v2585_v25, 0.0 }
 0x396   : > { %v2691_v34 = vld [vmem:[#allocation2 + $0xd8] sm:$0xff] }
 0x397   : > { %2649 = vst.msk [vmem:[#allocation2 + $0xe1] sm:$0xff] %vm225_vm0, %v2617_v0  ;;  %v2805_v25 = vrot.slane %v2691_v34, 1 }
 0x398   : > { %v2490_v17 = vpop.f32.mrf.mxu2 }
 0x399   : > { %v2550_v45 = vadd.f32 %v2490_v17, %v1763_v48  ;;  %v1774_v48 = vpop.f32.mrf.mxu3 }
 0x39b   : > { %v2586_v41 = vadd.f32 %v7594_v58, %v2550_v45 }
 0x39d   : > { %v2618_v15 = vmax.f32 %v2586_v41, 0.0 }
 0x39e   : > { %v2692_v60 = vld [vmem:[#allocation2 + $0xe0] sm:$0xff]  ;;  %v2693_v9 = vld [vmem:[#allocation2 + $0xe8] sm:$0x3] }
 0x39f   : > { %2650 = vst.msk [vmem:[#allocation2 + $0xf1] sm:$0xff] %vm225_vm0, %v2618_v15  ;;  %v2806_v26 = vrot.slane %v2692_v60, 1  ;;  %v2808_v5 = vrot.slane %v2693_v9, 1 }
 0x3a0   : > { %v2493_v57 = vpop.f32.mrf.mxu2 }
 0x3a1   : > { %v2551_v37 = vadd.f32 %v2493_v57, %v1766_v49  ;;  %v2809_v8 = vsel %vm442_vm1, %v2806_v26, %v2808_v5  ;;  %v2807_v0 = vsel %vm442_vm1, %v2805_v25, %v2806_v26  ;;  %v2941_v57 = vrot.slane %v7618_v2, 2  ;;  %v1777_v30 = vpop.f32.mrf.mxu3 }
 0x3a2   : > { %2878 = vrot.lane.b32.xlu1 %v2809_v8, %s5386_s20  ;;  %2876 = vrot.lane.b32.xlu0 %v2807_v0, %s5386_s20 }
 0x3a3   : > { %v2587_v17 = vadd.f32 %v7594_v58, %v2551_v37  ;;  %v7876_v34 = vsel %vm619_vm3, %v2941_v57, %v7869_v35 }
 0x3a5   : > { %v2619_v45 = vmax.f32 %v2587_v17, 0.0 }
 0x3a6   : > { %v2694_v60 = vld [vmem:[#allocation2 + $0xf0] sm:$0xff] }
 0x3a7   : > { %2651 = vst.msk [vmem:[#allocation2 + $0xf9] sm:$0xff] %vm225_vm0, %v2619_v45  ;;  %v2810_v25 = vrot.slane %v2694_v60, 1 }
 0x3a8   : > { %v2496_v5 = vpop.f32.mrf.mxu2 }
 0x3a9   : > { %v2552_v41 = vadd.f32 %v2496_v5, %v1769_v32  ;;  %v2937_v32 = vrot.slane %v7569_v47, 2  ;;  %v1780_v5 = vpop.f32.mrf.mxu3 }
 0x3aa   : > { %3020 = vrot.lane.b32.xlu1 %v7876_v34, %s5387_s25 }
 0x3ab   : > { %v2588_v15 = vadd.f32 %v7594_v58, %v2552_v41  ;;  %v1775_v41 = vadd.f32 %v1774_v48, %v7511_v16  ;;  %v2938_v60 = vsel %vm619_vm3, %v2936_v11, %v2937_v32  ;;  %v1778_v16 = vadd.f32 %v1777_v30, %v7518_v42 }
 0x3ac   : > { %v1781_v11 = vadd.f32 %v1780_v5, %v7525_v31  ;;  %v7927_v31 = vrot.slane %v7689_v20, 2 }
 0x3ad   : > { %v2620_v9 = vmax.f32 %v2588_v15, 0.0  ;;  %v2940_v15 = vsel %vm619_vm3, %v2937_v32, %v2939_v38  ;;  %v2944_v32 = vrot.slane %v7623_v19, 2  ;;  %v2949_v38 = vrot.slane %v7657_v27, 2 }
 0x3ae   : > { %v2695_v49 = vld [vmem:[#allocation2 + $0xf8] sm:$0xff]  ;;  %v2696_v59 = vld [vmem:[#allocation2 + $0x100] sm:$0x3] }
 0x3af   : > { %2652 = vst.msk [vmem:[#allocation2 + $0x109] sm:$0xff] %vm225_vm0, %v2620_v9  ;;  %v2811_v2 = vrot.slane %v2695_v49, 1  ;;  %v2813_v26 = vrot.slane %v2696_v59, 1  ;;  %v7899_v59 = vrot.slane %v7655_v39, 2 }
 0x3b0   : > { %v2499_v37 = vpop.f32.mrf.mxu2 }
 0x3b1   : > { %v2553_v8 = vadd.f32 %v2499_v37, %v1772_v54  ;;  %v2814_v0 = vsel %vm442_vm1, %v2811_v2, %v2813_v26  ;;  %v2812_v17 = vsel %vm442_vm1, %v2810_v25, %v2811_v2  ;;  %v2946_v2 = vrot.slane %v7652_v46, 2 }
 0x3b2   : > { %2882 = vrot.lane.b32.xlu0 %v2814_v0, %s5386_s20  ;;  %2880 = vrot.lane.b32.xlu2 %v2812_v17, %s5386_s20  ;;  %v1783_v0 = vpop.f32.mrf.mxu3 }
 0x3b3   : > { %v2589_v45 = vadd.f32 %v7594_v58, %v2553_v8  ;;  %v1784_v5 = vadd.f32 %v1783_v0, %v7532_v10  ;;  %v7944_v0 = vrot.slane %v7721_v12, 2 }
 0x3b5   : > { %v2621_v57 = vmax.f32 %v2589_v45, 0.0  ;;  %v7906_v45 = vsel %vm619_vm3, %v2946_v2, %v7899_v59 }
 0x3b6   : > { %v2697_v6 = vld [vmem:[#allocation2 + $0x108] sm:$0xff] }
 0x3b7   : > { %2653 = vst.msk [vmem:[#allocation2 + $0x111] sm:$0xff] %vm225_vm0, %v2621_v57  ;;  %v2815_v37 = vrot.slane %v2697_v6, 1 }
 0x3b8   : > { %v2502_v9 = vpop.f32.mrf.mxu2 }
 0x3b9   : > { %v2554_v49 = vadd.f32 %v2502_v9, %v1775_v41 }
 0x3ba   : > { %3018 = vrot.lane.b32.xlu0 %v2940_v15, %s5387_s25  ;;  %3016 = vrot.lane.b32.xlu2 %v2938_v60, %s5387_s25  ;;  %v2945_v15 = vsel %vm619_vm3, %v7869_v35, %v2944_v32  ;;  %v2950_v60 = vsel %vm619_vm3, %v7899_v59, %v2949_v38  ;;  %v1786_v9 = vpop.f32.mrf.mxu3 }
 0x3bb   : > { %v2590_v47 = vadd.f32 %v7594_v58, %v2554_v49 }
 0x3bd   : > { %v2622_v18 = vmax.f32 %v2590_v47, 0.0 }
 0x3be   : > { %v2698_v48 = vld [vmem:[#allocation2 + $0x110] sm:$0xff]  ;;  %v2699_v54 = vld [vmem:[#allocation2 + $0x118] sm:$0x3] }
 0x3bf   : > { %2654 = vst.msk [vmem:[#allocation2 + $0x121] sm:$0xff] %vm225_vm0, %v2622_v18  ;;  %v2816_v26 = vrot.slane %v2698_v48, 1  ;;  %v2818_v25 = vrot.slane %v2699_v54, 1  ;;  %v2951_v18 = vrot.slane %v7686_v3, 2 }
 0x3c0   : > { %v2505_v8 = vpop.f32.mrf.mxu2 }
 0x3c1   : > { %v2555_v17 = vadd.f32 %v2505_v8, %v1778_v16  ;;  %v2819_v39 = vsel %vm442_vm1, %v2816_v26, %v2818_v25  ;;  %v2817_v42 = vsel %vm442_vm1, %v2815_v37, %v2816_v26  ;;  %v7934_v25 = vsel %vm619_vm3, %v2951_v18, %v7927_v31 }
 0x3c2   : > { %3024 = vrot.lane.b32.xlu0 %v7906_v45, %s5387_s25  ;;  %2886 = vrot.lane.b32.xlu2 %v2819_v39, %s5386_s20  ;;  %v1789_v3 = vpop.f32.mrf.mxu3  ;;  %v2954_v39 = vrot.slane %v7691_v24, 2  ;;  %v7964_v24 = vpop.permute.xlu2 %2844 }
 0x3c3   : > { %v2591_v46 = vadd.f32 %v7594_v58, %v2555_v17  ;;  %2884 = vrot.lane.b32.xlu1 %v2817_v42, %s5386_s20  ;;  %v2959_v17 = vrot.slane %v7723_v62, 2  ;;  %v1787_v42 = vadd.f32 %v1786_v9, %v7539_v51 }
 0x3c5   : > { %v2623_v30 = vmax.f32 %v2591_v46, 0.0  ;;  %v2960_v38 = vsel %vm619_vm3, %v7944_v0, %v2959_v17 }
 0x3c6   : > { %v2700_v19 = vld [vmem:[#allocation2 + $0x120] sm:$0xff] }
 0x3c7   : > { %2655 = vst.msk [vmem:[#allocation2 + $0x129] sm:$0xff] %vm225_vm0, %v2623_v30  ;;  %v2820_v54 = vrot.slane %v2700_v19, 1  ;;  %v2956_v30 = vrot.slane %v7718_v7, 2 }
 0x3c8   : > { %v2508_v57 = vpop.f32.mrf.mxu2 }
 0x3c9   : > { %v2556_v41 = vadd.f32 %v2508_v57, %v1781_v11  ;;  %v2955_v11 = vsel %vm619_vm3, %v7927_v31, %v2954_v39  ;;  %v7958_v12 = vsel %vm619_vm3, %v2956_v30, %v7944_v0  ;;  %v7967_v57 = vrot.slane %v7754_v55, 2 }
 0x3ca   : > { %3022 = vrot.lane.b32.xlu2 %v2945_v15, %s5387_s25  ;;  %v1792_v9 = vpop.f32.mrf.mxu3 }
 0x3cb   : > { %v2592_v49 = vadd.f32 %v7594_v58, %v2556_v41  ;;  %3026 = vrot.lane.b32.xlu1 %v2950_v60, %s5387_s25  ;;  %v2964_v41 = vrot.slane %v7756_v1, 2  ;;  %v7980_v1 = vpop.permute.xlu2 %2850 }
 0x3cd   : > { %v2624_v27 = vmax.f32 %v2592_v49, 0.0  ;;  %v1790_v49 = vadd.f32 %v1789_v3, %v7546_v33  ;;  %v2965_v55 = vsel %vm619_vm3, %v7967_v57, %v2964_v41  ;;  %v2971_v3 = vrot.slane %v7819_v14, 2  ;;  %v8013_v41 = vpop.permute.xlu1 %2842 }
 0x3ce   : > { %v2701_v47 = vld [vmem:[#allocation2 + $0x128] sm:$0xff]  ;;  %v2702_v6 = vld [vmem:[#allocation2 + $0x130] sm:$0x3] }
 0x3cf   : > { %2656 = vst.msk [vmem:[#allocation2 + $0x139] sm:$0xff] %vm225_vm0, %v2624_v27  ;;  %v2821_v16 = vrot.slane %v2701_v47, 1  ;;  %v2823_v48 = vrot.slane %v2702_v6, 1 }
 0x3d0   : > { %v2511_v2 = vpop.f32.mrf.mxu2 }
 0x3d1   : > { %v2557_v26 = vadd.f32 %v2511_v2, %v1784_v5  ;;  %v2824_v20 = vsel %vm442_vm1, %v2821_v16, %v2823_v48  ;;  %v2822_v37 = vsel %vm442_vm1, %v2820_v54, %v2821_v16  ;;  %v7983_v54 = vrot.slane %v7790_v52, 2 }
 0x3d2   : > { %3028 = vrot.lane.b32.xlu2 %v7934_v25, %s5387_s25  ;;  %2888 = vrot.lane.b32.xlu0 %v2822_v37, %s5386_s20  ;;  %v2972_v2 = vrot.slane %v7822_v29, 2  ;;  %v2966_v37 = vrot.slane %v7787_v21, 2 }
 0x3d3   : > { %v2593_v10 = vadd.f32 %v7594_v58, %v2557_v26  ;;  %2890 = vrot.lane.b32.xlu1 %v2824_v20, %s5386_s20  ;;  %v1793_v26 = vadd.f32 %v1792_v9, %v7553_v43  ;;  %v2961_v20 = vrot.slane %v7751_v44, 2  ;;  %v7999_v43 = vpop.permute.xlu0 %2840  ;;  %v8008_v21 = vpop.permute.xlu2 %2856 }
 0x3d4   : > { %v7997_v52 = vsel %vm619_vm3, %v2966_v37, %v7983_v54  ;;  %v2973_v29 = vsel %vm619_vm3, %v2971_v3, %v2972_v2 }
 0x3d5   : > { %v2625_v8 = vmax.f32 %v2593_v10, 0.0  ;;  %v7993_v39 = vsel %vm619_vm3, %v2961_v20, %v7967_v57 }
 0x3d6   : > { %v2703_v7 = vld [vmem:[#allocation2 + $0x138] sm:$0xff] }
 0x3d7   : > { %2657 = vst.msk [vmem:[#allocation2 + $0x141] sm:$0xff] %vm225_vm0, %v2625_v8  ;;  %v2825_v5 = vrot.slane %v2703_v7, 1  ;;  %v1795_v8 = vpop.f32.mrf.mxu3 }
 0x3d8   : > { %v2514_v46 = vpop.f32.mrf.mxu2 }
 0x3d9   : > { %v2558_v32 = vadd.f32 %v2514_v46, %v1787_v42  ;;  %v2969_v46 = vrot.slane %v7792_v53, 2 }
 0x3da   : > { %3034 = vrot.lane.b32.xlu2 %v2960_v38, %s5387_s25  ;;  %3030 = vrot.lane.b32.xlu0 %v2955_v11, %s5387_s25  ;;  %v1796_v38 = vadd.f32 %v1795_v8, %v7560_v36 }
 0x3db   : > { %v2594_v51 = vadd.f32 %v7594_v58, %v2558_v32  ;;  %3032 = vrot.lane.b32.xlu1 %v7958_v12, %s5387_s25 }
 0x3dd   : > { %v2626_v62 = vmax.f32 %v2594_v51, 0.0 }
 0x3de   : > { %v2704_v15 = vld [vmem:[#allocation2 + $0x140] sm:$0xff]  ;;  %v2705_v60 = vld [vmem:[#allocation2 + $0x148] sm:$0x3] }
 0x3df   : > { %2658 = vst.msk [vmem:[#allocation2 + $0x151] sm:$0xff] %vm225_vm0, %v2626_v62  ;;  %v2826_v19 = vrot.slane %v2704_v15, 1  ;;  %v2828_v27 = vrot.slane %v2705_v60, 1  ;;  %v2970_v60 = vsel %vm619_vm3, %v7983_v54, %v2969_v46  ;;  %v1798_v36 = vpop.f32.mrf.mxu3 }
 0x3e0   : > { %v2517_v47 = vpop.f32.mrf.mxu2 }
 0x3e1   : > { %v2559_v6 = vadd.f32 %v2517_v47, %v1790_v49  ;;  %v2829_v18 = vsel %vm442_vm1, %v2826_v19, %v2828_v27  ;;  %v2827_v16 = vsel %vm442_vm1, %v2825_v5, %v2826_v19  ;;  %v3177_v19 = vld [vmem:[%s9316_s3 + $0x8] sm:$0xf]  ;;  %v8026_v27 = vpop.permute.xlu0 %2846  ;;  %v8028_v5 = vpop.permute.xlu2 %2862 }
 0x3e2   : > { %2894 = vrot.lane.b32.xlu0 %v2829_v18, %s5386_s20  ;;  %2892 = vrot.lane.b32.xlu2 %v2827_v16, %s5386_s20  ;;  %v3176_v18 = vld [vmem:[%s9316_s3] sm:$0xff]  ;;  %v1799_v16 = vadd.f32 %v1798_v36, %v7573_v50 }
 0x3e3   : > { %v2595_v33 = vadd.f32 %v7594_v58, %v2559_v6  ;;  %3038 = vrot.lane.b32.xlu1 %v2965_v55, %s5387_s25  ;;  %5210 = vmatpush.msk.msrb.mxu0 %vm1475_vm4, %v3177_v19  ;;  %v2974_v6 = vrot.slane %v7824_v22, 2  ;;  %v2976_v55 = vrot.slane %v7839_v61, 2  ;;  %v8044_v22 = vpop.permute.xlu1 %2848 }
 0x3e5   : > { %v2627_v48 = vmax.f32 %v2595_v33, 0.0  ;;  %4019 = vmatpush.msrb.mxu0 %v3176_v18  ;;  %v2975_v37 = vsel %vm619_vm3, %v2972_v2, %v2974_v6  ;;  %v5337_v18 = vld [vmem:[#allocation2] sm:$0xff] }
 0x3e6   : > { %v2706_v14 = vld [vmem:[#allocation2 + $0x150] sm:$0xff] }
 0x3e7   : > { %2659 = vst.msk [vmem:[#allocation2 + $0x159] sm:$0xff] %vm225_vm0, %v2627_v48  ;;  %v2830_v7 = vrot.slane %v2706_v14, 1  ;;  %v1801_v8 = vpop.f32.mrf.mxu3 }
 0x3e8   : > { %v2520_v10 = vpop.f32.mrf.mxu2 }
 0x3e9   : > { %v2560_v17 = vadd.f32 %v2520_v10, %v1793_v26  ;;  %v9744_v26 = vrot.slane %v7842_v13, 2  ;;  %v8049_v61 = vpop.permute.xlu0 %2852  ;;  %v8051_v10 = vpop.permute.xlu2 %2868 }
 0x3ea   : > { %3036 = vrot.lane.b32.xlu0 %v7993_v39, %s5387_s25  ;;  %3040 = vrot.lane.b32.xlu2 %v7997_v52, %s5387_s25 }
 0x3eb   : > { %v2596_v44 = vadd.f32 %v7594_v58, %v2560_v17  ;;  %3044 = vrot.lane.b32.xlu1 %v2973_v29, %s5387_s25  ;;  %v2978_v20 = vsel %vm619_vm3, %v2976_v55, %v9744_v26  ;;  %v1802_v29 = vadd.f32 %v1801_v8, %v7582_v40  ;;  %v5336_v40 = vld [vmem:[%s9315_s2] ss:$0 sm:$0xff] }
 0x3ed   : > { %v2628_v42 = vmax.f32 %v2596_v44, 0.0 }
 0x3ee   : > { %v2707_v30 = vld [vmem:[#allocation2 + $0x158] sm:$0xff]  ;;  %v2708_v32 = vld [vmem:[#allocation2 + $0x160] sm:$0x3] }
 0x3ef   : > { %2660 = vst.msk [vmem:[#allocation2 + $0x169] sm:$0xff] %vm225_vm0, %v2628_v42  ;;  %v2831_v11 = vrot.slane %v2707_v30, 1  ;;  %v2833_v51 = vrot.slane %v2708_v32, 1  ;;  %v3180_v32 = vld [vmem:[#allocation2 + $0x28] sm:$0x3] }
 0x3f0   : > { %v2523_v62 = vpop.f32.mrf.mxu2 }
 0x3f1   : > { %v2561_v15 = vadd.f32 %v2523_v62, %v1796_v38  ;;  %v2834_v9 = vsel %vm442_vm1, %v2831_v11, %v2833_v51  ;;  %v2832_v53 = vsel %vm442_vm1, %v2830_v7, %v2831_v11  ;;  %v8060_v38 = vpop.permute.xlu1 %2854  ;;  %v8066_v51 = vpop.permute.xlu0 %2858 }
 0x3f2   : > { %3042 = vrot.lane.b32.xlu0 %v2970_v60, %s5387_s25  ;;  %2898 = vrot.lane.b32.xlu2 %v2834_v9, %s5386_s20  ;;  %v8068_v7 = vpop.permute.xlu2 %2874  ;;  %v3277_v60 = vrot.slane %v3180_v32, 1 }
 0x3f3   : > { %v2597_v49 = vadd.f32 %v7594_v58, %v2561_v15  ;;  %2896 = vrot.lane.b32.xlu1 %v2832_v53, %s5386_s20  ;;  %v3453_v15 = vrot.slane %v3180_v32, 2  ;;  %v4119_v53 = vld [vmem:[#allocation2 + $0x40] sm:$0x3] }
 0x3f4   : > { %v3278_v9 = vsel %vm442_vm1, %v7627_v56, %v3277_v60  ;;  %v3183_v56 = vld [vmem:[#allocation2 + $0x40] sm:$0x3] }
 0x3f5   : > { %v2629_v47 = vmax.f32 %v2597_v49, 0.0  ;;  %v3282_v26 = vrot.slane %v3183_v56, 1 }
 0x3f6   : > { %v2709_v13 = vld [vmem:[#allocation2 + $0x168] sm:$0xff] }
 0x3f7   : > { %2661 = vst.msk [vmem:[#allocation2 + $0x171] sm:$0xff] %vm225_vm0, %v2629_v47  ;;  %v2835_v42 = vrot.slane %v2709_v13, 1  ;;  %v4216_v47 = vrot.slane %v4119_v53, 1 }
 0x3f8   : > { %v2526_v33 = vpop.f32.mrf.mxu2 }
 0x3f9   : > { %v2562_v48 = vadd.f32 %v2526_v33, %v1799_v16  ;;  %v8077_v36 = vpop.permute.xlu1 %2860  ;;  %v8081_v49 = vpop.permute.xlu0 %2864  ;;  %v3112_v16 = vsel %vm225_vm0, %v5337_v18, %v7999_v43 }
 0x3fa   : > { %3048 = vrot.lane.b32.xlu0 %v2978_v20, %s5387_s25  ;;  %3046 = vrot.lane.b32.xlu2 %v2975_v37, %s5387_s25  ;;  %v4392_v20 = vrot.slane %v4119_v53, 2  ;;  %v3283_v37 = vsel %vm442_vm1, %v7661_v4, %v3282_v26 }
 0x3fb   : > { %v2598_v50 = vadd.f32 %v7594_v58, %v2562_v48  ;;  %3354 = vrot.lane.b32.xlu1 %v7635_v63, %s5386_s20 }
 0x3fd   : > { %v2630_v3 = vmax.f32 %v2598_v50, 0.0 }
 0x3fe   : > { %v2710_v17 = vld [vmem:[#allocation2 + $0x170] sm:$0xff]  ;;  %v2711_v2 = vld [vmem:[#allocation2 + $0x178] sm:$0x3] }
 0x3ff   : > { %2662 = vst.msk [vmem:[#allocation2 + $0x181] sm:$0xff] %vm225_vm0, %v2630_v3  ;;  %v2836_v44 = vrot.slane %v2710_v17, 1  ;;  %v2838_v14 = vrot.slane %v2711_v2, 1  ;;  %v3458_v3 = vrot.slane %v3183_v56, 2 }
 0x400   : > { %v2529_v58 = vpop.f32.mrf.mxu2 }
 0x401   : > { %v2563_v46 = vadd.f32 %v2529_v58, %v1802_v29  ;;  %v2839_v63 = vsel %vm442_vm1, %v2836_v44, %v2838_v14  ;;  %v2837_v30 = vsel %vm442_vm1, %v2835_v42, %v2836_v44  ;;  %v8090_v6 = vpop.permute.xlu1 %2866  ;;  %v8096_v55 = vpop.permute.xlu0 %2870  ;;  %v9745_v44 = vld [vmem:[#allocation96_spill] sm:$0xff]  ;;  %v5338_v42 = vld [vmem:[#allocation2 + $0x8] sm:$0xff] }
 0x402   : > { %3530 = vrot.lane.b32.xlu2 %v7876_v34, %s5387_s25  ;;  %2900 = vrot.lane.b32.xlu0 %v2837_v30, %s5386_s20  ;;  %v3454_v34 = vsel %vm619_vm3, %v7869_v35, %v3453_v15  ;;  %v4217_v35 = vsel %vm442_vm1, %v7661_v4, %v4216_v47  ;;  %v3459_v4 = vsel %vm619_vm3, %v7899_v59, %v3458_v3  ;;  %v8181_v3 = vld [vmem:[#allocation2 + $0x30] sm:$0xff] }
 0x403   : > { %v2599_v11 = vadd.f32 %v5336_v40, %v2563_v46  ;;  %2902 = vrot.lane.b32.xlu1 %v2839_v63, %s5386_s20  ;;  %v3113_v58 = vsel %vm225_vm0, %v5338_v42, %v8013_v41  ;;  %v8146_v41 = vld [vmem:[#allocation2 + $0x18] sm:$0xff] }
 0x404   : > { %v3114_v15 = vsel %vm225_vm0, %v8146_v41, %v7964_v24  ;;  %v8164_v24 = vld [vmem:[#allocation2 + $0x20] sm:$0xff] }
 0x405   : > { %v2631_v62 = vmax.f32 %v2599_v11, 0.0  ;;  %v9746_v11 = vld [vmem:[#allocation93_spill] sm:$0xff]  ;;  %v3115_v56 = vsel %vm225_vm0, %v8164_v24, %v8026_v27  ;;  %v3189_v27 = vld [vmem:[#allocation2 + $0x70] sm:$0x3] }
 0x407   : > { %2663 = vst.msk [vmem:[#allocation2 + $0x189] sm:$0xff] %vm225_vm0, %v2631_v62 }
 0x409   : > { %v8107_v43 = vpop.permute.xlu1 %2872 }
 0x40a   : > { %3532 = vrot.lane.b32.xlu2 %v3454_v34, %s5387_s25  ;;  %3356 = vrot.lane.b32.xlu0 %v3278_v9, %s5386_s20 }
 0x40b   : > { %4293 = vrot.lane.b32.xlu1 %v7669_v28, %s5386_s20 }
 0x40c   : > { %v8083_v19 = vpop.permute.xlu2 %2880 }
 0x412   : > { %4295 = vrot.lane.b32.xlu2 %v4217_v35, %s5386_s20  ;;  %4469 = vrot.lane.b32.xlu0 %v7906_v45, %s5387_s25  ;;  %v4125_v35 = vld [vmem:[#allocation2 + $0x70] sm:$0x3] }
 0x413   : > { %3358 = vrot.lane.b32.xlu1 %v7669_v28, %s5386_s20  ;;  %v4393_v28 = vsel %vm619_vm3, %v7899_v59, %v4392_v20  ;;  %v3186_v59 = vld [vmem:[#allocation2 + $0x58] sm:$0x3]  ;;  %v4226_v26 = vrot.slane %v4125_v35, 1 }
 0x414   : > { %v3017_v33 = vpop.permute.xlu2 %3016  ;;  %v8110_v50 = vpop.permute.xlu0 %2876  ;;  %v3287_v40 = vrot.slane %v3186_v59, 1  ;;  %v3463_v53 = vrot.slane %v3186_v59, 2  ;;  %v3292_v59 = vrot.slane %v3189_v27, 1 }
 0x415   : > { %v3144_v48 = vsel %vm828_vm5, %v3112_v16, %v3017_v33  ;;  %v8120_v8 = vpop.permute.xlu1 %2878 }
 0x416   : > { %5211 = vmatmul.msk.f32.vlgmr.msrb.gmra.mxu0 %vm1378_vm6, %v3144_v48  ;;  %v3288_v62 = vsel %vm442_vm1, %v9745_v44, %v3287_v40  ;;  %v3464_v47 = vsel %vm619_vm3, %v7927_v31, %v3463_v53  ;;  %v4402_v48 = vrot.slane %v4125_v35, 2  ;;  %v8225_v53 = vld [vmem:[#allocation2 + $0x48] sm:$0xff] }
 0x418   : > { %v4403_v20 = vsel %vm619_vm3, %v7944_v0, %v4402_v48 }
 0x41a   : > { %3360 = vrot.lane.b32.xlu2 %v3283_v37, %s5386_s20  ;;  %3534 = vrot.lane.b32.xlu0 %v7906_v45, %s5387_s25  ;;  %v4122_v45 = vld [vmem:[#allocation2 + $0x58] sm:$0x3]  ;;  %v9747_v37 = vld [vmem:[#allocation3_spill] sm:$0xff] }
 0x41b   : > { %4471 = vrot.lane.b32.xlu1 %v4393_v28, %s5387_s25  ;;  %v4221_v29 = vrot.slane %v4122_v45, 1  ;;  %v4227_v28 = vsel %vm442_vm1, %v9747_v37, %v4226_v26  ;;  %v3293_v42 = vsel %vm442_vm1, %v9747_v37, %v3292_v59  ;;  %v5244_v26 = vld [vmem:[%s9316_s3 + $0x28] sm:$0xf]  ;;  %v9750_v59 = vld [vmem:[#allocation92_spill] sm:$0xff] }
 0x41c   : > { %v8112_v13 = vpop.permute.xlu2 %2886  ;;  %5245 = vmatpush.msk.msrb.mxu1 %vm1475_vm4, %v5244_v26 }
 0x41d   : > { %v4222_v14 = vsel %vm442_vm1, %v9745_v44, %v4221_v29  ;;  %v3021_v30 = vpop.permute.xlu1 %3020 }
 0x41e   : > { %v3146_v9 = vsel %vm828_vm5, %v3114_v15, %v3021_v30  ;;  %v8205_v30 = vld [vmem:[#allocation2 + $0x38] sm:$0xff]  ;;  %v9749_v15 = vld [vmem:[#allocation89_spill] sm:$0xff] }
 0x422   : > { %4473 = vrot.lane.b32.xlu2 %v7934_v25, %s5387_s25  ;;  %4297 = vrot.lane.b32.xlu0 %v7703_v23, %s5386_s20 }
 0x423   : > { %3536 = vrot.lane.b32.xlu1 %v3459_v4, %s5387_s25  ;;  %v3116_v4 = vsel %vm225_vm0, %v8181_v3, %v8044_v22  ;;  %v4128_v22 = vld [vmem:[#allocation2 + $0x88] sm:$0x3] }
 0x424   : > { %v8123_v17 = vpop.permute.xlu0 %2882  ;;  %v3023_v2 = vpop.permute.xlu2 %3022  ;;  %v4407_v48 = vrot.slane %v4128_v22, 2 }
 0x42a   : > { %3538 = vrot.lane.b32.xlu2 %v7934_v25, %s5387_s25  ;;  %3362 = vrot.lane.b32.xlu0 %v7703_v23, %s5386_s20  ;;  %v4397_v25 = vrot.slane %v4122_v45, 2 }
 0x42b   : > { %4299 = vrot.lane.b32.xlu1 %v4222_v14, %s5386_s20  ;;  %v3468_v14 = vrot.slane %v3189_v27, 2 }
 0x42c   : > { %v3019_v46 = vpop.permute.xlu0 %3018  ;;  %v8134_v63 = vpop.permute.xlu2 %3028  ;;  %v4398_v23 = vsel %vm619_vm3, %v7927_v31, %v4397_v25  ;;  %v3147_v31 = vsel %vm828_vm5, %v3115_v56, %v3023_v2 }
 0x42d   : > { %v3145_v32 = vsel %vm828_vm5, %v3113_v58, %v3019_v46  ;;  %v9748_v58 = vld [vmem:[#allocation85_spill] sm:$0xff]  ;;  %v5176_v46 = vld [vmem:[%s9316_s3 + $0x18] sm:$0xf] }
 0x42e   : > { %5212 = vmatmul.msk.f32.gmra.mxu0 %vm1378_vm6, %v3145_v32  ;;  %5177 = vmatpush.msk.msrb.mxu3 %vm1475_vm4, %v5176_v46  ;;  %v8278_v46 = vld [vmem:[#allocation2 + $0x90] sm:$0xff] }
 0x432   : > { %4301 = vrot.lane.b32.xlu2 %v9746_v11, %s5386_s20  ;;  %4475 = vrot.lane.b32.xlu0 %v4398_v23, %s5387_s25 }
 0x433   : > { %3364 = vrot.lane.b32.xlu1 %v3288_v62, %s5386_s20  ;;  %v5175_v62 = vld [vmem:[%s9316_s3 + $0x10] sm:$0xff] }
 0x434   : > { %v8151_v60 = vpop.permute.xlu2 %3034  ;;  %v3025_v18 = vpop.permute.xlu0 %3024  ;;  %3807 = vmatpush.msrb.mxu3 %v5175_v62  ;;  %v3475_v62 = vrot.slane %v8278_v46, 2 }
 0x435   : > { %v8153_v34 = vpop.permute.xlu1 %2884  ;;  %v3148_v44 = vsel %vm828_vm5, %v3116_v4, %v3025_v18 }
 0x436   : > { %5213 = vmatmul.msk.f32.gmra.mxu0 %vm1378_vm6, %v3146_v9 }
 0x43a   : > { %3366 = vrot.lane.b32.xlu2 %v9746_v11, %s5386_s20  ;;  %3540 = vrot.lane.b32.xlu0 %v3464_v47, %s5387_s25  ;;  %v4231_v11 = vrot.slane %v4128_v22, 1  ;;  %v3118_v47 = vsel %vm225_vm0, %v8225_v53, %v8049_v61 }
 0x43b   : > { %4477 = vrot.lane.b32.xlu1 %v7958_v12, %s5387_s25 }
 0x43c   : > { %v8169_v16 = vpop.permute.xlu2 %2892  ;;  %v4232_v9 = vsel %vm442_vm1, %v9749_v15, %v4231_v11 }
 0x43d   : > { %v3027_v33 = vpop.permute.xlu1 %3026 }
 0x43e   : > { %5214 = vmatmul.msk.f32.gmra.mxu0 %vm1378_vm6, %v3147_v31 }
 0x442   : > { %4479 = vrot.lane.b32.xlu2 %v4403_v20, %s5387_s25  ;;  %4303 = vrot.lane.b32.xlu0 %v4227_v28, %s5386_s20  ;;  %v4408_v20 = vsel %vm619_vm3, %v7967_v57, %v4407_v48  ;;  %v8300_v48 = vld [vmem:[#allocation2 + $0x68] sm:$0xff] }
 0x443   : > { %3542 = vrot.lane.b32.xlu1 %v7958_v12, %s5387_s25  ;;  %v3469_v12 = vsel %vm619_vm3, %v7944_v0, %v3468_v14  ;;  %v3117_v0 = vsel %vm225_vm0, %v8205_v30, %v7980_v1  ;;  %v3192_v1 = vld [vmem:[#allocation2 + $0x88] sm:$0x3]  ;;  %v3121_v26 = vsel %vm225_vm0, %v8300_v48, %v8066_v51 }
 0x444   : > { %v8186_v45 = vpop.permute.xlu0 %2888  ;;  %v8188_v2 = vpop.permute.xlu2 %3040  ;;  %v3149_v23 = vsel %vm828_vm5, %v3117_v0, %v3027_v33  ;;  %v3150_v33 = vsel %vm828_vm5, %v3118_v47, %v8134_v63  ;;  %v3297_v31 = vrot.slane %v3192_v1, 1  ;;  %v8251_v63 = vld [vmem:[#allocation2 + $0x50] sm:$0xff]  ;;  %v3473_v14 = vrot.slane %v3192_v1, 2  ;;  %v9751_v1 = vld [vmem:[#allocation45_spill] sm:$0xff] }
 0x445   : > { %v8190_v29 = vpop.permute.xlu1 %2890  ;;  %v3119_v37 = vsel %vm225_vm0, %v8251_v63, %v8060_v38  ;;  %v4131_v38 = vld [vmem:[#allocation2 + $0xa0] sm:$0x3] }
 0x446   : > { %5215 = vmatmul.msk.f32.gmra.mxu0 %vm1378_vm6, %v3148_v44  ;;  %v3298_v61 = vsel %vm442_vm1, %v9749_v15, %v3297_v31  ;;  %v4236_v11 = vrot.slane %v4131_v38, 1  ;;  %v3299_v15 = vrot.slane %v8278_v46, 1  ;;  %v3195_v31 = vld [vmem:[#allocation2 + $0xa0] sm:$0x3] }
 0x447   : > { %v3302_v51 = vrot.slane %v3195_v31, 1 }
 0x448   : > { %v4237_v47 = vsel %vm442_vm1, %v9751_v1, %v4236_v11 }
 0x44a   : > { %3544 = vrot.lane.b32.xlu2 %v3469_v12, %s5387_s25  ;;  %3368 = vrot.lane.b32.xlu0 %v3293_v42, %s5386_s20  ;;  %v8266_v12 = vld [vmem:[#allocation2 + $0x98] sm:$0xff]  ;;  %v8269_v42 = vld [vmem:[#allocation2 + $0x60] sm:$0xff] }
 0x44b   : > { %4305 = vrot.lane.b32.xlu1 %v9748_v58, %s5386_s20  ;;  %v3120_v22 = vsel %vm225_vm0, %v8269_v42, %v8008_v21  ;;  %v5243_v21 = vld [vmem:[%s9316_s3 + $0x20] sm:$0xff] }
 0x44c   : > { %v3031_v32 = vpop.permute.xlu0 %3030  ;;  %v8210_v25 = vpop.permute.xlu2 %2898  ;;  %4746 = vmatpush.msrb.mxu1 %v5243_v21 }
 0x44d   : > { %v3033_v40 = vpop.permute.xlu1 %3032  ;;  %v3151_v44 = vsel %vm828_vm5, %v3119_v37, %v3031_v32  ;;  %v3476_v32 = vrot.slane %v8266_v12, 2  ;;  %v8309_v37 = vld [vmem:[#allocation2 + $0xa8] sm:$0xff] }
 0x44e   : > { %5216 = vmatmul.msk.f32.gmra.mxu0 %vm1378_vm6, %v3149_v23  ;;  %v3300_v23 = vrot.slane %v8266_v12, 1  ;;  %v4238_v11 = vrot.slane %v8309_v37, 1  ;;  %v4414_v1 = vrot.slane %v8309_v37, 2 }
 0x452   : > { %4307 = vrot.lane.b32.xlu2 %v4232_v9, %s5386_s20  ;;  %4481 = vrot.lane.b32.xlu0 %v7993_v39, %s5387_s25  ;;  %v3301_v9 = vsel %vm442_vm1, %v3299_v15, %v3300_v23 }
 0x453   : > { %3370 = vrot.lane.b32.xlu1 %v9748_v58, %s5386_s20 }
 0x454   : > { %v8230_v35 = vpop.permute.xlu0 %2894  ;;  %v8232_v56 = vpop.permute.xlu2 %3046 }
 0x455   : > { %v8234_v18 = vpop.permute.xlu1 %3038 }
 0x456   : > { %5217 = vmatmul.msk.f32.gmra.mxu0 %vm1378_vm6, %v3150_v33  ;;  %v8297_v33 = vld [vmem:[#allocation2 + $0xb0] sm:$0xff] }
 0x45a   : > { %3372 = vrot.lane.b32.xlu2 %v3298_v61, %s5386_s20  ;;  %3546 = vrot.lane.b32.xlu0 %v7993_v39, %s5387_s25  ;;  %v3474_v39 = vsel %vm619_vm3, %v7967_v57, %v3473_v14  ;;  %v3152_v57 = vsel %vm828_vm5, %v3120_v22, %v3033_v40  ;;  %v3477_v40 = vsel %vm619_vm3, %v3475_v62, %v3476_v32 }
 0x45b   : > { %4483 = vrot.lane.b32.xlu1 %v4408_v20, %s5387_s25 }
 0x45c   : > { %v3037_v28 = vpop.permute.xlu0 %3036  ;;  %v3531_v27 = vpop.permute.xlu2 %3530 }
 0x45d   : > { %v8256_v4 = vpop.permute.xlu1 %3044 }
 0x45e   : > { %5218 = vmatmul.msk.f32.gmra.mxu0 %vm1378_vm6, %v3151_v44  ;;  %v3153_v44 = vsel %vm828_vm5, %v3121_v26, %v8151_v60  ;;  %v4134_v26 = vld [vmem:[#allocation2 + $0xb8] sm:$0x3] }
 0x462   : > { %4485 = vrot.lane.b32.xlu2 %v7997_v52, %s5387_s25  ;;  %4309 = vrot.lane.b32.xlu0 %v9750_v59, %s5386_s20  ;;  %v4412_v59 = vrot.slane %v4131_v38, 2  ;;  %v3303_v38 = vsel %vm442_vm1, %v3300_v23, %v3302_v51  ;;  %v4415_v23 = vrot.slane %v8297_v33, 2  ;;  %v4417_v51 = vrot.slane %v4134_v26, 2 }
 0x463   : > { %3548 = vrot.lane.b32.xlu1 %v3474_v39, %s5387_s25  ;;  %v8314_v39 = vrot.slane %v8297_v33, 1 }
 0x464   : > { %v8274_v58 = vpop.permute.xlu0 %3042  ;;  %v8276_v52 = vpop.permute.xlu2 %3532  ;;  %v4413_v21 = vsel %vm619_vm3, %v7983_v54, %v4412_v59 }
 0x465   : > { %v8281_v0 = vpop.permute.xlu1 %2896  ;;  %v4240_v60 = vsel %vm442_vm1, %v4238_v11, %v8314_v39 }
 0x466   : > { %5219 = vmatmul.msk.f32.gmra.mxu0 %vm1378_vm6, %v3152_v57 }
 0x46a   : > { %3550 = vrot.lane.b32.xlu2 %v3477_v40, %s5387_s25  ;;  %3374 = vrot.lane.b32.xlu0 %v3301_v9, %s5386_s20  ;;  %v3478_v9 = vrot.slane %v3195_v31, 2 }
 0x46b   : > { %4311 = vrot.lane.b32.xlu1 %v4237_v47, %s5386_s20 }
 0x46c   : > { %v8305_v61 = vpop.permute.xlu0 %3048  ;;  %v8307_v20 = vpop.permute.xlu2 %4295  ;;  %v3479_v47 = vsel %vm619_vm3, %v3476_v32, %v3478_v9 }
 0x46d   : > { %v3355_v14 = vpop.permute.xlu1 %3354 }
 0x46e   : > { %v3626_v22 = vsel %vm225_vm0, %v8146_v41, %v3355_v14  ;;  %5220 = vmatmul.msk.f32.gmra.mxu0 %vm1378_vm6, %v3153_v44  ;;  %v8330_v41 = vld [vmem:[#allocation2 + $0x78] sm:$0xff] }
 0x46f   : > { %v3658_v57 = vsel %vm828_vm5, %v3626_v22, %v3531_v27  ;;  %v3122_v27 = vsel %vm225_vm0, %v8330_v41, %v8077_v36  ;;  %v4416_v36 = vsel %vm619_vm3, %v4414_v1, %v4415_v23 }
 0x470   : > { %5178 = vmatmul.msk.f32.vlgmr.msrb.gmra.mxu3 %vm1378_vm6, %v3658_v57  ;;  %v3154_v54 = vsel %vm828_vm5, %v3122_v27, %v3037_v28  ;;  %v8350_v28 = vld [vmem:[#allocation2 + $0x80] sm:$0xff]  ;;  %v4241_v57 = vrot.slane %v4134_v26, 1 }
 0x471   : > { %v3123_v31 = vsel %vm225_vm0, %v8350_v28, %v8028_v5  ;;  %v4418_v5 = vsel %vm619_vm3, %v4415_v23, %v4417_v51  ;;  %v8385_v26 = vld [vmem:[#allocation2 + $0xc0] sm:$0xff]  ;;  %v8398_v51 = vld [vmem:[#allocation2 + $0x98] sm:$0xff] }
 0x472   : > { %4313 = vrot.lane.b32.xlu2 %v4240_v60, %s5386_s20  ;;  %4487 = vrot.lane.b32.xlu0 %v4413_v21, %s5387_s25  ;;  %v3155_v32 = vsel %vm828_vm5, %v3123_v31, %v8234_v18  ;;  %v8371_v18 = vld [vmem:[#allocation2 + $0xc8] sm:$0xff]  ;;  %v8373_v21 = vld [vmem:[#allocation2 + $0x90] sm:$0xff] }
 0x473   : > { %3376 = vrot.lane.b32.xlu1 %v3303_v38, %s5386_s20 }
 0x474   : > { %v8335_v62 = vpop.permute.xlu2 %3360  ;;  %v8337_v15 = vpop.permute.xlu0 %2900 }
 0x475   : > { %v8340_v40 = vpop.permute.xlu1 %2902 }
 0x476   : > { %5221 = vmatmul.msk.f32.gmra.mxu0 %vm1378_vm6, %v3154_v54 }
 0x47a   : > { %3378 = vrot.lane.b32.xlu2 %v4240_v60, %s5386_s20  ;;  %3552 = vrot.lane.b32.xlu0 %v3479_v47, %s5387_s25  ;;  %v4242_v60 = vsel %vm442_vm1, %v8314_v39, %v4241_v57  ;;  %v3125_v57 = vsel %vm225_vm0, %v8398_v51, %v8090_v6 }
 0x47b   : > { %4489 = vrot.lane.b32.xlu1 %v4416_v36, %s5387_s25 }
 0x47c   : > { %v8355_v44 = vpop.permute.xlu2 %4473  ;;  %v3357_v14 = vpop.permute.xlu0 %3356 }
 0x47d   : > { %v3627_v59 = vsel %vm225_vm0, %v8164_v24, %v3357_v14  ;;  %v4294_v22 = vpop.permute.xlu1 %4293  ;;  %v3198_v24 = vld [vmem:[#allocation2 + $0xb8] sm:$0x3]  ;;  %v4243_v14 = vrot.slane %v8385_v26, 1 }
 0x47e   : > { %5222 = vmatmul.msk.f32.gmra.mxu0 %vm1378_vm6, %v3155_v32  ;;  %v3659_v11 = vsel %vm828_vm5, %v3627_v59, %v8276_v52  ;;  %v3124_v52 = vsel %vm225_vm0, %v8373_v21, %v8081_v49  ;;  %v4565_v38 = vsel %vm225_vm0, %v8181_v3, %v4294_v22  ;;  %v3307_v31 = vrot.slane %v3198_v24, 1  ;;  %v4137_v22 = vld [vmem:[#allocation2 + $0xd0] sm:$0x3] }
 0x47f   : > { %5179 = vmatmul.msk.f32.gmra.mxu3 %vm1378_vm6, %v3659_v11  ;;  %v3156_v9 = vsel %vm828_vm5, %v3124_v52, %v8188_v2  ;;  %v4244_v49 = vrot.slane %v8371_v18, 1 }
 0x480   : > { %v3308_v2 = vsel %vm442_vm1, %v8314_v39, %v3307_v31 }
 0x481   : > { %v4245_v59 = vsel %vm442_vm1, %v4243_v14, %v4244_v49 }
 0x482   : > { %4491 = vrot.lane.b32.xlu2 %v4418_v5, %s5387_s25  ;;  %4315 = vrot.lane.b32.xlu0 %v4242_v60, %s5386_s20  ;;  %v4420_v5 = vrot.slane %v8371_v18, 2  ;;  %v3157_v60 = vsel %vm828_vm5, %v3125_v57, %v8274_v58 }
 0x483   : > { %3554 = vrot.lane.b32.xlu1 %v4416_v36, %s5387_s25  ;;  %v3483_v36 = vrot.slane %v3198_v24, 2  ;;  %v4566_v24 = vsel %vm225_vm0, %v8205_v30, %v8307_v20  ;;  %v3201_v20 = vld [vmem:[#allocation2 + $0xd0] sm:$0x3] }
 0x484   : > { %v8380_v27 = vpop.permute.xlu2 %3538  ;;  %v4470_v54 = vpop.permute.xlu0 %4469 }
 0x485   : > { %v4597_v1 = vsel %vm828_vm5, %v4565_v38, %v4470_v54  ;;  %v3359_v47 = vpop.permute.xlu1 %3358  ;;  %v3484_v32 = vsel %vm619_vm3, %v4415_v23, %v3483_v36  ;;  %v4246_v54 = vrot.slane %v4137_v22, 1 }
 0x486   : > { %5223 = vmatmul.msk.f32.gmra.mxu0 %vm1378_vm6, %v3156_v9  ;;  %5246 = vmatmul.msk.f32.vlgmr.msrb.gmra.mxu1 %vm1378_vm6, %v4597_v1  ;;  %v3628_v23 = vsel %vm225_vm0, %v8181_v3, %v3359_v47  ;;  %v4419_v3 = vrot.slane %v8385_v26, 2  ;;  %v5351_v1 = vld [vmem:[#allocation2 + $0xa8] sm:$0xff] }
 0x487   : > { %v4247_v58 = vsel %vm442_vm1, %v4244_v49, %v4246_v54  ;;  %v3126_v47 = vsel %vm225_vm0, %v5351_v1, %v8051_v10 }
 0x488   : > { %v4421_v9 = vsel %vm619_vm3, %v4419_v3, %v4420_v5  ;;  %v3158_v14 = vsel %vm828_vm5, %v3126_v47, %v8256_v4 }
 0x48a   : > { %3556 = vrot.lane.b32.xlu2 %v3484_v32, %s5387_s25  ;;  %3380 = vrot.lane.b32.xlu0 %v3308_v2, %s5386_s20  ;;  %v3629_v32 = vsel %vm225_vm0, %v8205_v30, %v8335_v62  ;;  %v8445_v62 = vld [vmem:[#allocation2 + $0xe0] sm:$0xff] }
 0x48b   : > { %4317 = vrot.lane.b32.xlu1 %v4245_v59, %s5386_s20  ;;  %v4249_v3 = vrot.slane %v8445_v62, 1 }
 0x48c   : > { %v8405_v11 = vpop.permute.xlu2 %4301  ;;  %v3535_v39 = vpop.permute.xlu0 %3534 }
 0x48d   : > { %v4472_v52 = vpop.permute.xlu1 %4471  ;;  %v3660_v38 = vsel %vm828_vm5, %v3628_v23, %v3535_v39  ;;  %v3312_v23 = vrot.slane %v3201_v20, 1  ;;  %v4422_v39 = vrot.slane %v4137_v22, 2 }
 0x48e   : > { %5180 = vmatmul.msk.f32.gmra.mxu3 %vm1378_vm6, %v3660_v38  ;;  %5224 = vmatmul.msk.f32.gmra.mxu0 %vm1378_vm6, %v3157_v60  ;;  %v4598_v6 = vsel %vm828_vm5, %v4566_v24, %v4472_v52  ;;  %v5352_v60 = vld [vmem:[#allocation2 + $0xb0] sm:$0xff]  ;;  %v8452_v52 = vld [vmem:[#allocation2 + $0xd8] sm:$0xff] }
 0x48f   : > { %5247 = vmatmul.msk.f32.gmra.mxu1 %vm1378_vm6, %v4598_v6  ;;  %v3313_v4 = vsel %vm442_vm1, %v4244_v49, %v3312_v23  ;;  %v4423_v30 = vsel %vm619_vm3, %v4420_v5, %v4422_v39  ;;  %v8459_v6 = vrot.slane %v8445_v62, 2  ;;  %v3204_v39 = vld [vmem:[#allocation2 + $0xe8] sm:$0x3] }
 0x492   : > { %4319 = vrot.lane.b32.xlu2 %v4247_v58, %s5386_s20  ;;  %4493 = vrot.lane.b32.xlu0 %v4421_v9, %s5387_s25  ;;  %v3488_v58 = vrot.slane %v3201_v20, 2  ;;  %v5353_v20 = vld [vmem:[#allocation2 + $0xc0] sm:$0xff] }
 0x493   : > { %3382 = vrot.lane.b32.xlu1 %v4245_v59, %s5386_s20 }
 0x494   : > { %v8426_v36 = vpop.permute.xlu2 %3366  ;;  %v4298_v31 = vpop.permute.xlu0 %4297  ;;  %v3489_v47 = vsel %vm619_vm3, %v4420_v5, %v3488_v58 }
 0x495   : > { %v4567_v2 = vsel %vm225_vm0, %v8225_v53, %v4298_v31  ;;  %v3537_v57 = vpop.permute.xlu1 %3536  ;;  %v3128_v31 = vsel %vm225_vm0, %v5353_v20, %v8107_v43 }
 0x496   : > { %v3661_v59 = vsel %vm828_vm5, %v3629_v32, %v3537_v57  ;;  %5225 = vmatmul.msk.f32.gmra.mxu0 %vm1378_vm6, %v3158_v14  ;;  %v4599_v10 = vsel %vm828_vm5, %v4567_v2, %v8355_v44  ;;  %v3127_v44 = vsel %vm225_vm0, %v5352_v60, %v8096_v55  ;;  %v3160_v57 = vsel %vm828_vm5, %v3128_v31, %v8305_v61  ;;  %v8494_v60 = vld [vmem:[#allocation2 + $0xf0] sm:$0xff] }
 0x497   : > { %5181 = vmatmul.msk.f32.gmra.mxu3 %vm1378_vm6, %v3661_v59  ;;  %5248 = vmatmul.msk.f32.gmra.mxu1 %vm1378_vm6, %v4599_v10  ;;  %v3159_v49 = vsel %vm828_vm5, %v3127_v44, %v8232_v56  ;;  %v4248_v56 = vrot.slane %v8452_v52, 1  ;;  %v8487_v10 = vld [vmem:[#allocation2 + $0xf8] sm:$0xff]  ;;  %v4569_v44 = vsel %vm225_vm0, %v8269_v42, %v8405_v11  ;;  %v4253_v58 = vrot.slane %v8494_v60, 1 }
 0x498   : > { %v3493_v31 = vrot.slane %v3204_v39, 2 }
 0x499   : > { %v4250_v1 = vsel %vm442_vm1, %v4248_v56, %v4249_v3 }
 0x49a   : > { %3384 = vrot.lane.b32.xlu2 %v3313_v4, %s5386_s20  ;;  %3558 = vrot.lane.b32.xlu0 %v4421_v9, %s5387_s25  ;;  %v4424_v9 = vrot.slane %v8452_v52, 2 }
 0x49b   : > { %4495 = vrot.lane.b32.xlu1 %v4423_v30, %s5387_s25 }
 0x49c   : > { %v8450_v22 = vpop.permute.xlu2 %4479  ;;  %v3363_v24 = vpop.permute.xlu0 %3362 }
 0x49d   : > { %v3630_v38 = vsel %vm225_vm0, %v8225_v53, %v3363_v24  ;;  %v4300_v54 = vpop.permute.xlu1 %4299  ;;  %v4426_v53 = vsel %vm619_vm3, %v4424_v9, %v8459_v6 }
 0x49e   : > { %5226 = vmatmul.msk.f32.gmra.mxu0 %vm1378_vm6, %v3159_v49  ;;  %v3662_v55 = vsel %vm828_vm5, %v3630_v38, %v8380_v27  ;;  %v4140_v27 = vld [vmem:[#allocation2 + $0xe8] sm:$0x3]  ;;  %v4568_v14 = vsel %vm225_vm0, %v8251_v63, %v4300_v54  ;;  %v4254_v38 = vrot.slane %v8487_v10, 1 }
 0x49f   : > { %5182 = vmatmul.msk.f32.gmra.mxu3 %vm1378_vm6, %v3662_v55  ;;  %v4251_v59 = vrot.slane %v4140_v27, 1  ;;  %v4427_v54 = vrot.slane %v4140_v27, 2 }
 0x4a0   : > { %v4255_v9 = vsel %vm442_vm1, %v4253_v58, %v4254_v38  ;;  %v8549_v58 = vld [vmem:[#allocation2 + $0xe0] sm:$0xff] }
 0x4a1   : > { %v4252_v43 = vsel %vm442_vm1, %v4249_v3, %v4251_v59  ;;  %v4428_v11 = vsel %vm619_vm3, %v8459_v6, %v4427_v54 }
 0x4a2   : > { %4497 = vrot.lane.b32.xlu2 %v4426_v53, %s5387_s25  ;;  %4321 = vrot.lane.b32.xlu0 %v4250_v1, %s5386_s20 }
 0x4a3   : > { %3560 = vrot.lane.b32.xlu1 %v3489_v47, %s5387_s25  ;;  %v3632_v47 = vsel %vm225_vm0, %v8269_v42, %v8426_v36  ;;  %v3494_v42 = vsel %vm619_vm3, %v8459_v6, %v3493_v31  ;;  %v9752_v36 = vld [vmem:[#allocation58_spill] sm:$0xff] }
 0x4a4   : > { %v3545_v32 = vpop.permute.xlu2 %3544  ;;  %v4476_v2 = vpop.permute.xlu0 %4475 }
 0x4a5   : > { %v3365_v23 = vpop.permute.xlu1 %3364  ;;  %v4600_v5 = vsel %vm828_vm5, %v4568_v14, %v4476_v2  ;;  %v4430_v2 = vrot.slane %v8487_v10, 2 }
 0x4a6   : > { %5227 = vmatmul.msk.f32.gmra.mxu0 %vm1378_vm6, %v3160_v57  ;;  %5249 = vmatmul.msk.f32.gmra.mxu1 %vm1378_vm6, %v4600_v5  ;;  %v3631_v61 = vsel %vm225_vm0, %v8251_v63, %v3365_v23  ;;  %v3317_v63 = vrot.slane %v3204_v39, 1  ;;  %v4429_v57 = vrot.slane %v8494_v60, 2 }
 0x4a8   : > { %v3318_v56 = vsel %vm442_vm1, %v4249_v3, %v3317_v63  ;;  %v4431_v23 = vsel %vm619_vm3, %v4429_v57, %v4430_v2  ;;  %v8567_v57 = vld [vmem:[#allocation2 + $0x108] sm:$0xff] }
 0x4aa   : > { %3562 = vrot.lane.b32.xlu2 %v4426_v53, %s5387_s25  ;;  %3386 = vrot.lane.b32.xlu0 %v4250_v1, %s5386_s20 }
 0x4ab   : > { %4323 = vrot.lane.b32.xlu1 %v4252_v43, %s5386_s20 }
 0x4ac   : > { %v8492_v4 = vpop.permute.xlu2 %4307  ;;  %v3541_v30 = vpop.permute.xlu0 %3540 }
 0x4ad   : > { %v4478_v24 = vpop.permute.xlu1 %4477  ;;  %v3663_v49 = vsel %vm828_vm5, %v3631_v61, %v3541_v30 }
 0x4ae   : > { %5183 = vmatmul.msk.f32.gmra.mxu3 %vm1378_vm6, %v3663_v49  ;;  %v4601_v55 = vsel %vm828_vm5, %v4569_v44, %v4478_v24  ;;  %v3207_v44 = vld [vmem:[#allocation2 + $0x100] sm:$0x3] }
 0x4af   : > { %5250 = vmatmul.msk.f32.gmra.mxu1 %vm1378_vm6, %v4601_v55  ;;  %v3322_v55 = vrot.slane %v3207_v44, 1 }
 0x4b2   : > { %4325 = vrot.lane.b32.xlu2 %v4255_v9, %s5386_s20  ;;  %4499 = vrot.lane.b32.xlu0 %v4428_v11, %s5387_s25  ;;  %v8552_v11 = vld [vmem:[#allocation2 + $0xd8] sm:$0xff] }
 0x4b3   : > { %3388 = vrot.lane.b32.xlu1 %v3318_v56, %s5386_s20  ;;  %v2981_v56 = vrot.slane %v8552_v11, 2 }
 0x4b4   : > { %v8512_v53 = vpop.permute.xlu2 %3372  ;;  %v4304_v1 = vpop.permute.xlu0 %4303 }
 0x4b5   : > { %v4570_v27 = vsel %vm225_vm0, %v8300_v48, %v4304_v1  ;;  %v3543_v20 = vpop.permute.xlu1 %3542  ;;  %v3323_v1 = vsel %vm442_vm1, %v4254_v38, %v3322_v55 }
 0x4b6   : > { %v3664_v14 = vsel %vm828_vm5, %v3632_v47, %v3543_v20  ;;  %v4602_v3 = vsel %vm828_vm5, %v4570_v27, %v8450_v22  ;;  %v4143_v22 = vld [vmem:[#allocation2 + $0x100] sm:$0x3]  ;;  %v8560_v20 = vld [vmem:[#allocation2 + $0x110] sm:$0xff] }
 0x4b7   : > { %5184 = vmatmul.msk.f32.gmra.mxu3 %vm1378_vm6, %v3664_v14  ;;  %5251 = vmatmul.msk.f32.gmra.mxu1 %vm1378_vm6, %v4602_v3  ;;  %v4256_v6 = vrot.slane %v4143_v22, 1  ;;  %v4432_v63 = vrot.slane %v4143_v22, 2  ;;  %v4259_v22 = vrot.slane %v8560_v20, 1 }
 0x4b9   : > { %v4257_v30 = vsel %vm442_vm1, %v4254_v38, %v4256_v6  ;;  %v4433_v47 = vsel %vm619_vm3, %v4430_v2, %v4432_v63  ;;  %v4572_v38 = vsel %vm225_vm0, %v8350_v28, %v8492_v4  ;;  %v5356_v63 = vld [vmem:[#allocation2 + $0xe8] sm:$0x3] }
 0x4ba   : > { %3050 = vrot.lane.b32.xlu2 %v9752_v36, %s5387_s25  ;;  %3564 = vrot.lane.b32.xlu0 %v3494_v42, %s5387_s25 }
 0x4bb   : > { %4501 = vrot.lane.b32.xlu1 %v4431_v23, %s5387_s25 }
 0x4bc   : > { %v8533_v5 = vpop.permute.xlu2 %4485  ;;  %v3369_v59 = vpop.permute.xlu0 %3368 }
 0x4bd   : > { %v3633_v43 = vsel %vm225_vm0, %v8300_v48, %v3369_v59  ;;  %v4306_v39 = vpop.permute.xlu1 %4305  ;;  %v3498_v59 = vrot.slane %v3207_v44, 2 }
 0x4be   : > { %v3665_v61 = vsel %vm828_vm5, %v3633_v43, %v3545_v32  ;;  %v4571_v24 = vsel %vm225_vm0, %v8330_v41, %v4306_v39  ;;  %v4434_v43 = vrot.slane %v8567_v57, 2  ;;  %v4258_v39 = vrot.slane %v8567_v57, 1 }
 0x4bf   : > { %5185 = vmatmul.msk.f32.gmra.mxu3 %vm1378_vm6, %v3665_v61  ;;  %v3499_v6 = vsel %vm619_vm3, %v4430_v2, %v3498_v59  ;;  %v3210_v59 = vld [vmem:[#allocation2 + $0x118] sm:$0x3] }
 0x4c0   : > { %v4260_v61 = vsel %vm442_vm1, %v4258_v39, %v4259_v22 }
 0x4c2   : > { %3566 = vrot.lane.b32.xlu2 %v4431_v23, %s5387_s25  ;;  %3390 = vrot.lane.b32.xlu0 %v4255_v9, %s5386_s20  ;;  %v2982_v9 = vrot.slane %v8549_v58, 2  ;;  %v4435_v23 = vrot.slane %v8560_v20, 2 }
 0x4c3   : > { %4327 = vrot.lane.b32.xlu1 %v4257_v30, %s5386_s20  ;;  %v4146_v30 = vld [vmem:[#allocation2 + $0x118] sm:$0x3] }
 0x4c4   : > { %v8545_v49 = vpop.permute.xlu2 %3550  ;;  %v4482_v48 = vpop.permute.xlu0 %4481  ;;  %v2983_v27 = vsel %vm619_vm3, %v2981_v56, %v2982_v9  ;;  %v4436_v4 = vsel %vm619_vm3, %v4434_v43, %v4435_v23  ;;  %v4261_v55 = vrot.slane %v4146_v30, 1  ;;  %v2984_v56 = vrot.slane %v5356_v63, 2  ;;  %v8621_v43 = vld [vmem:[#allocation2 + $0x128] sm:$0xff] }
 0x4c5   : > { %v3371_v54 = vpop.permute.xlu1 %3370  ;;  %v4603_v32 = vsel %vm828_vm5, %v4571_v24, %v4482_v48  ;;  %v3635_v48 = vsel %vm225_vm0, %v8350_v28, %v8512_v53 }
 0x4c6   : > { %5252 = vmatmul.msk.f32.gmra.mxu1 %vm1378_vm6, %v4603_v32  ;;  %v3634_v31 = vsel %vm225_vm0, %v8330_v41, %v3371_v54  ;;  %v2985_v28 = vsel %vm619_vm3, %v2982_v9, %v2984_v56 }
 0x4ca   : > { %3392 = vrot.lane.b32.xlu2 %v3323_v1, %s5386_s20  ;;  %4503 = vrot.lane.b32.xlu0 %v4433_v47, %s5387_s25  ;;  %v4262_v47 = vsel %vm442_vm1, %v4259_v22, %v4261_v55 }
 0x4cb   : > { %3052 = vrot.lane.b32.xlu1 %v2983_v27, %s5387_s25 }
 0x4cc   : > { %v8565_v14 = vpop.permute.xlu2 %4313  ;;  %v3547_v3 = vpop.permute.xlu0 %3546 }
 0x4cd   : > { %v3666_v42 = vsel %vm828_vm5, %v3634_v31, %v3547_v3  ;;  %v4484_v36 = vpop.permute.xlu1 %4483  ;;  %v8607_v31 = vld [vmem:[#allocation2 + $0xf8] sm:$0xff] }
 0x4ce   : > { %5186 = vmatmul.msk.f32.gmra.mxu3 %vm1378_vm6, %v3666_v42  ;;  %v4604_v41 = vsel %vm828_vm5, %v4572_v38, %v4484_v36  ;;  %v2987_v3 = vrot.slane %v8607_v31, 2  ;;  %v4437_v38 = vrot.slane %v4146_v30, 2  ;;  %v8613_v42 = vld [vmem:[#allocation2 + $0xf0] sm:$0xff] }
 0x4cf   : > { %5253 = vmatmul.msk.f32.gmra.mxu1 %vm1378_vm6, %v4604_v41  ;;  %v2986_v36 = vrot.slane %v8613_v42, 2 }
 0x4d1   : > { %v2988_v41 = vsel %vm619_vm3, %v2986_v36, %v2987_v3 }
 0x4d2   : > { %4505 = vrot.lane.b32.xlu2 %v4436_v4, %s5387_s25  ;;  %4329 = vrot.lane.b32.xlu0 %v4260_v61, %s5386_s20 }
 0x4d3   : > { %3568 = vrot.lane.b32.xlu1 %v3499_v6, %s5387_s25 }
 0x4d4   : > { %v8586_v44 = vpop.permute.xlu2 %3378  ;;  %v4310_v24 = vpop.permute.xlu0 %4309 }
 0x4d5   : > { %v4573_v54 = vsel %vm225_vm0, %v8373_v21, %v4310_v24  ;;  %v3549_v32 = vpop.permute.xlu1 %3548  ;;  %v3503_v24 = vrot.slane %v3210_v59, 2 }
 0x4d6   : > { %v3667_v2 = vsel %vm828_vm5, %v3635_v48, %v3549_v32  ;;  %v4605_v1 = vsel %vm828_vm5, %v4573_v54, %v8533_v5  ;;  %v8626_v48 = vld [vmem:[#allocation2 + $0x120] sm:$0xff]  ;;  %v3327_v54 = vrot.slane %v3210_v59, 1 }
 0x4d7   : > { %5187 = vmatmul.msk.f32.gmra.mxu3 %vm1378_vm6, %v3667_v2  ;;  %5254 = vmatmul.msk.f32.gmra.mxu1 %vm1378_vm6, %v4605_v1  ;;  %v4263_v32 = vrot.slane %v8626_v48, 1  ;;  %v3504_v55 = vsel %vm619_vm3, %v4435_v23, %v3503_v24 }
 0x4da   : > { %4331 = vrot.lane.b32.xlu2 %v4262_v47, %s5386_s20  ;;  %3054 = vrot.lane.b32.xlu0 %v2985_v28, %s5387_s25  ;;  %v8649_v28 = vrot.slane %v8621_v43, 2 }
 0x4db   : > { %3394 = vrot.lane.b32.xlu1 %v4260_v61, %s5386_s20 }
 0x4dc   : > { %v8603_v21 = vpop.permute.xlu2 %4491  ;;  %v3375_v53 = vpop.permute.xlu0 %3374 }
 0x4dd   : > { %v3636_v5 = vsel %vm225_vm0, %v8278_v46, %v3375_v53  ;;  %v4312_v27 = vpop.permute.xlu1 %4311  ;;  %v4438_v46 = vsel %vm619_vm3, %v4435_v23, %v4437_v38  ;;  %v4575_v23 = vsel %vm225_vm0, %v8309_v37, %v8565_v14  ;;  %v4149_v38 = vld [vmem:[#allocation2 + $0x130] sm:$0x3] }
 0x4de   : > { %v3668_v9 = vsel %vm828_vm5, %v3636_v5, %v8545_v49  ;;  %v4574_v49 = vsel %vm225_vm0, %v8398_v51, %v4312_v27  ;;  %v3328_v51 = vsel %vm442_vm1, %v4259_v22, %v3327_v54  ;;  %v5359_v5 = vld [vmem:[#allocation2 + $0x100] sm:$0x3]  ;;  %v3213_v54 = vld [vmem:[#allocation2 + $0x130] sm:$0x3] }
 0x4df   : > { %5188 = vmatmul.msk.f32.gmra.mxu3 %vm1378_vm6, %v3668_v9  ;;  %v2989_v27 = vrot.slane %v5359_v5, 2 }
 0x4e1   : > { %v2990_v14 = vsel %vm619_vm3, %v2987_v3, %v2989_v27 }
 0x4e2   : > { %3056 = vrot.lane.b32.xlu2 %v2988_v41, %s5387_s25  ;;  %3570 = vrot.lane.b32.xlu0 %v4436_v4, %s5387_s25  ;;  %v8630_v4 = vrot.slane %v8621_v43, 1 }
 0x4e3   : > { %4507 = vrot.lane.b32.xlu1 %v4438_v46, %s5387_s25  ;;  %v3638_v46 = vsel %vm225_vm0, %v8309_v37, %v8586_v44  ;;  %v8679_v44 = vld [vmem:[#allocation2 + $0x140] sm:$0xff] }
 0x4e4   : > { %v3557_v39 = vpop.permute.xlu2 %3556  ;;  %v4488_v61 = vpop.permute.xlu0 %4487  ;;  %v4265_v63 = vsel %vm442_vm1, %v4263_v32, %v8630_v4 }
 0x4e5   : > { %v4606_v6 = vsel %vm828_vm5, %v4574_v49, %v4488_v61  ;;  %v3377_v30 = vpop.permute.xlu1 %3376  ;;  %v4442_v61 = vrot.slane %v4149_v38, 2 }
 0x4e6   : > { %5255 = vmatmul.msk.f32.gmra.mxu1 %vm1378_vm6, %v4606_v6  ;;  %v3637_v56 = vsel %vm225_vm0, %v8266_v12, %v3377_v30  ;;  %v4439_v12 = vrot.slane %v8626_v48, 2  ;;  %v4266_v6 = vrot.slane %v4149_v38, 1 }
 0x4e7   : > { %v4443_v24 = vsel %vm619_vm3, %v8649_v28, %v4442_v61 }
 0x4e8   : > { %v4441_v9 = vsel %vm619_vm3, %v4439_v12, %v8649_v28  ;;  %v4267_v37 = vsel %vm442_vm1, %v8630_v4, %v4266_v6  ;;  %v8697_v12 = vld [vmem:[#allocation2 + $0x108] sm:$0xff] }
 0x4ea   : > { %3572 = vrot.lane.b32.xlu2 %v3504_v55, %s5387_s25  ;;  %3396 = vrot.lane.b32.xlu0 %v3328_v51, %s5386_s20  ;;  %v8684_v55 = vld [vmem:[#allocation2 + $0x138] sm:$0xff] }
 0x4eb   : > { %4333 = vrot.lane.b32.xlu1 %v4265_v63, %s5386_s20  ;;  %v4268_v27 = vrot.slane %v8684_v55, 1 }
 0x4ec   : > { %v8642_v2 = vpop.permute.xlu2 %4319  ;;  %v3553_v1 = vpop.permute.xlu0 %3552 }
 0x4ed   : > { %v3669_v22 = vsel %vm828_vm5, %v3637_v56, %v3553_v1  ;;  %v4490_v47 = vpop.permute.xlu1 %4489  ;;  %v8689_v56 = vrot.slane %v8679_v44, 1  ;;  %v8691_v1 = vld [vmem:[#allocation2 + $0x110] sm:$0xff] }
 0x4ee   : > { %v4607_v53 = vsel %vm828_vm5, %v4575_v23, %v4490_v47  ;;  %5189 = vmatmul.msk.f32.gmra.mxu3 %vm1378_vm6, %v3669_v22  ;;  %v2992_v23 = vrot.slane %v8691_v1, 2  ;;  %v3332_v47 = vrot.slane %v3213_v54, 1 }
 0x4ef   : > { %5256 = vmatmul.msk.f32.gmra.mxu1 %vm1378_vm6, %v4607_v53  ;;  %v4021_v53 = vpop.f32.mrf.mxu0 }
 0x4f2   : > { %3398 = vrot.lane.b32.xlu2 %v4265_v63, %s5386_s20  ;;  %4509 = vrot.lane.b32.xlu0 %v4441_v9, %s5387_s25 }
 0x4f3   : > { %3058 = vrot.lane.b32.xlu1 %v2990_v14, %s5387_s25  ;;  %v3809_v5 = vpop.f32.mrf.mxu3 }
 0x4f4   : > { %v8661_v36 = vpop.permute.xlu2 %3384  ;;  %v4316_v41 = vpop.permute.xlu0 %4315  ;;  %v4022_v38 = vadd.f32 %v4021_v53, %v3809_v5  ;;  %v4444_v5 = vrot.slane %v8684_v55, 2 }
 0x4f5   : > { %v4576_v59 = vsel %vm225_vm0, %v8297_v33, %v4316_v41  ;;  %v3555_v49 = vpop.permute.xlu1 %3554  ;;  %v8710_v41 = vld [vmem:[%s9317_s4] ss:$0 sm:$0xff] }
 0x4f6   : > { %v3670_v3 = vsel %vm828_vm5, %v3638_v46, %v3555_v49  ;;  %v4608_v30 = vsel %vm828_vm5, %v4576_v59, %v8603_v21 }
 0x4f7   : > { %5190 = vmatmul.msk.f32.gmra.mxu3 %vm1378_vm6, %v3670_v3  ;;  %5257 = vmatmul.msk.f32.gmra.mxu1 %vm1378_vm6, %v4608_v30 }
 0x4fa   : > { %4511 = vrot.lane.b32.xlu2 %v4443_v24, %s5387_s25  ;;  %4335 = vrot.lane.b32.xlu0 %v4267_v37, %s5386_s20  ;;  %v3508_v37 = vrot.slane %v3213_v54, 2 }
 0x4fb   : > { %3574 = vrot.lane.b32.xlu1 %v4441_v9, %s5387_s25  ;;  %v4270_v9 = vsel %vm442_vm1, %v4268_v27, %v8689_v56 }
 0x4fc   : > { %v8682_v21 = vpop.permute.xlu2 %4497  ;;  %v3381_v32 = vpop.permute.xlu0 %3380  ;;  %v3509_v27 = vsel %vm619_vm3, %v8649_v28, %v3508_v37  ;;  %v4578_v28 = vsel %vm225_vm0, %v8371_v18, %v8642_v2 }
 0x4fd   : > { %v3639_v51 = vsel %vm225_vm0, %v8297_v33, %v3381_v32  ;;  %v4318_v63 = vpop.permute.xlu1 %4317  ;;  %v2991_v33 = vrot.slane %v8697_v12, 2 }
 0x4fe   : > { %v3671_v22 = vsel %vm828_vm5, %v3639_v51, %v3557_v39  ;;  %v3333_v39 = vsel %vm442_vm1, %v8630_v4, %v3332_v47  ;;  %v4577_v59 = vsel %vm225_vm0, %v8385_v26, %v4318_v63  ;;  %v5362_v4 = vld [vmem:[#allocation2 + $0x118] sm:$0x3]  ;;  %v8721_v51 = vrot.slane %v8679_v44, 2  ;;  %v9753_v47 = vld [vmem:[#allocation7_spill] sm:$0xff] }
 0x4ff   : > { %5191 = vmatmul.msk.f32.gmra.mxu3 %vm1378_vm6, %v3671_v22  ;;  %v2993_v14 = vsel %vm619_vm3, %v2991_v33, %v2992_v23  ;;  %v2994_v24 = vrot.slane %v5362_v4, 2  ;;  %v4024_v22 = vpop.f32.mrf.mxu0 }
 0x501   : > { %v2995_v54 = vsel %vm619_vm3, %v2992_v23, %v2994_v24 }
 0x502   : > { %4337 = vrot.lane.b32.xlu2 %v4270_v9, %s5386_s20  ;;  %3060 = vrot.lane.b32.xlu0 %v2993_v14, %s5387_s25  ;;  %v3812_v63 = vpop.f32.mrf.mxu3  ;;  %v4446_v14 = vsel %vm619_vm3, %v4444_v5, %v8721_v51 }
 0x503   : > { %3400 = vrot.lane.b32.xlu1 %v3333_v39, %s5386_s20  ;;  %v4748_v46 = vpop.f32.mrf.mxu1  ;;  %v4152_v39 = vld [vmem:[#allocation2 + $0x148] sm:$0x3] }
 0x504   : > { %v4844_v49 = vadd.f32 %v4748_v46, %v4022_v38  ;;  %v8715_v61 = vpop.permute.xlu2 %3562  ;;  %v4494_v6 = vpop.permute.xlu0 %4493  ;;  %v4025_v38 = vadd.f32 %v4024_v22, %v3812_v63  ;;  %v4271_v37 = vrot.slane %v4152_v39, 1  ;;  %v9754_v63 = vld [vmem:[#allocation8_spill] sm:$0xff] }
 0x505   : > { %v4609_v3 = vsel %vm828_vm5, %v4577_v59, %v4494_v6  ;;  %v3383_v30 = vpop.permute.xlu1 %3382 }
 0x506   : > { %v4880_v32 = vadd.f32 %v8710_v41, %v4844_v49  ;;  %5258 = vmatmul.msk.f32.gmra.mxu1 %vm1378_vm6, %v4609_v3  ;;  %v3640_v23 = vsel %vm225_vm0, %v8385_v26, %v3383_v30  ;;  %v3216_v26 = vld [vmem:[#allocation2 + $0x148] sm:$0x3] }
 0x507   : > { %v4027_v22 = vpop.f32.mrf.mxu0 }
 0x508   : > { %v4912_v53 = vadd.f32 %v4880_v32, %v9753_v47 }
 0x50a   : > { %v4944_v33 = vmax.f32 %v4912_v53, 0.0  ;;  %3062 = vrot.lane.b32.xlu2 %v2995_v54, %s5387_s25  ;;  %3576 = vrot.lane.b32.xlu0 %v3509_v27, %s5387_s25  ;;  %v4272_v53 = vsel %vm442_vm1, %v8689_v56, %v4271_v37  ;;  %v5363_v54 = vld [vmem:[#allocation2 + $0xc8] sm:$0xff] }
 0x50b   : > { %4513 = vrot.lane.b32.xlu1 %v4446_v14, %s5387_s25  ;;  %v3129_v27 = vsel %vm225_vm0, %v5363_v54, %v8068_v7  ;;  %v8796_v54 = vld [vmem:[#allocation2 + $0x150] sm:$0xff] }
 0x50c   : > { %4976 = vst.msk [vmem:[%s8730_s13] sm:$0xff] %vm225_vm0, %v4944_v33  ;;  %v4751_v46 = vpop.f32.mrf.mxu1  ;;  %v8742_v59 = vpop.permute.xlu2 %4325 }
 0x50d   : > { %v4845_v49 = vadd.f32 %v4751_v46, %v4025_v38  ;;  %v3559_v6 = vpop.permute.xlu0 %3558  ;;  %v4496_v3 = vpop.permute.xlu1 %4495  ;;  %v3337_v46 = vrot.slane %v3216_v26, 1 }
 0x50e   : > { %v3672_v4 = vsel %vm828_vm5, %v3640_v23, %v3559_v6  ;;  %v4610_v24 = vsel %vm828_vm5, %v4578_v28, %v4496_v3  ;;  %v3641_v28 = vsel %vm225_vm0, %v8371_v18, %v8661_v36  ;;  %v4447_v6 = vrot.slane %v4152_v39, 2  ;;  %v8780_v39 = vld [vmem:[#allocation2 + $0x120] sm:$0xff] }
 0x50f   : > { %v4881_v32 = vadd.f32 %v8710_v41, %v4845_v49  ;;  %5192 = vmatmul.msk.f32.gmra.mxu3 %vm1378_vm6, %v3672_v4  ;;  %5259 = vmatmul.msk.f32.gmra.mxu1 %vm1378_vm6, %v4610_v24  ;;  %v8772_v4 = vld [vmem:[#allocation2 + $0x128] sm:$0xff]  ;;  %v2996_v37 = vrot.slane %v8780_v39, 2 }
 0x510   : > { %v2997_v24 = vrot.slane %v8772_v4, 2 }
 0x511   : > { %v4913_v2 = vadd.f32 %v4881_v32, %v9754_v63  ;;  %v3815_v47 = vpop.f32.mrf.mxu3  ;;  %v9755_v32 = vld [vmem:[#allocation4_spill] sm:$0xff]  ;;  %v3338_v63 = vsel %vm442_vm1, %v8689_v56, %v3337_v46 }
 0x512   : > { %v4028_v30 = vadd.f32 %v4027_v22, %v3815_v47  ;;  %3578 = vrot.lane.b32.xlu2 %v4446_v14, %s5387_s25  ;;  %3402 = vrot.lane.b32.xlu0 %v4270_v9, %s5386_s20  ;;  %v8791_v47 = vld [vmem:[#allocation2 + $0x158] sm:$0xff] }
 0x513   : > { %v4945_v5 = vmax.f32 %v4913_v2, 0.0  ;;  %4339 = vrot.lane.b32.xlu1 %v4272_v53, %s5386_s20  ;;  %v4448_v2 = vsel %vm619_vm3, %v8721_v51, %v4447_v6  ;;  %v4030_v53 = vpop.f32.mrf.mxu0 }
 0x514   : > { %v3051_v33 = vpop.permute.xlu2 %3050  ;;  %v4754_v38 = vpop.f32.mrf.mxu1 }
 0x515   : > { %4977 = vst.msk [vmem:[%s8730_s13 + $0x8] sm:$0xff] %vm225_vm0, %v4945_v5  ;;  %v3161_v9 = vsel %vm828_vm5, %v3129_v27, %v3051_v33  ;;  %v4322_v14 = vpop.permute.xlu0 %4321  ;;  %v4846_v23 = vadd.f32 %v4754_v38, %v4028_v30  ;;  %v3561_v49 = vpop.permute.xlu1 %3560  ;;  %v8801_v33 = vrot.slane %v8791_v47, 2  ;;  %v8804_v38 = vrot.slane %v8791_v47, 1 }
 0x516   : > { %v4579_v3 = vsel %vm225_vm0, %v8452_v52, %v4322_v14  ;;  %v3673_v7 = vsel %vm828_vm5, %v3641_v28, %v3561_v49  ;;  %5228 = vmatmul.msk.f32.gmra.mxu0 %vm1378_vm6, %v3161_v9  ;;  %v3513_v9 = vrot.slane %v3216_v26, 2  ;;  %v4273_v49 = vrot.slane %v8796_v54, 1 }
 0x517   : > { %v4882_v18 = vadd.f32 %v8710_v41, %v4846_v23  ;;  %5193 = vmatmul.msk.f32.gmra.mxu3 %vm1378_vm6, %v3673_v7  ;;  %v4611_v36 = vsel %vm828_vm5, %v4579_v3, %v8682_v21  ;;  %v2998_v21 = vsel %vm619_vm3, %v2996_v37, %v2997_v24  ;;  %v4449_v23 = vrot.slane %v8796_v54, 2 }
 0x518   : > { %5260 = vmatmul.msk.f32.gmra.mxu1 %vm1378_vm6, %v4611_v36  ;;  %v4275_v3 = vsel %vm442_vm1, %v4273_v49, %v8804_v38 }
 0x519   : > { %v4914_v22 = vadd.f32 %v4882_v18, %v9755_v32  ;;  %v4451_v6 = vsel %vm619_vm3, %v4449_v23, %v8801_v33 }
 0x51a   : > { %3404 = vrot.lane.b32.xlu2 %v3338_v63, %s5386_s20  ;;  %4515 = vrot.lane.b32.xlu0 %v4448_v2, %s5387_s25  ;;  %v3818_v46 = vpop.f32.mrf.mxu3  ;;  %v5366_v2 = vld [vmem:[#allocation2 + $0x130] sm:$0x3] }
 0x51b   : > { %v4946_v30 = vmax.f32 %v4914_v22, 0.0  ;;  %3064 = vrot.lane.b32.xlu1 %v2998_v21, %s5387_s25  ;;  %v4031_v7 = vadd.f32 %v4030_v53, %v3818_v46  ;;  %v2999_v21 = vrot.slane %v5366_v2, 2  ;;  %v4033_v53 = vpop.f32.mrf.mxu0  ;;  %v9756_v46 = vld [vmem:[#allocation5_spill] sm:$0xff] }
 0x51c   : > { %v8794_v5 = vpop.permute.xlu2 %3566 }
 0x51d   : > { %4978 = vst.msk [vmem:[%s8730_s13 + $0x10] sm:$0xff] %vm225_vm0, %v4946_v30  ;;  %v3387_v56 = vpop.permute.xlu0 %3386  ;;  %v4324_v27 = vpop.permute.xlu1 %4323 }
 0x51e   : > { %v3642_v28 = vsel %vm225_vm0, %v8452_v52, %v3387_v56  ;;  %v3514_v52 = vsel %vm619_vm3, %v8721_v51, %v3513_v9  ;;  %v4580_v37 = vsel %vm225_vm0, %v8445_v62, %v4324_v27  ;;  %v3000_v27 = vsel %vm619_vm3, %v2997_v24, %v2999_v21 }
 0x51f   : > { %v3674_v14 = vsel %vm828_vm5, %v3642_v28, %v8715_v61  ;;  %v4155_v61 = vld [vmem:[#allocation2 + $0x160] sm:$0x3] }
 0x520   : > { %5194 = vmatmul.msk.f32.gmra.mxu3 %vm1378_vm6, %v3674_v14  ;;  %v4276_v63 = vrot.slane %v4155_v61, 1  ;;  %v4452_v21 = vrot.slane %v4155_v61, 2 }
 0x522   : > { %4517 = vrot.lane.b32.xlu2 %v4451_v6, %s5387_s25  ;;  %4341 = vrot.lane.b32.xlu0 %v4275_v3, %s5386_s20  ;;  %v3821_v56 = vpop.f32.mrf.mxu3  ;;  %v4277_v9 = vsel %vm442_vm1, %v8804_v38, %v4276_v63 }
 0x523   : > { %3580 = vrot.lane.b32.xlu1 %v3514_v52, %s5387_s25  ;;  %v4757_v26 = vpop.f32.mrf.mxu1  ;;  %v4034_v23 = vadd.f32 %v4033_v53, %v3821_v56  ;;  %v4581_v52 = vsel %vm225_vm0, %v8494_v60, %v8742_v59  ;;  %v8853_v59 = vld [vmem:[#allocation2 + $0x138] sm:$0xff] }
 0x524   : > { %v4847_v18 = vadd.f32 %v4757_v26, %v4031_v7  ;;  %v8822_v36 = vpop.permute.xlu2 %3392 }
 0x525   : > { %v4500_v32 = vpop.permute.xlu0 %4499  ;;  %v3389_v22 = vpop.permute.xlu1 %3388 }
 0x526   : > { %v4883_v30 = vadd.f32 %v8710_v41, %v4847_v18  ;;  %v4612_v51 = vsel %vm828_vm5, %v4580_v37, %v4500_v32  ;;  %v3643_v24 = vsel %vm225_vm0, %v8445_v62, %v3389_v22  ;;  %v8845_v32 = vld [vmem:[#allocation2 + $0x140] sm:$0xff]  ;;  %v3001_v62 = vrot.slane %v8853_v59, 2  ;;  %v4036_v22 = vpop.f32.mrf.mxu0 }
 0x527   : > { %5261 = vmatmul.msk.f32.gmra.mxu1 %vm1378_vm6, %v4612_v51  ;;  %v3002_v63 = vrot.slane %v8845_v32, 2  ;;  %v9757_v51 = vld [vmem:[#allocation9_spill] sm:$0xff] }
 0x528   : > { %v4915_v28 = vadd.f32 %v4883_v30, %v9756_v46 }
 0x529   : > { %v3003_v46 = vsel %vm619_vm3, %v3001_v62, %v3002_v63 }
 0x52a   : > { %v4947_v14 = vmax.f32 %v4915_v28, 0.0  ;;  %4343 = vrot.lane.b32.xlu2 %v4277_v9, %s5386_s20  ;;  %3066 = vrot.lane.b32.xlu0 %v3000_v27, %s5387_s25  ;;  %v4453_v28 = vsel %vm619_vm3, %v8801_v33, %v4452_v21  ;;  %v3219_v9 = vld [vmem:[#allocation2 + $0x160] sm:$0x3] }
 0x52b   : > { %3406 = vrot.lane.b32.xlu1 %v4275_v3, %s5386_s20 }
 0x52c   : > { %4979 = vst.msk [vmem:[%s8730_s13 + $0x18] sm:$0xff] %vm225_vm0, %v4947_v14  ;;  %v4760_v49 = vpop.f32.mrf.mxu1  ;;  %v8838_v7 = vpop.permute.xlu2 %4505  ;;  %v8865_v14 = vld [vmem:[#allocation2 + $0x170] sm:$0xff] }
 0x52d   : > { %v4848_v26 = vadd.f32 %v4760_v49, %v4034_v23  ;;  %v3565_v18 = vpop.permute.xlu0 %3564  ;;  %v4502_v37 = vpop.permute.xlu1 %4501 }
 0x52e   : > { %v3675_v3 = vsel %vm828_vm5, %v3643_v24, %v3565_v18  ;;  %v4613_v2 = vsel %vm828_vm5, %v4581_v52, %v4502_v37  ;;  %v3518_v18 = vrot.slane %v3219_v9, 2  ;;  %v3342_v37 = vrot.slane %v3219_v9, 1 }
 0x52f   : > { %v4884_v30 = vadd.f32 %v8710_v41, %v4848_v26  ;;  %5195 = vmatmul.msk.f32.gmra.mxu3 %vm1378_vm6, %v3675_v3  ;;  %5262 = vmatmul.msk.f32.gmra.mxu1 %vm1378_vm6, %v4613_v2  ;;  %v8876_v2 = vrot.slane %v8865_v14, 1 }
 0x531   : > { %v4916_v53 = vadd.f32 %v4884_v30, %v9757_v51  ;;  %v3824_v56 = vpop.f32.mrf.mxu3 }
 0x532   : > { %v4037_v61 = vadd.f32 %v4036_v22, %v3824_v56  ;;  %3068 = vrot.lane.b32.xlu2 %v3003_v46, %s5387_s25  ;;  %3582 = vrot.lane.b32.xlu0 %v4451_v6, %s5387_s25  ;;  %v8871_v6 = vld [vmem:[#allocation2 + $0x168] sm:$0xff]  ;;  %v4039_v46 = vpop.f32.mrf.mxu0 }
 0x533   : > { %v4948_v27 = vmax.f32 %v4916_v53, 0.0  ;;  %4519 = vrot.lane.b32.xlu1 %v4453_v28, %s5387_s25  ;;  %v4278_v62 = vrot.slane %v8871_v6, 1  ;;  %v9758_v22 = vld [vmem:[#allocation10_spill] sm:$0xff]  ;;  %v3519_v53 = vsel %vm619_vm3, %v8801_v33, %v3518_v18  ;;  %v3130_v33 = vsel %vm225_vm0, %v8552_v11, %v8110_v50 }
 0x534   : > { %v8867_v23 = vpop.permute.xlu2 %4331  ;;  %v4763_v49 = vpop.f32.mrf.mxu1  ;;  %v5369_v18 = vld [vmem:[#allocation2 + $0x148] sm:$0x3]  ;;  %v4454_v50 = vrot.slane %v8871_v6, 2 }
 0x535   : > { %4980 = vst.msk [vmem:[%s8730_s13 + $0x20] sm:$0xff] %vm225_vm0, %v4948_v27  ;;  %v3391_v52 = vpop.permute.xlu0 %3390  ;;  %v4849_v24 = vadd.f32 %v4763_v49, %v4037_v61  ;;  %v4328_v26 = vpop.permute.xlu1 %4327  ;;  %v4280_v56 = vsel %vm442_vm1, %v4278_v62, %v8876_v2  ;;  %v8903_v27 = vrot.slane %v8865_v14, 2 }
 0x536   : > { %v3644_v3 = vsel %vm225_vm0, %v8494_v60, %v3391_v52  ;;  %v3343_v60 = vsel %vm442_vm1, %v8804_v38, %v3342_v37  ;;  %v4582_v38 = vsel %vm225_vm0, %v8487_v10, %v4328_v26  ;;  %v3004_v37 = vrot.slane %v5369_v18, 2  ;;  %v8938_v18 = vld [vmem:[#allocation2 + $0x188] sm:$0xff] }
 0x537   : > { %v4885_v21 = vadd.f32 %v8710_v41, %v4849_v24  ;;  %v3676_v30 = vsel %vm828_vm5, %v3644_v3, %v8794_v5  ;;  %v4456_v11 = vsel %vm619_vm3, %v4454_v50, %v8903_v27 }
 0x538   : > { %5196 = vmatmul.msk.f32.gmra.mxu3 %vm1378_vm6, %v3676_v30  ;;  %v3005_v3 = vsel %vm619_vm3, %v3002_v63, %v3004_v37 }
 0x539   : > { %v4917_v51 = vadd.f32 %v4885_v21, %v9758_v22  ;;  %v4158_v21 = vld [vmem:[#allocation2 + $0x178] sm:$0x3] }
 0x53a   : > { %3584 = vrot.lane.b32.xlu2 %v3519_v53, %s5387_s25  ;;  %3408 = vrot.lane.b32.xlu0 %v3343_v60, %s5386_s20  ;;  %v3827_v49 = vpop.f32.mrf.mxu3 }
 0x53b   : > { %v4949_v5 = vmax.f32 %v4917_v51, 0.0  ;;  %4345 = vrot.lane.b32.xlu1 %v4280_v56, %s5386_s20  ;;  %v4040_v26 = vadd.f32 %v4039_v46, %v3827_v49  ;;  %v3645_v51 = vsel %vm225_vm0, %v8487_v10, %v8822_v36  ;;  %v9759_v10 = vld [vmem:[#allocation11_spill] sm:$0xff] }
 0x53c   : > { %v8893_v61 = vpop.permute.xlu2 %3056 }
 0x53d   : > { %4981 = vst.msk [vmem:[%s8730_s13 + $0x28] sm:$0xff] %vm225_vm0, %v4949_v5  ;;  %v4504_v28 = vpop.permute.xlu0 %4503  ;;  %v3053_v9 = vpop.permute.xlu1 %3052  ;;  %v4281_v5 = vrot.slane %v4158_v21, 1 }
 0x53e   : > { %v4614_v52 = vsel %vm828_vm5, %v4582_v38, %v4504_v28  ;;  %v3162_v24 = vsel %vm828_vm5, %v3130_v33, %v3053_v9  ;;  %v4042_v38 = vpop.f32.mrf.mxu0 }
 0x53f   : > { %5229 = vmatmul.msk.f32.gmra.mxu0 %vm1378_vm6, %v3162_v24  ;;  %5263 = vmatmul.msk.f32.gmra.mxu1 %vm1378_vm6, %v4614_v52  ;;  %v4282_v52 = vsel %vm442_vm1, %v8876_v2, %v4281_v5 }
 0x542   : > { %3410 = vrot.lane.b32.xlu2 %v4280_v56, %s5386_s20  ;;  %4521 = vrot.lane.b32.xlu0 %v4456_v11, %s5387_s25  ;;  %v4457_v56 = vrot.slane %v4158_v21, 2  ;;  %v3830_v9 = vpop.f32.mrf.mxu3  ;;  %v3131_v21 = vsel %vm225_vm0, %v8549_v58, %v8120_v8 }
 0x543   : > { %3070 = vrot.lane.b32.xlu1 %v3005_v3, %s5387_s25  ;;  %v4766_v30 = vpop.f32.mrf.mxu1  ;;  %v4043_v37 = vadd.f32 %v4042_v38, %v3830_v9  ;;  %v8945_v3 = vld [vmem:[#allocation2 + $0x180] sm:$0xff]  ;;  %v9760_v38 = vld [vmem:[#allocation12_spill] sm:$0xff] }
 0x544   : > { %v4850_v62 = vadd.f32 %v4766_v30, %v4040_v26  ;;  %v8918_v22 = vpop.permute.xlu2 %3572  ;;  %v4458_v49 = vsel %vm619_vm3, %v8903_v27, %v4457_v56  ;;  %v4283_v58 = vrot.slane %v8945_v3, 1 }
 0x545   : > { %v4330_v53 = vpop.permute.xlu0 %4329  ;;  %v3569_v60 = vpop.permute.xlu1 %3568 }
 0x546   : > { %v4886_v46 = vadd.f32 %v8710_v41, %v4850_v62  ;;  %v4583_v63 = vsel %vm225_vm0, %v8567_v57, %v4330_v53  ;;  %v3677_v33 = vsel %vm828_vm5, %v3645_v51, %v3569_v60  ;;  %v8950_v53 = vld [vmem:[#allocation2 + $0x158] sm:$0xff] }
 0x547   : > { %5197 = vmatmul.msk.f32.gmra.mxu3 %vm1378_vm6, %v3677_v33  ;;  %v4615_v28 = vsel %vm828_vm5, %v4583_v63, %v8838_v7  ;;  %v3222_v7 = vld [vmem:[#allocation2 + $0x178] sm:$0x3]  ;;  %v3007_v60 = vrot.slane %v8950_v53, 2  ;;  %v8959_v63 = vld [vmem:[#allocation2 + $0x150] sm:$0xff]  ;;  %v4045_v33 = vpop.f32.mrf.mxu0 }
 0x548   : > { %v4918_v36 = vadd.f32 %v4886_v46, %v9759_v10  ;;  %5264 = vmatmul.msk.f32.gmra.mxu1 %vm1378_vm6, %v4615_v28  ;;  %v3347_v5 = vrot.slane %v3222_v7, 1  ;;  %v3006_v8 = vrot.slane %v8959_v63, 2 }
 0x54a   : > { %v4950_v24 = vmax.f32 %v4918_v36, 0.0  ;;  %4523 = vrot.lane.b32.xlu2 %v4458_v49, %s5387_s25  ;;  %4347 = vrot.lane.b32.xlu0 %v4282_v52, %s5386_s20  ;;  %v3008_v10 = vsel %vm619_vm3, %v3006_v8, %v3007_v60  ;;  %v3348_v52 = vsel %vm442_vm1, %v8876_v2, %v3347_v5 }
 0x54b   : > { %3586 = vrot.lane.b32.xlu1 %v4456_v11, %s5387_s25  ;;  %v8954_v11 = vrot.slane %v8938_v18, 1 }
 0x54c   : > { %4982 = vst.msk [vmem:[%s8730_s13 + $0x30] sm:$0xff] %vm225_vm0, %v4950_v24  ;;  %v4769_v50 = vpop.f32.mrf.mxu1  ;;  %v8943_v26 = vpop.permute.xlu2 %3398 }
 0x54d   : > { %v4851_v30 = vadd.f32 %v4769_v50, %v4043_v37  ;;  %v3055_v62 = vpop.permute.xlu0 %3054  ;;  %v3395_v51 = vpop.permute.xlu1 %3394  ;;  %v4285_v36 = vsel %vm442_vm1, %v4283_v58, %v8954_v11 }
 0x54e   : > { %v3163_v56 = vsel %vm828_vm5, %v3131_v21, %v3055_v62  ;;  %v3523_v21 = vrot.slane %v3222_v7, 2  ;;  %v3646_v2 = vsel %vm225_vm0, %v8567_v57, %v3395_v51  ;;  %v4459_v57 = vrot.slane %v8945_v3, 2 }
 0x54f   : > { %v4887_v46 = vadd.f32 %v8710_v41, %v4851_v30  ;;  %5230 = vmatmul.msk.f32.gmra.mxu0 %vm1378_vm6, %v3163_v56  ;;  %v5372_v30 = vld [vmem:[#allocation2 + $0x160] sm:$0x3]  ;;  %v3132_v56 = vsel %vm225_vm0, %v8613_v42, %v8083_v19  ;;  %v8989_v19 = vrot.slane %v8938_v18, 2 }
 0x550   : > { %v3009_v62 = vrot.slane %v5372_v30, 2  ;;  %v3164_v7 = vsel %vm828_vm5, %v3132_v56, %v8893_v61  ;;  %v3524_v51 = vsel %vm619_vm3, %v8903_v27, %v3523_v21 }
 0x551   : > { %v4919_v28 = vadd.f32 %v4887_v46, %v9760_v38  ;;  %v3833_v9 = vpop.f32.mrf.mxu3  ;;  %v4584_v46 = vsel %vm225_vm0, %v8560_v20, %v8867_v23  ;;  %v9761_v23 = vld [vmem:[#allocation13_spill] sm:$0xff] }
 0x552   : > { %v4046_v49 = vadd.f32 %v4045_v33, %v3833_v9  ;;  %3072 = vrot.lane.b32.xlu0 %v3008_v10, %s5387_s25  ;;  %4349 = vrot.lane.b32.xlu2 %v4285_v36, %s5386_s20  ;;  %v4461_v9 = vsel %vm619_vm3, %v4459_v57, %v8989_v19 }
 0x553   : > { %v4951_v24 = vmax.f32 %v4919_v28, 0.0  ;;  %3412 = vrot.lane.b32.xlu1 %v3348_v52, %s5386_s20  ;;  %v3010_v28 = vsel %vm619_vm3, %v3007_v60, %v3009_v62  ;;  %v4048_v52 = vpop.f32.mrf.mxu0 }
 0x554   : > { %v8972_v37 = vpop.permute.xlu2 %4511  ;;  %v4772_v50 = vpop.f32.mrf.mxu1 }
 0x555   : > { %4983 = vst.msk [vmem:[%s8730_s13 + $0x38] sm:$0xff] %vm225_vm0, %v4951_v24  ;;  %v3571_v5 = vpop.permute.xlu0 %3570  ;;  %v4852_v8 = vadd.f32 %v4772_v50, %v4046_v49  ;;  %v4508_v58 = vpop.permute.xlu1 %4507  ;;  %v4161_v49 = vld [vmem:[#allocation2 + $0x190] sm:$0x3] }
 0x556   : > { %v3678_v33 = vsel %vm828_vm5, %v3646_v2, %v3571_v5  ;;  %v4616_v38 = vsel %vm828_vm5, %v4584_v46, %v4508_v58  ;;  %v4286_v30 = vrot.slane %v4161_v49, 1  ;;  %v3225_v2 = vld [vmem:[#allocation2 + $0x190] sm:$0x3] }
 0x557   : > { %v4888_v42 = vadd.f32 %v8710_v41, %v4852_v8  ;;  %5198 = vmatmul.msk.f32.gmra.mxu3 %vm1378_vm6, %v3678_v33  ;;  %5231 = vmatmul.msk.f32.gmra.mxu0 %vm1378_vm6, %v3164_v7 }
 0x558   : > { %5265 = vmatmul.msk.f32.gmra.mxu1 %vm1378_vm6, %v4616_v38  ;;  %v4287_v46 = vsel %vm442_vm1, %v8954_v11, %v4286_v30  ;;  %v4462_v38 = vrot.slane %v4161_v49, 2 }
 0x559   : > { %v4920_v61 = vadd.f32 %v4888_v42, %v9761_v23 }
 0x55a   : > { %3588 = vrot.lane.b32.xlu0 %v3524_v51, %s5387_s25  ;;  %3074 = vrot.lane.b32.xlu2 %v3010_v28, %s5387_s25  ;;  %v3836_v21 = vpop.f32.mrf.mxu3 }
 0x55b   : > { %v4952_v10 = vmax.f32 %v4920_v61, 0.0  ;;  %4525 = vrot.lane.b32.xlu1 %v4461_v9, %s5387_s25  ;;  %v4049_v56 = vadd.f32 %v4048_v52, %v3836_v21  ;;  %v9029_v61 = vld [vmem:[#allocation2 + $0x170] sm:$0xff]  ;;  %v4051_v28 = vpop.f32.mrf.mxu0  ;;  %v9038_v52 = vld [vmem:[#allocation2 + $0x198] sm:$0xff]  ;;  %v4463_v21 = vsel %vm619_vm3, %v8989_v19, %v4462_v38 }
 0x55c   : > { %v9005_v24 = vpop.permute.xlu2 %4337  ;;  %v3012_v51 = vrot.slane %v9029_v61, 2 }
 0x55d   : > { %4984 = vst.msk [vmem:[%s8730_s13 + $0x40] sm:$0xff] %vm225_vm0, %v4952_v10  ;;  %v3397_v50 = vpop.permute.xlu0 %3396  ;;  %v4334_v27 = vpop.permute.xlu1 %4333  ;;  %v9035_v10 = vld [vmem:[#allocation2 + $0x168] sm:$0xff] }
 0x55e   : > { %v3647_v60 = vsel %vm225_vm0, %v8560_v20, %v3397_v50  ;;  %v4585_v58 = vsel %vm225_vm0, %v8626_v48, %v4334_v27  ;;  %v3011_v49 = vrot.slane %v9035_v10, 2  ;;  %v9040_v50 = vld [vmem:[#allocation2 + $0x1a0] sm:$0xff] }
 0x55f   : > { %v3679_v62 = vsel %vm828_vm5, %v3647_v60, %v8918_v22  ;;  %v3133_v22 = vsel %vm225_vm0, %v8607_v31, %v8123_v17  ;;  %v9762_v31 = vld [vmem:[#allocation14_spill] sm:$0xff] }
 0x560   : > { %5199 = vmatmul.msk.f32.gmra.mxu3 %vm1378_vm6, %v3679_v62  ;;  %v3013_v30 = vsel %vm619_vm3, %v3011_v49, %v3012_v51 }
 0x562   : > { %3590 = vrot.lane.b32.xlu2 %v4461_v9, %s5387_s25  ;;  %3414 = vrot.lane.b32.xlu0 %v4285_v36, %s5386_s20  ;;  %v3352_v36 = vrot.slane %v3225_v2, 1  ;;  %v3839_v17 = vpop.f32.mrf.mxu3 }
 0x563   : > { %4351 = vrot.lane.b32.xlu1 %v4287_v46, %s5386_s20  ;;  %v4775_v5 = vpop.f32.mrf.mxu1  ;;  %v4052_v62 = vadd.f32 %v4051_v28, %v3839_v17  ;;  %v4289_v46 = vrot.slane %v9040_v50, 1 }
 0x564   : > { %v4853_v8 = vadd.f32 %v4775_v5, %v4049_v56  ;;  %v9019_v20 = vpop.permute.xlu2 %3062  ;;  %v3353_v27 = vsel %vm442_vm1, %v8954_v11, %v3352_v36  ;;  %v4288_v56 = vrot.slane %v9038_v52, 1 }
 0x565   : > { %v4510_v7 = vpop.permute.xlu0 %4509  ;;  %v3059_v33 = vpop.permute.xlu1 %3058 }
 0x566   : > { %v4889_v42 = vadd.f32 %v8710_v41, %v4853_v8  ;;  %v4617_v57 = vsel %vm828_vm5, %v4585_v58, %v4510_v7  ;;  %v3165_v23 = vsel %vm828_vm5, %v3133_v22, %v3059_v33  ;;  %v4464_v8 = vrot.slane %v9038_v52, 2 }
 0x567   : > { %5232 = vmatmul.msk.f32.gmra.mxu0 %vm1378_vm6, %v3165_v23  ;;  %5266 = vmatmul.msk.f32.gmra.mxu1 %vm1378_vm6, %v4617_v57  ;;  %v4465_v22 = vrot.slane %v9040_v50, 2  ;;  %v3648_v58 = vsel %vm225_vm0, %v8626_v48, %v8943_v26  ;;  %v3528_v57 = vrot.slane %v3225_v2, 2  ;;  %v4290_v17 = vsel %vm442_vm1, %v4288_v56, %v4289_v46  ;;  %v4054_v26 = vpop.f32.mrf.mxu0 }
 0x568   : > { %v4921_v9 = vadd.f32 %v4889_v42, %v9762_v31  ;;  %v9763_v31 = vld [vmem:[#allocation15_spill] sm:$0xff]  ;;  %v3134_v56 = vsel %vm225_vm0, %v8697_v12, %v8153_v34  ;;  %v9764_v34 = vld [vmem:[#allocation16_spill] sm:$0xff] }
 0x569   : > { %v4466_v48 = vsel %vm619_vm3, %v4464_v8, %v4465_v22 }
 0x56a   : > { %v4953_v60 = vmax.f32 %v4921_v9, 0.0  ;;  %3416 = vrot.lane.b32.xlu2 %v3353_v27, %s5386_s20  ;;  %4527 = vrot.lane.b32.xlu0 %v4463_v21, %s5387_s25  ;;  %v4164_v27 = vld [vmem:[#allocation2 + $0x1a8] sm:$0x3]  ;;  %v3529_v21 = vsel %vm619_vm3, %v8989_v19, %v3528_v57 }
 0x56b   : > { %3076 = vrot.lane.b32.xlu1 %v3013_v30, %s5387_s25 }
 0x56c   : > { %4985 = vst.msk [vmem:[%s8730_s13 + $0x48] sm:$0xff] %vm225_vm0, %v4953_v60  ;;  %v4778_v11 = vpop.f32.mrf.mxu1  ;;  %v9056_v5 = vpop.permute.xlu2 %3578 }
 0x56d   : > { %v4854_v7 = vadd.f32 %v4778_v11, %v4052_v62  ;;  %v4336_v33 = vpop.permute.xlu0 %4335  ;;  %v3575_v36 = vpop.permute.xlu1 %3574  ;;  %v4291_v62 = vrot.slane %v4164_v27, 1 }
 0x56e   : > { %v4586_v38 = vsel %vm225_vm0, %v8621_v43, %v4336_v33  ;;  %v3680_v42 = vsel %vm828_vm5, %v3648_v58, %v3575_v36  ;;  %v4467_v33 = vrot.slane %v4164_v27, 2 }
 0x56f   : > { %v4890_v23 = vadd.f32 %v8710_v41, %v4854_v7  ;;  %5200 = vmatmul.msk.f32.gmra.mxu3 %vm1378_vm6, %v3680_v42  ;;  %v4618_v28 = vsel %vm828_vm5, %v4586_v38, %v8972_v37  ;;  %v5375_v7 = vld [vmem:[#allocation2 + $0x178] sm:$0x3]  ;;  %v4292_v57 = vsel %vm442_vm1, %v4289_v46, %v4291_v62  ;;  %v4587_v46 = vsel %vm225_vm0, %v8684_v55, %v9005_v24 }
 0x570   : > { %5267 = vmatmul.msk.f32.gmra.mxu1 %vm1378_vm6, %v4618_v28  ;;  %v3014_v19 = vrot.slane %v5375_v7, 2  ;;  %v4468_v42 = vsel %vm619_vm3, %v4465_v22, %v4467_v33 }
 0x571   : > { %v4922_v9 = vadd.f32 %v4890_v23, %v9763_v31  ;;  %v3842_v49 = vpop.f32.mrf.mxu3 }
 0x572   : > { %v4055_v2 = vadd.f32 %v4054_v26, %v3842_v49  ;;  %4353 = vrot.lane.b32.xlu0 %v4290_v17, %s5386_s20  ;;  %4529 = vrot.lane.b32.xlu2 %v4466_v48, %s5387_s25  ;;  %v3015_v23 = vsel %vm619_vm3, %v3012_v51, %v3014_v19  ;;  %v3135_v17 = vsel %vm225_vm0, %v8691_v1, %v8112_v13  ;;  %v4057_v26 = vpop.f32.mrf.mxu0 }
 0x573   : > { %v4954_v37 = vmax.f32 %v4922_v9, 0.0  ;;  %3592 = vrot.lane.b32.xlu1 %v3529_v21, %s5387_s25  ;;  %v3167_v31 = vsel %vm828_vm5, %v3135_v17, %v9019_v20 }
 0x574   : > { %v9079_v60 = vpop.permute.xlu2 %3404  ;;  %v4781_v30 = vpop.f32.mrf.mxu1 }
 0x575   : > { %4986 = vst.msk [vmem:[%s8730_s13 + $0x50] sm:$0xff] %vm225_vm0, %v4954_v37  ;;  %v3061_v11 = vpop.permute.xlu0 %3060  ;;  %v4855_v8 = vadd.f32 %v4781_v30, %v4055_v2  ;;  %v3401_v58 = vpop.permute.xlu1 %3400 }
 0x576   : > { %v3166_v36 = vsel %vm828_vm5, %v3134_v56, %v3061_v11  ;;  %v3649_v51 = vsel %vm225_vm0, %v8621_v43, %v3401_v58  ;;  %v9765_v11 = vld [vmem:[#allocation17_spill] sm:$0xff] }
 0x577   : > { %v4891_v38 = vadd.f32 %v8710_v41, %v4855_v8  ;;  %5233 = vmatmul.msk.f32.gmra.mxu0 %vm1378_vm6, %v3166_v36  ;;  %v3136_v36 = vsel %vm225_vm0, %v8780_v39, %v8186_v45 }
 0x579   : > { %v4923_v12 = vadd.f32 %v4891_v38, %v9764_v34 }
 0x57a   : > { %3078 = vrot.lane.b32.xlu0 %v3015_v23, %s5387_s25  ;;  %4531 = vrot.lane.b32.xlu2 %v4468_v42, %s5387_s25  ;;  %v3845_v9 = vpop.f32.mrf.mxu3  ;;  %v4060_v62 = vpop.f32.mrf.mxu0  ;;  %v9766_v23 = vld [vmem:[#allocation18_spill] sm:$0xff] }
 0x57b   : > { %v4955_v28 = vmax.f32 %v4923_v12, 0.0  ;;  %4355 = vrot.lane.b32.xlu1 %v4292_v57, %s5386_s20  ;;  %v4058_v43 = vadd.f32 %v4057_v26, %v3845_v9  ;;  %v3651_v26 = vsel %vm225_vm0, %v8679_v44, %v9079_v60 }
 0x57c   : > { %v4518_v1 = vpop.permute.xlu2 %4517 }
 0x57d   : > { %4987 = vst.msk [vmem:[%s8730_s13 + $0x58] sm:$0xff] %vm225_vm0, %v4955_v28  ;;  %v3577_v22 = vpop.permute.xlu0 %3576  ;;  %v4514_v48 = vpop.permute.xlu1 %4513 }
 0x57e   : > { %v3681_v49 = vsel %vm828_vm5, %v3649_v51, %v3577_v22  ;;  %v4619_v13 = vsel %vm828_vm5, %v4587_v46, %v4514_v48 }
 0x57f   : > { %5201 = vmatmul.msk.f32.gmra.mxu3 %vm1378_vm6, %v3681_v49  ;;  %5234 = vmatmul.msk.f32.gmra.mxu0 %vm1378_vm6, %v3167_v31 }
 0x580   : > { %5268 = vmatmul.msk.f32.gmra.mxu1 %vm1378_vm6, %v4619_v13 }
 0x582   : > { %v3848_v56 = vpop.f32.mrf.mxu3  ;;  %v4063_v45 = vpop.f32.mrf.mxu0 }
 0x583   : > { %v4784_v24 = vpop.f32.mrf.mxu1  ;;  %v4061_v19 = vadd.f32 %v4060_v62, %v3848_v56 }
 0x584   : > { %v4856_v27 = vadd.f32 %v4784_v24, %v4058_v43  ;;  %v4344_v58 = vpop.permute.xlu2 %4343 }
 0x585   : > { %v3403_v2 = vpop.permute.xlu0 %3402  ;;  %v4340_v21 = vpop.permute.xlu1 %4339 }
 0x586   : > { %v4892_v20 = vadd.f32 %v8710_v41, %v4856_v27  ;;  %v3650_v37 = vsel %vm225_vm0, %v8684_v55, %v3403_v2  ;;  %v4588_v55 = vsel %vm225_vm0, %v8679_v44, %v4340_v21  ;;  %v9767_v27 = vld [vmem:[#allocation19_spill] sm:$0xff]  ;;  %v3137_v44 = vsel %vm225_vm0, %v8772_v4, %v8190_v29 }
 0x587   : > { %v3682_v30 = vsel %vm828_vm5, %v3650_v37, %v9056_v5 }
 0x588   : > { %v4924_v8 = vadd.f32 %v4892_v20, %v9765_v11  ;;  %5202 = vmatmul.msk.f32.gmra.mxu3 %vm1378_vm6, %v3682_v30 }
 0x58a   : > { %v4956_v7 = vmax.f32 %v4924_v8, 0.0  ;;  %v4066_v62 = vpop.f32.mrf.mxu0  ;;  %v3138_v8 = vsel %vm225_vm0, %v8853_v59, %v8169_v16 }
 0x58c   : > { %4988 = vst.msk [vmem:[%s8730_s13 + $0x60] sm:$0xff] %vm225_vm0, %v4956_v7  ;;  %v4787_v33 = vpop.f32.mrf.mxu1  ;;  %v3069_v46 = vpop.permute.xlu2 %3068 }
 0x58d   : > { %v4857_v5 = vadd.f32 %v4787_v33, %v4061_v19  ;;  %v4516_v38 = vpop.permute.xlu0 %4515  ;;  %v3065_v42 = vpop.permute.xlu1 %3064  ;;  %v4590_v19 = vsel %vm225_vm0, %v8791_v47, %v4344_v58  ;;  %v3170_v33 = vsel %vm828_vm5, %v3138_v8, %v3069_v46 }
 0x58e   : > { %v4620_v57 = vsel %vm828_vm5, %v4588_v55, %v4516_v38  ;;  %v3168_v34 = vsel %vm828_vm5, %v3136_v36, %v3065_v42 }
 0x58f   : > { %v4893_v12 = vadd.f32 %v8710_v41, %v4857_v5  ;;  %5235 = vmatmul.msk.f32.gmra.mxu0 %vm1378_vm6, %v3168_v34  ;;  %5269 = vmatmul.msk.f32.gmra.mxu1 %vm1378_vm6, %v4620_v57 }
 0x591   : > { %v4925_v28 = vadd.f32 %v4893_v12, %v9766_v23 }
 0x592   : > { %v3851_v39 = vpop.f32.mrf.mxu3  ;;  %v4069_v58 = vpop.f32.mrf.mxu0 }
 0x593   : > { %v4957_v17 = vmax.f32 %v4925_v28, 0.0  ;;  %v4064_v51 = vadd.f32 %v4063_v45, %v3851_v39 }
 0x594   : > { %v3585_v60 = vpop.permute.xlu2 %3584 }
 0x595   : > { %4989 = vst.msk [vmem:[%s8730_s13 + $0x68] sm:$0xff] %vm225_vm0, %v4957_v17  ;;  %v4342_v22 = vpop.permute.xlu0 %4341  ;;  %v4790_v48 = vpop.f32.mrf.mxu1 }
 0x596   : > { %v4589_v31 = vsel %vm225_vm0, %v8796_v54, %v4342_v22  ;;  %v4858_v9 = vadd.f32 %v4790_v48, %v4064_v51  ;;  %v3581_v49 = vpop.permute.xlu1 %3580  ;;  %v9769_v22 = vld [vmem:[#allocation22_spill] sm:$0xff] }
 0x597   : > { %v3683_v13 = vsel %vm828_vm5, %v3651_v26, %v3581_v49  ;;  %v4621_v43 = vsel %vm828_vm5, %v4589_v31, %v4518_v1 }
 0x598   : > { %v4894_v24 = vadd.f32 %v8710_v41, %v4858_v9  ;;  %5203 = vmatmul.msk.f32.gmra.mxu3 %vm1378_vm6, %v3683_v13  ;;  %5270 = vmatmul.msk.f32.gmra.mxu1 %vm1378_vm6, %v4621_v43 }
 0x59a   : > { %v4926_v2 = vadd.f32 %v4894_v24, %v9767_v27  ;;  %v3854_v37 = vpop.f32.mrf.mxu3  ;;  %v4072_v27 = vpop.f32.mrf.mxu0 }
 0x59b   : > { %v4067_v56 = vadd.f32 %v4066_v62, %v3854_v37 }
 0x59c   : > { %v4958_v21 = vmax.f32 %v4926_v2, 0.0  ;;  %v3411_v5 = vpop.permute.xlu2 %3410 }
 0x59d   : > { %v3067_v20 = vpop.permute.xlu0 %3066 }
 0x59e   : > { %4990 = vst.msk [vmem:[%s8730_s13 + $0x70] sm:$0xff] %vm225_vm0, %v4958_v21  ;;  %v3169_v1 = vsel %vm828_vm5, %v3137_v44, %v3067_v20  ;;  %v3407_v30 = vpop.permute.xlu1 %3406 }
 0x59f   : > { %5236 = vmatmul.msk.f32.gmra.mxu0 %vm1378_vm6, %v3169_v1  ;;  %v3652_v29 = vsel %vm225_vm0, %v8796_v54, %v3407_v30  ;;  %v9768_v54 = vld [vmem:[#allocation21_spill] sm:$0xff] }
 0x5a3   : > { %v3857_v16 = vpop.f32.mrf.mxu3 }
 0x5a4   : > { %v4793_v11 = vpop.f32.mrf.mxu1  ;;  %v4070_v57 = vadd.f32 %v4069_v58, %v3857_v16  ;;  %v4524_v51 = vpop.permute.xlu2 %4523  ;;  %v3141_v16 = vsel %vm225_vm0, %v8950_v53, %v8210_v25 }
 0x5a5   : > { %v4859_v4 = vadd.f32 %v4793_v11, %v4067_v56  ;;  %v3583_v7 = vpop.permute.xlu0 %3582  ;;  %v9770_v56 = vld [vmem:[#allocation24_spill] sm:$0xff] }
 0x5a6   : > { %v3684_v36 = vsel %vm828_vm5, %v3652_v29, %v3583_v7  ;;  %v4520_v55 = vpop.permute.xlu1 %4519 }
 0x5a7   : > { %v4895_v38 = vadd.f32 %v8710_v41, %v4859_v4  ;;  %v4622_v42 = vsel %vm828_vm5, %v4590_v19, %v4520_v55  ;;  %5204 = vmatmul.msk.f32.gmra.mxu3 %vm1378_vm6, %v3684_v36  ;;  %5237 = vmatmul.msk.f32.gmra.mxu0 %vm1378_vm6, %v3170_v33 }
 0x5a8   : > { %5271 = vmatmul.msk.f32.gmra.mxu1 %vm1378_vm6, %v4622_v42 }
 0x5a9   : > { %v4927_v59 = vadd.f32 %v4895_v38, %v9768_v54  ;;  %v9209_v38 = vld [vmem:[%s9317_s4] ss:$0 sm:$0xff] }
 0x5ab   : > { %v4959_v34 = vmax.f32 %v4927_v59, 0.0 }
 0x5ac   : > { %v4796_v12 = vpop.f32.mrf.mxu1  ;;  %v4350_v2 = vpop.permute.xlu2 %4349 }
 0x5ad   : > { %4991 = vst.msk [vmem:[%s8730_s13 + $0x78] sm:$0xff] %vm225_vm0, %v4959_v34  ;;  %v4860_v23 = vadd.f32 %v4796_v12, %v4070_v57  ;;  %v3409_v28 = vpop.permute.xlu0 %3408  ;;  %v4593_v57 = vsel %vm225_vm0, %v8945_v3, %v4350_v2 }
 0x5ae   : > { %v3653_v45 = vsel %vm225_vm0, %v8791_v47, %v3409_v28  ;;  %v4346_v39 = vpop.permute.xlu1 %4345  ;;  %v3139_v47 = vsel %vm225_vm0, %v8845_v32, %v8230_v35  ;;  %v3654_v35 = vsel %vm225_vm0, %v8871_v6, %v3411_v5 }
 0x5af   : > { %v4896_v17 = vadd.f32 %v8710_v41, %v4860_v23  ;;  %v3685_v46 = vsel %vm828_vm5, %v3653_v45, %v3585_v60  ;;  %v4591_v31 = vsel %vm225_vm0, %v8871_v6, %v4346_v39  ;;  %v3140_v6 = vsel %vm225_vm0, %v8959_v63, %v8281_v0  ;;  %v9771_v63 = vld [vmem:[#allocation27_spill] sm:$0xff] }
 0x5b0   : > { %5205 = vmatmul.msk.f32.gmra.mxu3 %vm1378_vm6, %v3685_v46 }
 0x5b1   : > { %v4928_v48 = vadd.f32 %v4896_v17, %v9769_v22 }
 0x5b2   : > { %v3860_v24 = vpop.f32.mrf.mxu3 }
 0x5b3   : > { %v4960_v26 = vmax.f32 %v4928_v48, 0.0  ;;  %v4073_v21 = vadd.f32 %v4072_v27, %v3860_v24  ;;  %v3142_v24 = vsel %vm225_vm0, %v9035_v10, %v8337_v15 }
 0x5b4   : > { %v3075_v7 = vpop.permute.xlu2 %3074 }
 0x5b5   : > { %4992 = vst.msk [vmem:[%s8730_s13 + $0x80] sm:$0xff] %vm225_vm0, %v4960_v26  ;;  %v4522_v9 = vpop.permute.xlu0 %4521  ;;  %v3173_v34 = vsel %vm828_vm5, %v3141_v16, %v3075_v7 }
 0x5b6   : > { %v4623_v49 = vsel %vm828_vm5, %v4591_v31, %v4522_v9  ;;  %v3071_v13 = vpop.permute.xlu1 %3070  ;;  %v9772_v9 = vld [vmem:[#allocation29_spill] sm:$0xff] }
 0x5b7   : > { %v3171_v43 = vsel %vm828_vm5, %v3139_v47, %v3071_v13  ;;  %5272 = vmatmul.msk.f32.gmra.mxu1 %vm1378_vm6, %v4623_v49 }
 0x5b8   : > { %5238 = vmatmul.msk.f32.gmra.mxu0 %vm1378_vm6, %v3171_v43 }
 0x5bb   : > { %v3863_v8 = vpop.f32.mrf.mxu3 }
 0x5bc   : > { %v4799_v44 = vpop.f32.mrf.mxu1  ;;  %v4075_v29 = vpop.f32.mrf.mxu0 }
 0x5bd   : > { %v4861_v60 = vadd.f32 %v4799_v44, %v4073_v21  ;;  %v4348_v20 = vpop.permute.xlu0 %4347  ;;  %v4076_v19 = vadd.f32 %v4075_v29, %v3863_v8  ;;  %v3591_v25 = vpop.permute.xlu2 %3590  ;;  %v9773_v29 = vld [vmem:[#allocation33_spill] sm:$0xff] }
 0x5be   : > { %v4592_v32 = vsel %vm225_vm0, %v8865_v14, %v4348_v20  ;;  %v3587_v37 = vpop.permute.xlu1 %3586 }
 0x5bf   : > { %v4897_v1 = vadd.f32 %v8710_v41, %v4861_v60  ;;  %v3686_v30 = vsel %vm828_vm5, %v3654_v35, %v3587_v37  ;;  %v4624_v62 = vsel %vm828_vm5, %v4592_v32, %v4524_v51 }
 0x5c0   : > { %5206 = vmatmul.msk.f32.gmra.mxu3 %vm1378_vm6, %v3686_v30  ;;  %5273 = vmatmul.msk.f32.gmra.mxu1 %vm1378_vm6, %v4624_v62 }
 0x5c1   : > { %v4929_v11 = vadd.f32 %v4897_v1, %v9770_v56 }
 0x5c3   : > { %v4961_v4 = vmax.f32 %v4929_v11, 0.0 }
 0x5c5   : > { %4993 = vst.msk [vmem:[%s8730_s13 + $0x88] sm:$0xff] %vm225_vm0, %v4961_v4  ;;  %v3073_v41 = vpop.permute.xlu0 %3072  ;;  %v4802_v36 = vpop.f32.mrf.mxu1 }
 0x5c6   : > { %v3172_v33 = vsel %vm828_vm5, %v3140_v6, %v3073_v41  ;;  %v3413_v55 = vpop.permute.xlu1 %3412  ;;  %v4862_v5 = vadd.f32 %v4802_v36, %v4076_v19  ;;  %v3417_v31 = vpop.permute.xlu2 %3416 }
 0x5c7   : > { %5239 = vmatmul.msk.f32.gmra.mxu0 %vm1378_vm6, %v3172_v33  ;;  %v3655_v59 = vsel %vm225_vm0, %v8865_v14, %v3413_v55  ;;  %v3657_v15 = vsel %vm225_vm0, %v8938_v18, %v3417_v31 }
 0x5c8   : > { %v4898_v0 = vadd.f32 %v9209_v38, %v4862_v5 }
 0x5ca   : > { %v4930_v42 = vadd.f32 %v4898_v0, %v9771_v63  ;;  %v3866_v53 = vpop.f32.mrf.mxu3 }
 0x5cc   : > { %v4962_v54 = vmax.f32 %v4930_v42, 0.0  ;;  %v4078_v14 = vpop.f32.mrf.mxu0 }
 0x5cd   : > { %v3589_v58 = vpop.permute.xlu0 %3588  ;;  %v4079_v45 = vadd.f32 %v4078_v14, %v3866_v53 }
 0x5ce   : > { %v3687_v12 = vsel %vm828_vm5, %v3655_v59, %v3589_v58  ;;  %v4526_v23 = vpop.permute.xlu1 %4525  ;;  %4994 = vst.msk [vmem:[%s8730_s13 + $0x90] sm:$0xff] %vm225_vm0, %v4962_v54  ;;  %v4530_v60 = vpop.permute.xlu2 %4529 }
 0x5cf   : > { %v4625_v28 = vsel %vm828_vm5, %v4593_v57, %v4526_v23  ;;  %5207 = vmatmul.msk.f32.gmra.mxu3 %vm1378_vm6, %v3687_v12  ;;  %5240 = vmatmul.msk.f32.gmra.mxu0 %vm1378_vm6, %v3173_v34  ;;  %v9775_v34 = vld [vmem:[#allocation36_spill] sm:$0xff] }
 0x5d0   : > { %5274 = vmatmul.msk.f32.gmra.mxu1 %vm1378_vm6, %v4625_v28 }
 0x5d4   : > { %v4081_v44 = vpop.f32.mrf.mxu0 }
 0x5d5   : > { %v4805_v39 = vpop.f32.mrf.mxu1  ;;  %v3415_v17 = vpop.permute.xlu0 %3414 }
 0x5d6   : > { %v4863_v46 = vadd.f32 %v4805_v39, %v4079_v45  ;;  %v3656_v51 = vsel %vm225_vm0, %v8945_v3, %v3415_v17  ;;  %v4352_v22 = vpop.permute.xlu1 %4351  ;;  %v4532_v7 = vpop.permute.xlu2 %4531 }
 0x5d7   : > { %v3688_v48 = vsel %vm828_vm5, %v3656_v51, %v3591_v25  ;;  %v4594_v13 = vsel %vm225_vm0, %v8938_v18, %v4352_v22  ;;  %v9776_v51 = vld [vmem:[#allocation37_spill] sm:$0xff] }
 0x5d8   : > { %v4899_v26 = vadd.f32 %v9209_v38, %v4863_v46  ;;  %5208 = vmatmul.msk.f32.gmra.mxu3 %vm1378_vm6, %v3688_v48 }
 0x5da   : > { %v4931_v47 = vadd.f32 %v4899_v26, %v9772_v9  ;;  %v3869_v2 = vpop.f32.mrf.mxu3 }
 0x5db   : > { %v4082_v20 = vadd.f32 %v4081_v44, %v3869_v2 }
 0x5dc   : > { %v4963_v49 = vmax.f32 %v4931_v47, 0.0 }
 0x5dd   : > { %v4528_v43 = vpop.permute.xlu0 %4527 }
 0x5de   : > { %4995 = vst.msk [vmem:[%s8730_s13 + $0x98] sm:$0xff] %vm225_vm0, %v4963_v49  ;;  %v4626_v3 = vsel %vm828_vm5, %v4594_v13, %v4528_v43  ;;  %v3077_v27 = vpop.permute.xlu1 %3076  ;;  %v9777_v49 = vld [vmem:[#allocation40_spill] sm:$0xff] }
 0x5df   : > { %v3174_v21 = vsel %vm828_vm5, %v3142_v24, %v3077_v27  ;;  %5275 = vmatmul.msk.f32.gmra.mxu1 %vm1378_vm6, %v4626_v3 }
 0x5e0   : > { %5241 = vmatmul.msk.f32.gmra.mxu0 %vm1378_vm6, %v3174_v21 }
 0x5e3   : > { %v3872_v11 = vpop.f32.mrf.mxu3 }
 0x5e4   : > { %v4808_v35 = vpop.f32.mrf.mxu1  ;;  %v4084_v8 = vpop.f32.mrf.mxu0 }
 0x5e5   : > { %v4864_v32 = vadd.f32 %v4808_v35, %v4082_v20  ;;  %v4354_v37 = vpop.permute.xlu0 %4353  ;;  %v4085_v18 = vadd.f32 %v4084_v8, %v3872_v11  ;;  %v9779_v11 = vld [vmem:[#allocation46_spill] sm:$0xff] }
 0x5e6   : > { %v4595_v10 = vsel %vm225_vm0, %v9038_v52, %v4354_v37  ;;  %v3593_v1 = vpop.permute.xlu1 %3592  ;;  %v3143_v52 = vsel %vm225_vm0, %v9029_v61, %v8340_v40  ;;  %v9774_v40 = vld [vmem:[#allocation34_spill] sm:$0xff] }
 0x5e7   : > { %v4900_v30 = vadd.f32 %v9209_v38, %v4864_v32  ;;  %v3689_v62 = vsel %vm828_vm5, %v3657_v15, %v3593_v1  ;;  %v4627_v56 = vsel %vm828_vm5, %v4595_v10, %v4530_v60  ;;  %v9778_v60 = vld [vmem:[#allocation41_spill] sm:$0xff] }
 0x5e8   : > { %5209 = vmatmul.msk.f32.gmra.mxu3 %vm1378_vm6, %v3689_v62  ;;  %5276 = vmatmul.msk.f32.gmra.mxu1 %vm1378_vm6, %v4627_v56 }
 0x5e9   : > { %v4932_v4 = vadd.f32 %v4900_v30, %v9773_v29 }
 0x5eb   : > { %v4964_v6 = vmax.f32 %v4932_v4, 0.0 }
 0x5ed   : > { %4996 = vst.msk [vmem:[%s8730_s13 + $0xa0] sm:$0xff] %vm225_vm0, %v4964_v6  ;;  %v3079_v19 = vpop.permute.xlu0 %3078  ;;  %v4811_v41 = vpop.f32.mrf.mxu1 }
 0x5ee   : > { %v3175_v33 = vsel %vm828_vm5, %v3143_v52, %v3079_v19  ;;  %v4865_v36 = vadd.f32 %v4811_v41, %v4085_v18  ;;  %v4356_v55 = vpop.permute.xlu1 %4355  ;;  %v9780_v52 = vld [vmem:[#allocation47_spill] sm:$0xff] }
 0x5ef   : > { %v4596_v5 = vsel %vm225_vm0, %v9040_v50, %v4356_v55  ;;  %5242 = vmatmul.msk.f32.gmra.mxu0 %vm1378_vm6, %v3175_v33 }
 0x5f0   : > { %v4901_v0 = vadd.f32 %v9209_v38, %v4865_v36  ;;  %v4628_v63 = vsel %vm828_vm5, %v4596_v5, %v4532_v7 }
 0x5f1   : > { %5277 = vmatmul.msk.f32.gmra.mxu1 %vm1378_vm6, %v4628_v63 }
 0x5f2   : > { %v4933_v61 = vadd.f32 %v4901_v0, %v9774_v40  ;;  %v3875_v54 = vpop.f32.mrf.mxu3  ;;  %v9781_v40 = vld [vmem:[#allocation49_spill] sm:$0xff] }
 0x5f4   : > { %v4965_v42 = vmax.f32 %v4933_v61, 0.0  ;;  %v4087_v16 = vpop.f32.mrf.mxu0 }
 0x5f5   : > { %v4088_v59 = vadd.f32 %v4087_v16, %v3875_v54 }
 0x5f6   : > { %4997 = vst.msk [vmem:[%s8730_s13 + $0xa8] sm:$0xff] %vm225_vm0, %v4965_v42 }
 0x5fc   : > { %v4090_v25 = vpop.f32.mrf.mxu0 }
 0x5fd   : > { %v4814_v58 = vpop.f32.mrf.mxu1 }
 0x5fe   : > { %v4866_v57 = vadd.f32 %v4814_v58, %v4088_v59 }
 0x600   : > { %v4902_v50 = vadd.f32 %v9209_v38, %v4866_v57 }
 0x602   : > { %v4934_v12 = vadd.f32 %v4902_v50, %v9775_v34  ;;  %v3878_v28 = vpop.f32.mrf.mxu3 }
 0x603   : > { %v4091_v14 = vadd.f32 %v4090_v25, %v3878_v28 }
 0x604   : > { %v4966_v23 = vmax.f32 %v4934_v12, 0.0 }
 0x606   : > { %4998 = vst.msk [vmem:[%s8730_s13 + $0xb0] sm:$0xff] %vm225_vm0, %v4966_v23  ;;  %v9782_v23 = vld [vmem:[#allocation50_spill] sm:$0xff] }
 0x60b   : > { %v3881_v17 = vpop.f32.mrf.mxu3 }
 0x60c   : > { %v4817_v53 = vpop.f32.mrf.mxu1  ;;  %v4093_v46 = vpop.f32.mrf.mxu0 }
 0x60d   : > { %v4867_v45 = vadd.f32 %v4817_v53, %v4091_v14  ;;  %v4094_v26 = vadd.f32 %v4093_v46, %v3881_v17  ;;  %v9783_v17 = vld [vmem:[#allocation28_spill] sm:$0xff] }
 0x60f   : > { %v4903_v39 = vadd.f32 %v9209_v38, %v4867_v45 }
 0x611   : > { %v4935_v22 = vadd.f32 %v4903_v39, %v9776_v51 }
 0x613   : > { %v4967_v48 = vmax.f32 %v4935_v22, 0.0 }
 0x615   : > { %4999 = vst.msk [vmem:[%s8730_s13 + $0xb8] sm:$0xff] %vm225_vm0, %v4967_v48  ;;  %v4820_v31 = vpop.f32.mrf.mxu1 }
 0x616   : > { %v4868_v9 = vadd.f32 %v4820_v31, %v4094_v26 }
 0x618   : > { %v4904_v47 = vadd.f32 %v9209_v38, %v4868_v9 }
 0x61a   : > { %v4936_v13 = vadd.f32 %v4904_v47, %v9777_v49  ;;  %v9784_v49 = vld [vmem:[#allocation54_spill] sm:$0xff] }
 0x61b   : > { %v3884_v3 = vpop.f32.mrf.mxu3 }
 0x61c   : > { %v4968_v43 = vmax.f32 %v4936_v13, 0.0  ;;  %v4096_v24 = vpop.f32.mrf.mxu0 }
 0x61d   : > { %v4097_v27 = vadd.f32 %v4096_v24, %v3884_v3 }
 0x61e   : > { %5000 = vst.msk [vmem:[%s8730_s13 + $0xc0] sm:$0xff] %vm225_vm0, %v4968_v43 }
 0x624   : > { %v4099_v37 = vpop.f32.mrf.mxu0 }
 0x625   : > { %v4823_v2 = vpop.f32.mrf.mxu1 }
 0x626   : > { %v4869_v21 = vadd.f32 %v4823_v2, %v4097_v27 }
 0x628   : > { %v4905_v44 = vadd.f32 %v9209_v38, %v4869_v21 }
 0x62a   : > { %v4937_v20 = vadd.f32 %v4905_v44, %v9778_v60  ;;  %v3887_v32 = vpop.f32.mrf.mxu3 }
 0x62b   : > { %v4100_v15 = vadd.f32 %v4099_v37, %v3887_v32 }
 0x62c   : > { %v4969_v35 = vmax.f32 %v4937_v20, 0.0 }
 0x62e   : > { %5001 = vst.msk [vmem:[%s8730_s13 + $0xc8] sm:$0xff] %vm225_vm0, %v4969_v35 }
 0x633   : > { %v3890_v62 = vpop.f32.mrf.mxu3 }
 0x634   : > { %v4826_v10 = vpop.f32.mrf.mxu1 }
 0x635   : > { %v4870_v1 = vadd.f32 %v4826_v10, %v4100_v15  ;;  %v4102_v56 = vpop.f32.mrf.mxu0 }
 0x636   : > { %v4103_v4 = vadd.f32 %v4102_v56, %v3890_v62 }
 0x637   : > { %v4906_v30 = vadd.f32 %v9209_v38, %v4870_v1 }
 0x639   : > { %v4938_v8 = vadd.f32 %v4906_v30, %v9779_v11 }
 0x63b   : > { %v4970_v29 = vmax.f32 %v4938_v8, 0.0 }
 0x63d   : > { %5002 = vst.msk [vmem:[%s8730_s13 + $0xd0] sm:$0xff] %vm225_vm0, %v4970_v29  ;;  %v4829_v6 = vpop.f32.mrf.mxu1 }
 0x63e   : > { %v4871_v18 = vadd.f32 %v4829_v6, %v4103_v4 }
 0x640   : > { %v4907_v7 = vadd.f32 %v9209_v38, %v4871_v18 }
 0x642   : > { %v4939_v19 = vadd.f32 %v4907_v7, %v9780_v52 }
 0x643   : > { %v3893_v36 = vpop.f32.mrf.mxu3 }
 0x644   : > { %v4971_v41 = vmax.f32 %v4939_v19, 0.0  ;;  %v4105_v33 = vpop.f32.mrf.mxu0 }
 0x645   : > { %v4106_v55 = vadd.f32 %v4105_v33, %v3893_v36 }
 0x646   : > { %5003 = vst.msk [vmem:[%s8730_s13 + $0xd8] sm:$0xff] %vm225_vm0, %v4971_v41 }
 0x64c   : > { %v4108_v54 = vpop.f32.mrf.mxu0 }
 0x64d   : > { %v4832_v5 = vpop.f32.mrf.mxu1 }
 0x64e   : > { %v4872_v0 = vadd.f32 %v4832_v5, %v4106_v55 }
 0x650   : > { %v4908_v63 = vadd.f32 %v9209_v38, %v4872_v0 }
 0x652   : > { %v4940_v61 = vadd.f32 %v4908_v63, %v9781_v40  ;;  %v3896_v16 = vpop.f32.mrf.mxu3 }
 0x653   : > { %v4109_v59 = vadd.f32 %v4108_v54, %v3896_v16 }
 0x654   : > { %v4972_v42 = vmax.f32 %v4940_v61, 0.0 }
 0x656   : > { %5004 = vst.msk [vmem:[%s8730_s13 + $0xe0] sm:$0xff] %vm225_vm0, %v4972_v42 }
 0x65b   : > { %v3899_v34 = vpop.f32.mrf.mxu3 }
 0x65c   : > { %v4835_v58 = vpop.f32.mrf.mxu1 }
 0x65d   : > { %v4873_v57 = vadd.f32 %v4835_v58, %v4109_v59  ;;  %v4111_v12 = vpop.f32.mrf.mxu0 }
 0x65e   : > { %v4112_v14 = vadd.f32 %v4111_v12, %v3899_v34 }
 0x65f   : > { %v4909_v50 = vadd.f32 %v9209_v38, %v4873_v57 }
 0x661   : > { %v4941_v28 = vadd.f32 %v4909_v50, %v9782_v23 }
 0x663   : > { %v4973_v25 = vmax.f32 %v4941_v28, 0.0 }
 0x665   : > { %5005 = vst.msk [vmem:[%s8730_s13 + $0xe8] sm:$0xff] %vm225_vm0, %v4973_v25  ;;  %v4838_v53 = vpop.f32.mrf.mxu1 }
 0x666   : > { %v4874_v45 = vadd.f32 %v4838_v53, %v4112_v14 }
 0x668   : > { %v4910_v39 = vadd.f32 %v9209_v38, %v4874_v45 }
 0x66a   : > { %v4942_v46 = vadd.f32 %v4910_v39, %v9783_v17 }
 0x66b   : > { %v3902_v22 = vpop.f32.mrf.mxu3 }
 0x66c   : > { %v4974_v51 = vmax.f32 %v4942_v46, 0.0  ;;  %v4114_v48 = vpop.f32.mrf.mxu0 }
 0x66d   : > { %v4115_v26 = vadd.f32 %v4114_v48, %v3902_v22 }
 0x66e   : > { %5006 = vst.msk [vmem:[%s8730_s13 + $0xf0] sm:$0xff] %vm225_vm0, %v4974_v51  ;;  %v4841_v31 = vpop.f32.mrf.mxu1 }
 0x66f   : > { %v4875_v9 = vadd.f32 %v4841_v31, %v4115_v26 }
 0x671   : > { %v4911_v47 = vadd.f32 %v9209_v38, %v4875_v9 }
 0x673   : > { %v4943_v13 = vadd.f32 %v4911_v47, %v9784_v49 }
 0x675   : > { %v4975_v43 = vmax.f32 %v4943_v13, 0.0 }
 0x677   : > { %5007 = vst.msk [vmem:[%s8730_s13 + $0xf8] sm:$0xff] %vm225_vm0, %v4975_v43 }
 0x678 PF: > { %s15_s18 = sadd.s32 1, %s5383_s18  }
 0x679   : > { %p12_p4 = scmp.ge.s32.totalorder %s15_s18, 4  }
 0x67b   :  { %14 = sbr.rel (!%p12_p4) target bundleno = 1 (0x1), region = 76 }

</bundles_post_ra>
